<compile_context>
chip_gen: v7x
topology: tpu7x:2x2x1
jax: 0.10.0
libtpu: 0.0.40
codegen_flags: <defaults>
</compile_context>

<pallas_src>
import functools

import jax
import jax.numpy as jnp
from jax import lax
from jax.experimental import pallas as pl
from jax.experimental.pallas import tpu as pltpu


def bilstm_kernel(x_ref,        # (T*Bp, I)   time-major, batch padded to Bp
                  wih_f_ref,    # (I, 4H)     forward input weights
                  wih_b_ref,    # (I, 4H)     backward input weights
                  whh_f_ref,    # (H, 4H)     forward recurrent weights
                  b_f_ref,      # (1, 4H)     b_ih_f + b_hh_f
                  b_b_ref,      # (1, 4H)     b_ih_b + b_hh_b
                  wd_f_ref,     # (H, 1)      dense weight, forward half
                  wd_b_ref,     # (H, 1)      dense weight, backward half
                  bd_ref,       # (1, 1)
                  out_ref,      # (Bp, 1)
                  proj_ref,     # scratch: (T*Bp, 4H) forward pre-activations
                  *, T, Bp):
    H = whh_f_ref.shape[0]

    # ---- Forward input projection for ALL timesteps: one batched MXU pass,
    # bias folded in, streamed to VMEM scratch for the recurrence.
    proj_ref[...] = (jnp.dot(x_ref[...], wih_f_ref[...],
                             preferred_element_type=jnp.float32)
                     + b_f_ref[...])

    def gates_to_hc(gates, c):
        # PyTorch gate order: i, f, g, o (each exactly H = 128 lanes wide).
        i = jax.nn.sigmoid(gates[:, 0 * H:1 * H])
        f = jax.nn.sigmoid(gates[:, 1 * H:2 * H])
        g = jnp.tanh(gates[:, 2 * H:3 * H])
        o = jax.nn.sigmoid(gates[:, 3 * H:4 * H])
        c_new = f * c + i * g
        return o * jnp.tanh(c_new), c_new

    zeros = jnp.zeros((Bp, H), jnp.float32)

    # ---- Backward direction == single cell step on x[T-1] from a zero state.
    # Only the last timestep's rows go through W_ih_bwd (static slice).
    x_last = x_ref[(T - 1) * Bp:T * Bp, :]
    gates_b = (jnp.dot(x_last, wih_b_ref[...],
                       preferred_element_type=jnp.float32) + b_b_ref[...])
    h_b, _ = gates_to_hc(gates_b, zeros)

    whh_f = whh_f_ref[...]

    def step(t, carry):
        h, c = carry
        row = pl.multiple_of(t * Bp, Bp)
        gates = (proj_ref[pl.ds(row, Bp), :]
                 + jnp.dot(h, whh_f, preferred_element_type=jnp.float32))
        return gates_to_hc(gates, c)

    # T is static and small -> fully unroll so the scheduler sees across steps.
    h_f, _ = lax.fori_loop(0, T, step, (zeros, zeros), unroll=True)

    # ---- Head: split dense weight avoids a lane-dim concatenate.
    out_ref[...] = (jnp.dot(h_f, wd_f_ref[...], preferred_element_type=jnp.float32)
                    + jnp.dot(h_b, wd_b_ref[...], preferred_element_type=jnp.float32)
                    + bd_ref[...])


def bilstm_forward(x_nchw, params):
    """x_nchw: (B, C, H, W) float32.  Returns (B, 1)."""
    B, C, Hs, W = x_nchw.shape
    T = Hs
    I = C * W
    H = params["whh_f"].shape[0]

    # Exactly matches torch .view(B, H, -1) on a contiguous NCHW tensor
    # (both are a row-major reinterpretation of the same flat buffer).
    x_bti = jnp.reshape(x_nchw, (B, T, I))

    # Pad the batch to a full 8-row sublane tile so the recurrence feeds whole
    # MXU rows / vregs; padded rows are zeros and are sliced off afterwards.
    Bp = ((B + 7) // 8) * 8
    x_bti = jnp.pad(x_bti, ((0, Bp - B), (0, 0), (0, 0)))

    # Time-major and flattened to 2D so the kernel needs no in-kernel relayouts.
    x_flat = jnp.transpose(x_bti, (1, 0, 2)).reshape(T * Bp, I)

    # Split the dense weight so the head needs no lane-dim concatenate.
    wd_f = params["wd"][:H]
    wd_b = params["wd"][H:]

    args = (x_flat, params["wih_f"], params["wih_b"], params["whh_f"],
            params["b_f"], params["b_b"], wd_f, wd_b, params["bd"])
    vmem = pl.BlockSpec(memory_space=pltpu.MemorySpace.VMEM)

    out = pl.pallas_call(
        functools.partial(bilstm_kernel, T=T, Bp=Bp),
        out_shape=jax.ShapeDtypeStruct((Bp, 1), jnp.float32),
        in_specs=[vmem] * len(args),
        out_specs=vmem,
        scratch_shapes=[pltpu.VMEM((T * Bp, 4 * H), jnp.float32)],
    )(*args)
    return out[:B]


def make_params(key, input_size, hidden):
    """Deterministic synthetic parameters with PyTorch LSTM/Linear shapes."""
    ks = jax.random.split(key, 11)
    bound = 1.0 / jnp.sqrt(hidden)

    def u(k, shape):
        return jax.random.uniform(k, shape, jnp.float32, -bound, bound)

    # PyTorch stores weight_ih (4H, I) / weight_hh (4H, H); kernel wants transposed.
    w_ih_f = u(ks[0], (4 * hidden, input_size))
    w_hh_f = u(ks[1], (4 * hidden, hidden))
    b_ih_f = u(ks[2], (4 * hidden,))
    b_hh_f = u(ks[3], (4 * hidden,))
    w_ih_b = u(ks[4], (4 * hidden, input_size))
    w_hh_b = u(ks[5], (4 * hidden, hidden))
    b_ih_b = u(ks[6], (4 * hidden,))
    b_hh_b = u(ks[7], (4 * hidden,))
    w_d = u(ks[8], (1, 2 * hidden))
    b_d = u(ks[9], (1,))

    return {
        "wih_f": w_ih_f.T, "whh_f": w_hh_f.T, "b_f": (b_ih_f + b_hh_f)[None, :],
        "wih_b": w_ih_b.T, "whh_b": w_hh_b.T, "b_b": (b_ih_b + b_hh_b)[None, :],
        "wd": w_d.T, "bd": b_d[None, :],
    }


def reference_forward(x_nchw, params):
    """Pure-JAX reference (full forward+backward scans) for a correctness check."""
    B, C, Hs, W = x_nchw.shape
    Hh = params["whh_f"].shape[0]
    x = jnp.reshape(x_nchw, (B, Hs, -1))

    def run_dir(xseq, wih, whh, b):
        def cell(carry, xt):
            h, c = carry
            g = xt @ wih + h @ whh + b
            i = jax.nn.sigmoid(g[:, 0 * Hh:1 * Hh])
            f = jax.nn.sigmoid(g[:, 1 * Hh:2 * Hh])
            gg = jnp.tanh(g[:, 2 * Hh:3 * Hh])
            o = jax.nn.sigmoid(g[:, 3 * Hh:4 * Hh])
            c = f * c + i * gg
            h = o * jnp.tanh(c)
            return (h, c), h
        z = jnp.zeros((B, Hh), jnp.float32)
        (_, _), hs = lax.scan(cell, (z, z), jnp.transpose(xseq, (1, 0, 2)))
        return hs                                    # (T, B, Hh)

    hs_f = run_dir(x, params["wih_f"], params["whh_f"], params["b_f"])
    hs_b = run_dir(x[:, ::-1, :], params["wih_b"], params["whh_b"], params["b_b"])
    hs_b = hs_b[::-1]                                # align backward outputs to positions
    last = jnp.concatenate([hs_f[-1], hs_b[-1]], axis=-1)
    return last @ params["wd"] + params["bd"]


if __name__ == "__main__":
    # Small but module-consistent shapes: the nn.LSTM was built with
    # input_size = 224*3 = 672 and hidden_size = 128; sequence length = image
    # height (kept short at 8) and batch = 2.
    B, C, Hs, W = 2, 3, 8, 224       # -> T = 8, input_size = 672
    HIDDEN = 128

    key = jax.random.PRNGKey(0)
    kx, kp = jax.random.split(key)
    x = jax.random.normal(kx, (B, C, Hs, W), jnp.float32)
    params = make_params(kp, input_size=C * W, hidden=HIDDEN)

    out = jax.block_until_ready(jax.jit(bilstm_forward)(x, params))
    ref = jax.block_until_ready(reference_forward(x, params))

    assert out.shape == (B, 1)
    assert jnp.allclose(out, ref, rtol=1e-3, atol=1e-3), (out, ref)

    print("KERNEL_OK")
</pallas_src>

<mosaic_0001>
module attributes {stable_mosaic.version = 11 : i64} {
  func.func @bilstm_kernel(%arg0: memref<64x672xf32, #tpu.memory_space<vmem>>, %arg1: memref<672x512xf32, #tpu.memory_space<vmem>>, %arg2: memref<672x512xf32, #tpu.memory_space<vmem>>, %arg3: memref<128x512xf32, #tpu.memory_space<vmem>>, %arg4: memref<1x512xf32, #tpu.memory_space<vmem>>, %arg5: memref<1x512xf32, #tpu.memory_space<vmem>>, %arg6: memref<128x1xf32, #tpu.memory_space<vmem>>, %arg7: memref<128x1xf32, #tpu.memory_space<vmem>>, %arg8: memref<1x1xf32, #tpu.memory_space<vmem>>, %arg9: memref<8x1xf32, #tpu.memory_space<vmem>>, %arg10: memref<64x512xf32, #tpu.memory_space<vmem>>) attributes {dimension_semantics = [], scalar_prefetch = 0 : i64, scratch_operands = 1 : i64, tpu.core_type = #tpu.core_type<tc>} {
    %c0 = arith.constant 0 : index
    %c0_0 = arith.constant 0 : index
    %0 = vector.load %arg0[%c0, %c0_0] : memref<64x672xf32, #tpu.memory_space<vmem>>, vector<64x672xf32>
    %c0_1 = arith.constant 0 : index
    %c0_2 = arith.constant 0 : index
    %1 = vector.load %arg1[%c0_1, %c0_2] : memref<672x512xf32, #tpu.memory_space<vmem>>, vector<672x512xf32>
    %cst = arith.constant dense<0.000000e+00> : vector<64x512xf32>
    %2 = tpu.matmul %0, %1, %cst {dimension_numbers = #tpu.dot_dimension_numbers<[1], [0], [0], [1], [0, 0, 1, 1], [], []>} : vector<64x672xf32>, vector<672x512xf32>, vector<64x512xf32> -> vector<64x512xf32>
    %c0_3 = arith.constant 0 : index
    %c0_4 = arith.constant 0 : index
    %3 = vector.load %arg4[%c0_3, %c0_4] : memref<1x512xf32, #tpu.memory_space<vmem>>, vector<1x512xf32>
    %4 = vector.broadcast %3 : vector<1x512xf32> to vector<64x512xf32>
    %5 = arith.addf %2, %4 : vector<64x512xf32>
    %c0_5 = arith.constant 0 : index
    %c0_6 = arith.constant 0 : index
    %6 = vector.load %arg10[%c0_5, %c0_6] : memref<64x512xf32, #tpu.memory_space<vmem>>, vector<64x512xf32>
    tpu.vector_store %arg10[%c0_5, %c0_6], %5 {strides = array<i32>} : memref<64x512xf32, #tpu.memory_space<vmem>>, vector<64x512xf32>,
    %cst_7 = arith.constant 0.000000e+00 : f32
    %7 = vector.broadcast %cst_7 : f32 to vector<8x128xf32>
    %c56 = arith.constant 56 : index
    %c0_8 = arith.constant 0 : index
    %8 = vector.load %arg0[%c56, %c0_8] : memref<64x672xf32, #tpu.memory_space<vmem>>, vector<8x672xf32>
    %c0_9 = arith.constant 0 : index
    %c0_10 = arith.constant 0 : index
    %9 = vector.load %arg2[%c0_9, %c0_10] : memref<672x512xf32, #tpu.memory_space<vmem>>, vector<672x512xf32>
    %cst_11 = arith.constant dense<0.000000e+00> : vector<8x512xf32>
    %10 = tpu.matmul %8, %9, %cst_11 {dimension_numbers = #tpu.dot_dimension_numbers<[1], [0], [0], [1], [0, 0, 1, 1], [], []>} : vector<8x672xf32>, vector<672x512xf32>, vector<8x512xf32> -> vector<8x512xf32>
    %c0_12 = arith.constant 0 : index
    %c0_13 = arith.constant 0 : index
    %11 = vector.load %arg5[%c0_12, %c0_13] : memref<1x512xf32, #tpu.memory_space<vmem>>, vector<1x512xf32>
    %12 = vector.broadcast %11 : vector<1x512xf32> to vector<8x512xf32>
    %13 = arith.addf %10, %12 : vector<8x512xf32>
    %14 = vector.extract_strided_slice %13 {offsets = [0, 0], sizes = [8, 128], strides = [1, 1]} : vector<8x512xf32> to vector<8x128xf32>
    %15 = arith.negf %14 : vector<8x128xf32>
    %16 = math.exp %15 : vector<8x128xf32>
    %cst_14 = arith.constant 1.000000e+00 : f32
    %17 = vector.broadcast %cst_14 : f32 to vector<8x128xf32>
    %18 = arith.addf %17, %16 : vector<8x128xf32>
    %19 = arith.divf %17, %18 : vector<8x128xf32>
    %20 = vector.extract_strided_slice %13 {offsets = [0, 128], sizes = [8, 128], strides = [1, 1]} : vector<8x512xf32> to vector<8x128xf32>
    %21 = arith.negf %20 : vector<8x128xf32>
    %22 = math.exp %21 : vector<8x128xf32>
    %cst_15 = arith.constant 1.000000e+00 : f32
    %23 = vector.broadcast %cst_15 : f32 to vector<8x128xf32>
    %24 = arith.addf %23, %22 : vector<8x128xf32>
    %25 = arith.divf %23, %24 : vector<8x128xf32>
    %26 = vector.extract_strided_slice %13 {offsets = [0, 256], sizes = [8, 128], strides = [1, 1]} : vector<8x512xf32> to vector<8x128xf32>
    %27 = math.tanh %26 : vector<8x128xf32>
    %28 = vector.extract_strided_slice %13 {offsets = [0, 384], sizes = [8, 128], strides = [1, 1]} : vector<8x512xf32> to vector<8x128xf32>
    %29 = arith.negf %28 : vector<8x128xf32>
    %30 = math.exp %29 : vector<8x128xf32>
    %cst_16 = arith.constant 1.000000e+00 : f32
    %31 = vector.broadcast %cst_16 : f32 to vector<8x128xf32>
    %32 = arith.addf %31, %30 : vector<8x128xf32>
    %33 = arith.divf %31, %32 : vector<8x128xf32>
    %34 = arith.mulf %25, %7 : vector<8x128xf32>
    %35 = arith.mulf %19, %27 : vector<8x128xf32>
    %36 = arith.addf %34, %35 : vector<8x128xf32>
    %37 = math.tanh %36 : vector<8x128xf32>
    %38 = arith.mulf %33, %37 : vector<8x128xf32>
    %c0_17 = arith.constant 0 : index
    %c0_18 = arith.constant 0 : index
    %39 = vector.load %arg3[%c0_17, %c0_18] : memref<128x512xf32, #tpu.memory_space<vmem>>, vector<128x512xf32>
    %c0_i32 = arith.constant 0 : i32
    %c8_i32 = arith.constant 8 : i32
    %40 = arith.muli %c0_i32, %c8_i32 : i32
    %41 = tpu.assume_multiple %40, 8 : i32
    %42 = arith.index_cast %41 : i32 to index
    %c0_19 = arith.constant 0 : index
    %43 = vector.load %arg10[%42, %c0_19] : memref<64x512xf32, #tpu.memory_space<vmem>>, vector<8x512xf32>
    %cst_20 = arith.constant dense<0.000000e+00> : vector<8x512xf32>
    %44 = tpu.matmul %7, %39, %cst_20 {dimension_numbers = #tpu.dot_dimension_numbers<[1], [0], [0], [1], [0, 0, 1, 1], [], []>} : vector<8x128xf32>, vector<128x512xf32>, vector<8x512xf32> -> vector<8x512xf32>
    %45 = arith.addf %43, %44 : vector<8x512xf32>
    %46 = vector.extract_strided_slice %45 {offsets = [0, 0], sizes = [8, 128], strides = [1, 1]} : vector<8x512xf32> to vector<8x128xf32>
    %47 = arith.negf %46 : vector<8x128xf32>
    %48 = math.exp %47 : vector<8x128xf32>
    %cst_21 = arith.constant 1.000000e+00 : f32
    %49 = vector.broadcast %cst_21 : f32 to vector<8x128xf32>
    %50 = arith.addf %49, %48 : vector<8x128xf32>
    %51 = arith.divf %49, %50 : vector<8x128xf32>
    %52 = vector.extract_strided_slice %45 {offsets = [0, 128], sizes = [8, 128], strides = [1, 1]} : vector<8x512xf32> to vector<8x128xf32>
    %53 = arith.negf %52 : vector<8x128xf32>
    %54 = math.exp %53 : vector<8x128xf32>
    %cst_22 = arith.constant 1.000000e+00 : f32
    %55 = vector.broadcast %cst_22 : f32 to vector<8x128xf32>
    %56 = arith.addf %55, %54 : vector<8x128xf32>
    %57 = arith.divf %55, %56 : vector<8x128xf32>
    %58 = vector.extract_strided_slice %45 {offsets = [0, 256], sizes = [8, 128], strides = [1, 1]} : vector<8x512xf32> to vector<8x128xf32>
    %59 = math.tanh %58 : vector<8x128xf32>
    %60 = vector.extract_strided_slice %45 {offsets = [0, 384], sizes = [8, 128], strides = [1, 1]} : vector<8x512xf32> to vector<8x128xf32>
    %61 = arith.negf %60 : vector<8x128xf32>
    %62 = math.exp %61 : vector<8x128xf32>
    %cst_23 = arith.constant 1.000000e+00 : f32
    %63 = vector.broadcast %cst_23 : f32 to vector<8x128xf32>
    %64 = arith.addf %63, %62 : vector<8x128xf32>
    %65 = arith.divf %63, %64 : vector<8x128xf32>
    %66 = arith.mulf %57, %7 : vector<8x128xf32>
    %67 = arith.mulf %51, %59 : vector<8x128xf32>
    %68 = arith.addf %66, %67 : vector<8x128xf32>
    %69 = math.tanh %68 : vector<8x128xf32>
    %70 = arith.mulf %65, %69 : vector<8x128xf32>
    %c1_i32 = arith.constant 1 : i32
    %c8_i32_24 = arith.constant 8 : i32
    %71 = arith.muli %c1_i32, %c8_i32_24 : i32
    %72 = tpu.assume_multiple %71, 8 : i32
    %73 = arith.index_cast %72 : i32 to index
    %c0_25 = arith.constant 0 : index
    %74 = vector.load %arg10[%73, %c0_25] : memref<64x512xf32, #tpu.memory_space<vmem>>, vector<8x512xf32>
    %cst_26 = arith.constant dense<0.000000e+00> : vector<8x512xf32>
    %75 = tpu.matmul %70, %39, %cst_26 {dimension_numbers = #tpu.dot_dimension_numbers<[1], [0], [0], [1], [0, 0, 1, 1], [], []>} : vector<8x128xf32>, vector<128x512xf32>, vector<8x512xf32> -> vector<8x512xf32>
    %76 = arith.addf %74, %75 : vector<8x512xf32>
    %77 = vector.extract_strided_slice %76 {offsets = [0, 0], sizes = [8, 128], strides = [1, 1]} : vector<8x512xf32> to vector<8x128xf32>
    %78 = arith.negf %77 : vector<8x128xf32>
    %79 = math.exp %78 : vector<8x128xf32>
    %cst_27 = arith.constant 1.000000e+00 : f32
    %80 = vector.broadcast %cst_27 : f32 to vector<8x128xf32>
    %81 = arith.addf %80, %79 : vector<8x128xf32>
    %82 = arith.divf %80, %81 : vector<8x128xf32>
    %83 = vector.extract_strided_slice %76 {offsets = [0, 128], sizes = [8, 128], strides = [1, 1]} : vector<8x512xf32> to vector<8x128xf32>
    %84 = arith.negf %83 : vector<8x128xf32>
    %85 = math.exp %84 : vector<8x128xf32>
    %cst_28 = arith.constant 1.000000e+00 : f32
    %86 = vector.broadcast %cst_28 : f32 to vector<8x128xf32>
    %87 = arith.addf %86, %85 : vector<8x128xf32>
    %88 = arith.divf %86, %87 : vector<8x128xf32>
    %89 = vector.extract_strided_slice %76 {offsets = [0, 256], sizes = [8, 128], strides = [1, 1]} : vector<8x512xf32> to vector<8x128xf32>
    %90 = math.tanh %89 : vector<8x128xf32>
    %91 = vector.extract_strided_slice %76 {offsets = [0, 384], sizes = [8, 128], strides = [1, 1]} : vector<8x512xf32> to vector<8x128xf32>
    %92 = arith.negf %91 : vector<8x128xf32>
    %93 = math.exp %92 : vector<8x128xf32>
    %cst_29 = arith.constant 1.000000e+00 : f32
    %94 = vector.broadcast %cst_29 : f32 to vector<8x128xf32>
    %95 = arith.addf %94, %93 : vector<8x128xf32>
    %96 = arith.divf %94, %95 : vector<8x128xf32>
    %97 = arith.mulf %88, %68 : vector<8x128xf32>
    %98 = arith.mulf %82, %90 : vector<8x128xf32>
    %99 = arith.addf %97, %98 : vector<8x128xf32>
    %100 = math.tanh %99 : vector<8x128xf32>
    %101 = arith.mulf %96, %100 : vector<8x128xf32>
    %c2_i32 = arith.constant 2 : i32
    %c8_i32_30 = arith.constant 8 : i32
    %102 = arith.muli %c2_i32, %c8_i32_30 : i32
    %103 = tpu.assume_multiple %102, 8 : i32
    %104 = arith.index_cast %103 : i32 to index
    %c0_31 = arith.constant 0 : index
    %105 = vector.load %arg10[%104, %c0_31] : memref<64x512xf32, #tpu.memory_space<vmem>>, vector<8x512xf32>
    %cst_32 = arith.constant dense<0.000000e+00> : vector<8x512xf32>
    %106 = tpu.matmul %101, %39, %cst_32 {dimension_numbers = #tpu.dot_dimension_numbers<[1], [0], [0], [1], [0, 0, 1, 1], [], []>} : vector<8x128xf32>, vector<128x512xf32>, vector<8x512xf32> -> vector<8x512xf32>
    %107 = arith.addf %105, %106 : vector<8x512xf32>
    %108 = vector.extract_strided_slice %107 {offsets = [0, 0], sizes = [8, 128], strides = [1, 1]} : vector<8x512xf32> to vector<8x128xf32>
    %109 = arith.negf %108 : vector<8x128xf32>
    %110 = math.exp %109 : vector<8x128xf32>
    %cst_33 = arith.constant 1.000000e+00 : f32
    %111 = vector.broadcast %cst_33 : f32 to vector<8x128xf32>
    %112 = arith.addf %111, %110 : vector<8x128xf32>
    %113 = arith.divf %111, %112 : vector<8x128xf32>
    %114 = vector.extract_strided_slice %107 {offsets = [0, 128], sizes = [8, 128], strides = [1, 1]} : vector<8x512xf32> to vector<8x128xf32>
    %115 = arith.negf %114 : vector<8x128xf32>
    %116 = math.exp %115 : vector<8x128xf32>
    %cst_34 = arith.constant 1.000000e+00 : f32
    %117 = vector.broadcast %cst_34 : f32 to vector<8x128xf32>
    %118 = arith.addf %117, %116 : vector<8x128xf32>
    %119 = arith.divf %117, %118 : vector<8x128xf32>
    %120 = vector.extract_strided_slice %107 {offsets = [0, 256], sizes = [8, 128], strides = [1, 1]} : vector<8x512xf32> to vector<8x128xf32>
    %121 = math.tanh %120 : vector<8x128xf32>
    %122 = vector.extract_strided_slice %107 {offsets = [0, 384], sizes = [8, 128], strides = [1, 1]} : vector<8x512xf32> to vector<8x128xf32>
    %123 = arith.negf %122 : vector<8x128xf32>
    %124 = math.exp %123 : vector<8x128xf32>
    %cst_35 = arith.constant 1.000000e+00 : f32
    %125 = vector.broadcast %cst_35 : f32 to vector<8x128xf32>
    %126 = arith.addf %125, %124 : vector<8x128xf32>
    %127 = arith.divf %125, %126 : vector<8x128xf32>
    %128 = arith.mulf %119, %99 : vector<8x128xf32>
    %129 = arith.mulf %113, %121 : vector<8x128xf32>
    %130 = arith.addf %128, %129 : vector<8x128xf32>
    %131 = math.tanh %130 : vector<8x128xf32>
    %132 = arith.mulf %127, %131 : vector<8x128xf32>
    %c3_i32 = arith.constant 3 : i32
    %c8_i32_36 = arith.constant 8 : i32
    %133 = arith.muli %c3_i32, %c8_i32_36 : i32
    %134 = tpu.assume_multiple %133, 8 : i32
    %135 = arith.index_cast %134 : i32 to index
    %c0_37 = arith.constant 0 : index
    %136 = vector.load %arg10[%135, %c0_37] : memref<64x512xf32, #tpu.memory_space<vmem>>, vector<8x512xf32>
    %cst_38 = arith.constant dense<0.000000e+00> : vector<8x512xf32>
    %137 = tpu.matmul %132, %39, %cst_38 {dimension_numbers = #tpu.dot_dimension_numbers<[1], [0], [0], [1], [0, 0, 1, 1], [], []>} : vector<8x128xf32>, vector<128x512xf32>, vector<8x512xf32> -> vector<8x512xf32>
    %138 = arith.addf %136, %137 : vector<8x512xf32>
    %139 = vector.extract_strided_slice %138 {offsets = [0, 0], sizes = [8, 128], strides = [1, 1]} : vector<8x512xf32> to vector<8x128xf32>
    %140 = arith.negf %139 : vector<8x128xf32>
    %141 = math.exp %140 : vector<8x128xf32>
    %cst_39 = arith.constant 1.000000e+00 : f32
    %142 = vector.broadcast %cst_39 : f32 to vector<8x128xf32>
    %143 = arith.addf %142, %141 : vector<8x128xf32>
    %144 = arith.divf %142, %143 : vector<8x128xf32>
    %145 = vector.extract_strided_slice %138 {offsets = [0, 128], sizes = [8, 128], strides = [1, 1]} : vector<8x512xf32> to vector<8x128xf32>
    %146 = arith.negf %145 : vector<8x128xf32>
    %147 = math.exp %146 : vector<8x128xf32>
    %cst_40 = arith.constant 1.000000e+00 : f32
    %148 = vector.broadcast %cst_40 : f32 to vector<8x128xf32>
    %149 = arith.addf %148, %147 : vector<8x128xf32>
    %150 = arith.divf %148, %149 : vector<8x128xf32>
    %151 = vector.extract_strided_slice %138 {offsets = [0, 256], sizes = [8, 128], strides = [1, 1]} : vector<8x512xf32> to vector<8x128xf32>
    %152 = math.tanh %151 : vector<8x128xf32>
    %153 = vector.extract_strided_slice %138 {offsets = [0, 384], sizes = [8, 128], strides = [1, 1]} : vector<8x512xf32> to vector<8x128xf32>
    %154 = arith.negf %153 : vector<8x128xf32>
    %155 = math.exp %154 : vector<8x128xf32>
    %cst_41 = arith.constant 1.000000e+00 : f32
    %156 = vector.broadcast %cst_41 : f32 to vector<8x128xf32>
    %157 = arith.addf %156, %155 : vector<8x128xf32>
    %158 = arith.divf %156, %157 : vector<8x128xf32>
    %159 = arith.mulf %150, %130 : vector<8x128xf32>
    %160 = arith.mulf %144, %152 : vector<8x128xf32>
    %161 = arith.addf %159, %160 : vector<8x128xf32>
    %162 = math.tanh %161 : vector<8x128xf32>
    %163 = arith.mulf %158, %162 : vector<8x128xf32>
    %c4_i32 = arith.constant 4 : i32
    %c8_i32_42 = arith.constant 8 : i32
    %164 = arith.muli %c4_i32, %c8_i32_42 : i32
    %165 = tpu.assume_multiple %164, 8 : i32
    %166 = arith.index_cast %165 : i32 to index
    %c0_43 = arith.constant 0 : index
    %167 = vector.load %arg10[%166, %c0_43] : memref<64x512xf32, #tpu.memory_space<vmem>>, vector<8x512xf32>
    %cst_44 = arith.constant dense<0.000000e+00> : vector<8x512xf32>
    %168 = tpu.matmul %163, %39, %cst_44 {dimension_numbers = #tpu.dot_dimension_numbers<[1], [0], [0], [1], [0, 0, 1, 1], [], []>} : vector<8x128xf32>, vector<128x512xf32>, vector<8x512xf32> -> vector<8x512xf32>
    %169 = arith.addf %167, %168 : vector<8x512xf32>
    %170 = vector.extract_strided_slice %169 {offsets = [0, 0], sizes = [8, 128], strides = [1, 1]} : vector<8x512xf32> to vector<8x128xf32>
    %171 = arith.negf %170 : vector<8x128xf32>
    %172 = math.exp %171 : vector<8x128xf32>
    %cst_45 = arith.constant 1.000000e+00 : f32
    %173 = vector.broadcast %cst_45 : f32 to vector<8x128xf32>
    %174 = arith.addf %173, %172 : vector<8x128xf32>
    %175 = arith.divf %173, %174 : vector<8x128xf32>
    %176 = vector.extract_strided_slice %169 {offsets = [0, 128], sizes = [8, 128], strides = [1, 1]} : vector<8x512xf32> to vector<8x128xf32>
    %177 = arith.negf %176 : vector<8x128xf32>
    %178 = math.exp %177 : vector<8x128xf32>
    %cst_46 = arith.constant 1.000000e+00 : f32
    %179 = vector.broadcast %cst_46 : f32 to vector<8x128xf32>
    %180 = arith.addf %179, %178 : vector<8x128xf32>
    %181 = arith.divf %179, %180 : vector<8x128xf32>
    %182 = vector.extract_strided_slice %169 {offsets = [0, 256], sizes = [8, 128], strides = [1, 1]} : vector<8x512xf32> to vector<8x128xf32>
    %183 = math.tanh %182 : vector<8x128xf32>
    %184 = vector.extract_strided_slice %169 {offsets = [0, 384], sizes = [8, 128], strides = [1, 1]} : vector<8x512xf32> to vector<8x128xf32>
    %185 = arith.negf %184 : vector<8x128xf32>
    %186 = math.exp %185 : vector<8x128xf32>
    %cst_47 = arith.constant 1.000000e+00 : f32
    %187 = vector.broadcast %cst_47 : f32 to vector<8x128xf32>
    %188 = arith.addf %187, %186 : vector<8x128xf32>
    %189 = arith.divf %187, %188 : vector<8x128xf32>
    %190 = arith.mulf %181, %161 : vector<8x128xf32>
    %191 = arith.mulf %175, %183 : vector<8x128xf32>
    %192 = arith.addf %190, %191 : vector<8x128xf32>
    %193 = math.tanh %192 : vector<8x128xf32>
    %194 = arith.mulf %189, %193 : vector<8x128xf32>
    %c5_i32 = arith.constant 5 : i32
    %c8_i32_48 = arith.constant 8 : i32
    %195 = arith.muli %c5_i32, %c8_i32_48 : i32
    %196 = tpu.assume_multiple %195, 8 : i32
    %197 = arith.index_cast %196 : i32 to index
    %c0_49 = arith.constant 0 : index
    %198 = vector.load %arg10[%197, %c0_49] : memref<64x512xf32, #tpu.memory_space<vmem>>, vector<8x512xf32>
    %cst_50 = arith.constant dense<0.000000e+00> : vector<8x512xf32>
    %199 = tpu.matmul %194, %39, %cst_50 {dimension_numbers = #tpu.dot_dimension_numbers<[1], [0], [0], [1], [0, 0, 1, 1], [], []>} : vector<8x128xf32>, vector<128x512xf32>, vector<8x512xf32> -> vector<8x512xf32>
    %200 = arith.addf %198, %199 : vector<8x512xf32>
    %201 = vector.extract_strided_slice %200 {offsets = [0, 0], sizes = [8, 128], strides = [1, 1]} : vector<8x512xf32> to vector<8x128xf32>
    %202 = arith.negf %201 : vector<8x128xf32>
    %203 = math.exp %202 : vector<8x128xf32>
    %cst_51 = arith.constant 1.000000e+00 : f32
    %204 = vector.broadcast %cst_51 : f32 to vector<8x128xf32>
    %205 = arith.addf %204, %203 : vector<8x128xf32>
    %206 = arith.divf %204, %205 : vector<8x128xf32>
    %207 = vector.extract_strided_slice %200 {offsets = [0, 128], sizes = [8, 128], strides = [1, 1]} : vector<8x512xf32> to vector<8x128xf32>
    %208 = arith.negf %207 : vector<8x128xf32>
    %209 = math.exp %208 : vector<8x128xf32>
    %cst_52 = arith.constant 1.000000e+00 : f32
    %210 = vector.broadcast %cst_52 : f32 to vector<8x128xf32>
    %211 = arith.addf %210, %209 : vector<8x128xf32>
    %212 = arith.divf %210, %211 : vector<8x128xf32>
    %213 = vector.extract_strided_slice %200 {offsets = [0, 256], sizes = [8, 128], strides = [1, 1]} : vector<8x512xf32> to vector<8x128xf32>
    %214 = math.tanh %213 : vector<8x128xf32>
    %215 = vector.extract_strided_slice %200 {offsets = [0, 384], sizes = [8, 128], strides = [1, 1]} : vector<8x512xf32> to vector<8x128xf32>
    %216 = arith.negf %215 : vector<8x128xf32>
    %217 = math.exp %216 : vector<8x128xf32>
    %cst_53 = arith.constant 1.000000e+00 : f32
    %218 = vector.broadcast %cst_53 : f32 to vector<8x128xf32>
    %219 = arith.addf %218, %217 : vector<8x128xf32>
    %220 = arith.divf %218, %219 : vector<8x128xf32>
    %221 = arith.mulf %212, %192 : vector<8x128xf32>
    %222 = arith.mulf %206, %214 : vector<8x128xf32>
    %223 = arith.addf %221, %222 : vector<8x128xf32>
    %224 = math.tanh %223 : vector<8x128xf32>
    %225 = arith.mulf %220, %224 : vector<8x128xf32>
    %c6_i32 = arith.constant 6 : i32
    %c8_i32_54 = arith.constant 8 : i32
    %226 = arith.muli %c6_i32, %c8_i32_54 : i32
    %227 = tpu.assume_multiple %226, 8 : i32
    %228 = arith.index_cast %227 : i32 to index
    %c0_55 = arith.constant 0 : index
    %229 = vector.load %arg10[%228, %c0_55] : memref<64x512xf32, #tpu.memory_space<vmem>>, vector<8x512xf32>
    %cst_56 = arith.constant dense<0.000000e+00> : vector<8x512xf32>
    %230 = tpu.matmul %225, %39, %cst_56 {dimension_numbers = #tpu.dot_dimension_numbers<[1], [0], [0], [1], [0, 0, 1, 1], [], []>} : vector<8x128xf32>, vector<128x512xf32>, vector<8x512xf32> -> vector<8x512xf32>
    %231 = arith.addf %229, %230 : vector<8x512xf32>
    %232 = vector.extract_strided_slice %231 {offsets = [0, 0], sizes = [8, 128], strides = [1, 1]} : vector<8x512xf32> to vector<8x128xf32>
    %233 = arith.negf %232 : vector<8x128xf32>
    %234 = math.exp %233 : vector<8x128xf32>
    %cst_57 = arith.constant 1.000000e+00 : f32
    %235 = vector.broadcast %cst_57 : f32 to vector<8x128xf32>
    %236 = arith.addf %235, %234 : vector<8x128xf32>
    %237 = arith.divf %235, %236 : vector<8x128xf32>
    %238 = vector.extract_strided_slice %231 {offsets = [0, 128], sizes = [8, 128], strides = [1, 1]} : vector<8x512xf32> to vector<8x128xf32>
    %239 = arith.negf %238 : vector<8x128xf32>
    %240 = math.exp %239 : vector<8x128xf32>
    %cst_58 = arith.constant 1.000000e+00 : f32
    %241 = vector.broadcast %cst_58 : f32 to vector<8x128xf32>
    %242 = arith.addf %241, %240 : vector<8x128xf32>
    %243 = arith.divf %241, %242 : vector<8x128xf32>
    %244 = vector.extract_strided_slice %231 {offsets = [0, 256], sizes = [8, 128], strides = [1, 1]} : vector<8x512xf32> to vector<8x128xf32>
    %245 = math.tanh %244 : vector<8x128xf32>
    %246 = vector.extract_strided_slice %231 {offsets = [0, 384], sizes = [8, 128], strides = [1, 1]} : vector<8x512xf32> to vector<8x128xf32>
    %247 = arith.negf %246 : vector<8x128xf32>
    %248 = math.exp %247 : vector<8x128xf32>
    %cst_59 = arith.constant 1.000000e+00 : f32
    %249 = vector.broadcast %cst_59 : f32 to vector<8x128xf32>
    %250 = arith.addf %249, %248 : vector<8x128xf32>
    %251 = arith.divf %249, %250 : vector<8x128xf32>
    %252 = arith.mulf %243, %223 : vector<8x128xf32>
    %253 = arith.mulf %237, %245 : vector<8x128xf32>
    %254 = arith.addf %252, %253 : vector<8x128xf32>
    %255 = math.tanh %254 : vector<8x128xf32>
    %256 = arith.mulf %251, %255 : vector<8x128xf32>
    %c7_i32 = arith.constant 7 : i32
    %c8_i32_60 = arith.constant 8 : i32
    %257 = arith.muli %c7_i32, %c8_i32_60 : i32
    %258 = tpu.assume_multiple %257, 8 : i32
    %259 = arith.index_cast %258 : i32 to index
    %c0_61 = arith.constant 0 : index
    %260 = vector.load %arg10[%259, %c0_61] : memref<64x512xf32, #tpu.memory_space<vmem>>, vector<8x512xf32>
    %cst_62 = arith.constant dense<0.000000e+00> : vector<8x512xf32>
    %261 = tpu.matmul %256, %39, %cst_62 {dimension_numbers = #tpu.dot_dimension_numbers<[1], [0], [0], [1], [0, 0, 1, 1], [], []>} : vector<8x128xf32>, vector<128x512xf32>, vector<8x512xf32> -> vector<8x512xf32>
    %262 = arith.addf %260, %261 : vector<8x512xf32>
    %263 = vector.extract_strided_slice %262 {offsets = [0, 0], sizes = [8, 128], strides = [1, 1]} : vector<8x512xf32> to vector<8x128xf32>
    %264 = arith.negf %263 : vector<8x128xf32>
    %265 = math.exp %264 : vector<8x128xf32>
    %cst_63 = arith.constant 1.000000e+00 : f32
    %266 = vector.broadcast %cst_63 : f32 to vector<8x128xf32>
    %267 = arith.addf %266, %265 : vector<8x128xf32>
    %268 = arith.divf %266, %267 : vector<8x128xf32>
    %269 = vector.extract_strided_slice %262 {offsets = [0, 128], sizes = [8, 128], strides = [1, 1]} : vector<8x512xf32> to vector<8x128xf32>
    %270 = arith.negf %269 : vector<8x128xf32>
    %271 = math.exp %270 : vector<8x128xf32>
    %cst_64 = arith.constant 1.000000e+00 : f32
    %272 = vector.broadcast %cst_64 : f32 to vector<8x128xf32>
    %273 = arith.addf %272, %271 : vector<8x128xf32>
    %274 = arith.divf %272, %273 : vector<8x128xf32>
    %275 = vector.extract_strided_slice %262 {offsets = [0, 256], sizes = [8, 128], strides = [1, 1]} : vector<8x512xf32> to vector<8x128xf32>
    %276 = math.tanh %275 : vector<8x128xf32>
    %277 = vector.extract_strided_slice %262 {offsets = [0, 384], sizes = [8, 128], strides = [1, 1]} : vector<8x512xf32> to vector<8x128xf32>
    %278 = arith.negf %277 : vector<8x128xf32>
    %279 = math.exp %278 : vector<8x128xf32>
    %cst_65 = arith.constant 1.000000e+00 : f32
    %280 = vector.broadcast %cst_65 : f32 to vector<8x128xf32>
    %281 = arith.addf %280, %279 : vector<8x128xf32>
    %282 = arith.divf %280, %281 : vector<8x128xf32>
    %283 = arith.mulf %274, %254 : vector<8x128xf32>
    %284 = arith.mulf %268, %276 : vector<8x128xf32>
    %285 = arith.addf %283, %284 : vector<8x128xf32>
    %286 = math.tanh %285 : vector<8x128xf32>
    %287 = arith.mulf %282, %286 : vector<8x128xf32>
    %c8_i32_66 = arith.constant 8 : i32
    %c0_67 = arith.constant 0 : index
    %c0_68 = arith.constant 0 : index
    %288 = vector.load %arg6[%c0_67, %c0_68] : memref<128x1xf32, #tpu.memory_space<vmem>>, vector<128x1xf32>
    %cst_69 = arith.constant dense<0.000000e+00> : vector<8x1xf32>
    %289 = tpu.matmul %287, %288, %cst_69 {dimension_numbers = #tpu.dot_dimension_numbers<[1], [0], [0], [1], [0, 0, 1, 1], [], []>} : vector<8x128xf32>, vector<128x1xf32>, vector<8x1xf32> -> vector<8x1xf32>
    %c0_70 = arith.constant 0 : index
    %c0_71 = arith.constant 0 : index
    %290 = vector.load %arg7[%c0_70, %c0_71] : memref<128x1xf32, #tpu.memory_space<vmem>>, vector<128x1xf32>
    %cst_72 = arith.constant dense<0.000000e+00> : vector<8x1xf32>
    %291 = tpu.matmul %38, %290, %cst_72 {dimension_numbers = #tpu.dot_dimension_numbers<[1], [0], [0], [1], [0, 0, 1, 1], [], []>} : vector<8x128xf32>, vector<128x1xf32>, vector<8x1xf32> -> vector<8x1xf32>
    %292 = arith.addf %289, %291 : vector<8x1xf32>
    %c0_73 = arith.constant 0 : index
    %c0_74 = arith.constant 0 : index
    %293 = vector.load %arg8[%c0_73, %c0_74] : memref<1x1xf32, #tpu.memory_space<vmem>>, vector<1x1xf32>
    %294 = vector.broadcast %293 : vector<1x1xf32> to vector<8x1xf32>
    %295 = arith.addf %292, %294 : vector<8x1xf32>
    %c0_75 = arith.constant 0 : index
    %c0_76 = arith.constant 0 : index
    %296 = vector.load %arg9[%c0_75, %c0_76] : memref<8x1xf32, #tpu.memory_space<vmem>>, vector<8x1xf32>
    tpu.vector_store %arg9[%c0_75, %c0_76], %295 {strides = array<i32>} : memref<8x1xf32, #tpu.memory_space<vmem>>, vector<8x1xf32>,
    return
  }
}

</mosaic_0001>

<bundles_post_ra>
// kernel: bilstm_forward.1
= control target key start
LH: loop header
LB: loop body
LE: loop exit
PB: predicated region body
PF: predicated region fallthrough
CT: control target
= control target key end

     0   :  { %s6373_s0 = inlined_call_operand.vmem [shape: f32[64,672], index: 0, kind: input, shape index: {}]   ;;  %s6374_s1 = inlined_call_operand.hbm [shape: f32[672,512], index: 1, kind: input, shape index: {}]   ;;  %s6375_s2 = inlined_call_operand.hbm [shape: f32[672,512], index: 2, kind: input, shape index: {}]   ;;  %s6376_s3 = inlined_call_operand.hbm [shape: f32[128,512], index: 3, kind: input, shape index: {}]   ;;  %s6377_s4 = inlined_call_operand.hbm [shape: f32[1,512], index: 4, kind: input, shape index: {}]   ;;  %s6378_s5 = inlined_call_operand.hbm [shape: f32[1,512], index: 5, kind: input, shape index: {}]   ;;  %s6379_s6 = inlined_call_operand.vmem [shape: f32[128,1], index: 6, kind: input, shape index: {}]   ;;  %s6380_s7 = inlined_call_operand.vmem [shape: f32[128,1], index: 7, kind: input, shape index: {}]   ;;  %s6381_s8 = inlined_call_operand.<no memory space> [shape: f32[1,1], index: 8, kind: input, shape index: {}]   ;;  %s6382_s9 = inlined_call_operand.vmem [shape: f32[8,1], index: 9, kind: output, shape index: {}]  }
   0x1   :  { %v14_v0 = vstv %s6381_s8 }
   0x2   :  { %15 = vst [vmem:[#allocation3] sm:$0x1] %v14_v0 }
   0x3   :  { %16 = vsyncpa [#allocation5], 0 }
   0x4   :  { %17 = vsyncpa [#allocation7], 0 }
   0x5   :  { %18 = vsyncpa [#allocation10], 0  ;;  %s5525_s11 = smov [#allocation6]   ;;  %s5526_s13 = smov [#allocation9]  }
   0x6   :  { %s38_s12 = sshll.u32 %s5525_s11, 4  ;;  %s63_s14 = sshll.u32 %s5526_s13, 4  ;;  %s39_s12 = int_to_ptr.vmem [resolvable:$true] %s38_s12  ;;  %s64_s14 = int_to_ptr.vmem [resolvable:$true] %s63_s14 }
   0x7   :  { %s5409_s17 = scalar_lea.hbm %s6375_s2, 43008 }
   0x8   :  { %p5410_p0 = scmp.ne.s32.totalorder %s6375_s2, %s5409_s17  ;;  %p5413_p1 = scmp.lt.u32.totalorder %s5409_s17, %s6375_s2 }
   0xa   :  { %p5415_p2 = pnand %p5413_p1, %p5410_p0 }
   0xc   :  { %5418 = shalt.err (!%p5415_p2)
}
   0xd   :  { %s5419_s21 = scalar_lea.vmem %s39_s12, 43008  ;;  %p5424_p4 = scmp.lt.s32.totalorder %s39_s12, %s39_s12 }
   0xe   :  { %p5420_p3 = scmp.ne.s32.totalorder %s39_s12, %s5419_s21  ;;  %p5425_p5 = scmp.lt.s32.totalorder %s5419_s21, %s5419_s21 }
  0x10   :  { %p5426_p6 = por %p5425_p5, %p5424_p4 }
  0x12   :  { %p5427_p7 = pnand %p5426_p6, %p5420_p3 }
  0x14   :  { %5430 = shalt.err (!%p5427_p7)
}
  0x15   :  { %s5527_s22 = smov 512   ;;  %s5528_s23 = smov 32  }
  0x16   :  { %44 = dma.hbm_to_vmem [thread:$0]  %s6375_s2, 43008, %s39_s12, [#allocation7], %s5527_s22, %s5527_s22, %s5528_s23  }
  0x17   :  { %s5431_s28 = scalar_lea.hbm %s6377_s4, 64 }
  0x18   :  { %p5432_p8 = scmp.ne.s32.totalorder %s6377_s4, %s5431_s28  ;;  %p5435_p9 = scmp.lt.u32.totalorder %s5431_s28, %s6377_s4 }
  0x1a   :  { %p5437_p10 = pnand %p5435_p9, %p5432_p8 }
  0x1c   :  { %5440 = shalt.err (!%p5437_p10)
}
  0x1d   :  { %s5441_s13 = scalar_lea.vmem %s64_s14, 64  ;;  %p5446_p12 = scmp.lt.s32.totalorder %s64_s14, %s64_s14 }
  0x1e   :  { %p5442_p11 = scmp.ne.s32.totalorder %s64_s14, %s5441_s13  ;;  %p5447_p13 = scmp.lt.s32.totalorder %s5441_s13, %s5441_s13 }
  0x20   :  { %p5448_p0 = por %p5447_p13, %p5446_p12 }
  0x22   :  { %p5449_p1 = pnand %p5448_p0, %p5442_p11 }
  0x24   :  { %5452 = shalt.err (!%p5449_p1)
}
  0x25   :  { %66 = dma.hbm_to_vmem [thread:$0]  %s6377_s4, 64, %s64_s14, [#allocation10]  }
  0x26   :  { %s5529_s15 = smov [#allocation4]   ;;  %s5530_s17 = smov [#allocation8]  }
  0x27   :  { %s26_s16 = sshll.u32 %s5529_s15, 4  ;;  %s50_s18 = sshll.u32 %s5530_s17, 4  ;;  %s27_s16 = int_to_ptr.vmem [resolvable:$true] %s26_s16  ;;  %s5615_s18 = int_to_ptr.vmem [resolvable:$true] %s50_s18 }
  0x28   :  { %s5453_s8 = scalar_lea.hbm %s6374_s1, 43008 }
  0x29   :  { %p5454_p2 = scmp.ne.s32.totalorder %s6374_s1, %s5453_s8  ;;  %p5457_p3 = scmp.lt.u32.totalorder %s5453_s8, %s6374_s1 }
  0x2b   :  { %p5459_p4 = pnand %p5457_p3, %p5454_p2 }
  0x2d   :  { %5462 = shalt.err (!%p5459_p4)
}
  0x2e   :  { %s5463_s4 = scalar_lea.vmem %s27_s16, 43008  ;;  %p5468_p6 = scmp.lt.s32.totalorder %s27_s16, %s27_s16 }
  0x2f   :  { %p5464_p5 = scmp.ne.s32.totalorder %s27_s16, %s5463_s4  ;;  %p5469_p7 = scmp.lt.s32.totalorder %s5463_s4, %s5463_s4 }
  0x31   :  { %p5470_p8 = por %p5469_p7, %p5468_p6 }
  0x33   :  { %p5471_p9 = pnand %p5470_p8, %p5464_p5 }
  0x35   :  { %5474 = shalt.err (!%p5471_p9)
}
  0x36   :  { %32 = dma.hbm_to_vmem [thread:$0]  %s6374_s1, 43008, %s27_s16, [#allocation5], %s5527_s22, %s5527_s22, %s5528_s23  }
  0x37   :  { %s5475_s30 = scalar_lea.hbm %s6376_s3, 8192 }
  0x38   :  { %p5476_p10 = scmp.ne.s32.totalorder %s6376_s3, %s5475_s30  ;;  %p5479_p11 = scmp.lt.u32.totalorder %s5475_s30, %s6376_s3 }
  0x3a   :  { %p5481_p12 = pnand %p5479_p11, %p5476_p10 }
  0x3c   :  { %5484 = shalt.err (!%p5481_p12)
}
  0x3d   :  { %s5485_s12 = scalar_lea.vmem %s5615_s18, 8192  ;;  %p5490_p0 = scmp.lt.s32.totalorder %s5615_s18, %s5615_s18 }
  0x3e   :  { %p5486_p13 = scmp.ne.s32.totalorder %s5615_s18, %s5485_s12  ;;  %p5491_p1 = scmp.lt.s32.totalorder %s5485_s12, %s5485_s12 }
  0x40   :  { %p5492_p2 = por %p5491_p1, %p5490_p0 }
  0x42   :  { %p5493_p3 = pnand %p5492_p2, %p5486_p13 }
  0x44   :  { %5496 = shalt.err (!%p5493_p3)
}
  0x45   :  { %56 = dma.hbm_to_vmem [thread:$0]  %s6376_s3, 8192, %s5615_s18, [#allocation7], %s5527_s22, %s5527_s22, %s5528_s23  }
  0x46   :  { %s5531_s16 = smov [#allocation11]   ;;  %s5497_s8 = scalar_lea.hbm %s6378_s5, 64 }
  0x47   :  { %s73_s17 = sshll.u32 %s5531_s16, 4  ;;  %p5498_p4 = scmp.ne.s32.totalorder %s6378_s5, %s5497_s8  ;;  %s74_s17 = int_to_ptr.vmem [resolvable:$true] %s73_s17 }
  0x48   :  { %p5501_p5 = scmp.lt.u32.totalorder %s5497_s8, %s6378_s5 }
  0x4a   :  { %p5503_p6 = pnand %p5501_p5, %p5498_p4 }
  0x4c   :  { %5506 = shalt.err (!%p5503_p6)
}
  0x4d   :  { %s5507_s4 = scalar_lea.vmem %s74_s17, 64  ;;  %p5512_p8 = scmp.lt.s32.totalorder %s74_s17, %s74_s17 }
  0x4e   :  { %p5508_p7 = scmp.ne.s32.totalorder %s74_s17, %s5507_s4  ;;  %p5513_p9 = scmp.lt.s32.totalorder %s5507_s4, %s5507_s4 }
  0x50   :  { %p5514_p10 = por %p5513_p9, %p5512_p8 }
  0x52   :  { %p5515_p11 = pnand %p5514_p10, %p5508_p7 }
  0x54   :  { %5518 = shalt.err (!%p5515_p11)
}
  0x55   :  { %76 = dma.hbm_to_vmem [thread:$0]  %s6378_s5, 64, %s74_s17, [#allocation10]  }
  0x56   :  { %5519 = dma.done.wait [#allocation5], 43008  }
  0x57   :  { %5520 = vsyncadd [#allocation5], 4294924288 }
  0x58   :  { %5521 = dma.done.wait [#allocation7], 51200  }
  0x59   :  { %5522 = vsyncadd [#allocation7], 4294916096 }
  0x5a   :  { %5523 = dma.done.wait [#allocation10], 128  }
  0x5b   :  { %5524 = vsyncadd [#allocation10], 4294967168  ;;  %v147_v1 = vld [vmem:[#allocation4 + $0x8] sm:$0xff]  ;;  %v149_v3 = vld [vmem:[#allocation4 + $0x18] sm:$0xff]  ;;  %vm504_vm0 = vcmask 261120   ;;  %vm5534_vm1 = vmmov 0  }
  0x5c   :  { %v151_v2 = vld [vmem:[#allocation4 + $0x28] sm:$0xff]  ;;  %v153_v5 = vld [vmem:[#allocation4 + $0x38] sm:$0xff]  ;;  %v146_v6 = vld [vmem:[#allocation4] sm:$0xff]  ;;  %vm3716_vm2 = vcmask 7168  }
  0x5d   :  { %v3882_v4 = vpack.c.bf16 %v151_v2, %v147_v1  ;;  %v150_v7 = vld [vmem:[#allocation4 + $0x20] sm:$0xff]  ;;  %v4050_v8 = vpack.c.bf16 %v153_v5, %v149_v3  ;;  %v148_v10 = vld [vmem:[#allocation4 + $0x10] sm:$0xff]  ;;  %v155_v12 = vld [vmem:[#allocation4 + $0x48] sm:$0xff] }
  0x5e   :  { %v3884_v9 = vpack.c.bf16 %v150_v7, %v146_v6  ;;  %v152_v11 = vld [vmem:[#allocation4 + $0x30] sm:$0xff]  ;;  %v159_v14 = vld [vmem:[#allocation4 + $0x68] sm:$0xff]  ;;  %v157_v15 = vld [vmem:[#allocation4 + $0x58] sm:$0xff] }
  0x5f   :  { %3883 = vmatprep.subr.bf16.mxu0 %v3882_v4  ;;  %v4052_v13 = vpack.c.bf16 %v152_v11, %v148_v10  ;;  %v161_v16 = vld [vmem:[#allocation4 + $0x78] sm:$0xff]  ;;  %4051 = vmatprep.subr.bf16.mxu1 %v4050_v8  ;;  %v3886_v17 = vpack.c.bf16 %v159_v14, %v155_v12  ;;  %v154_v19 = vld [vmem:[#allocation4 + $0x40] sm:$0xff]  ;;  %v156_v21 = vld [vmem:[#allocation4 + $0x50] sm:$0xff] }
  0x60   :  { %3885 = vmatpush1.bf16.msra.mxu0 %v3884_v9  ;;  %v4054_v18 = vpack.c.bf16 %v161_v16, %v157_v15  ;;  %v158_v20 = vld [vmem:[#allocation4 + $0x60] sm:$0xff]  ;;  %v160_v23 = vld [vmem:[#allocation4 + $0x70] sm:$0xff]  ;;  %v163_v24 = vld [vmem:[#allocation4 + $0x88] sm:$0xff] }
  0x61   :  { %4053 = vmatpush1.bf16.msra.mxu1 %v4052_v13  ;;  %v3888_v22 = vpack.c.bf16 %v158_v20, %v154_v19  ;;  %v167_v25 = vld [vmem:[#allocation4 + $0xa8] sm:$0xff]  ;;  %3887 = vmatprep.subr.bf16.mxu0 %v3886_v17  ;;  %v4056_v26 = vpack.c.bf16 %v160_v23, %v156_v21  ;;  %v165_v28 = vld [vmem:[#allocation4 + $0x98] sm:$0xff]  ;;  %v162_v30 = vld [vmem:[#allocation4 + $0x80] sm:$0xff] }
  0x62   :  { %4055 = vmatprep.subr.bf16.mxu1 %v4054_v18  ;;  %v3890_v27 = vpack.c.bf16 %v167_v25, %v163_v24  ;;  %v169_v29 = vld [vmem:[#allocation4 + $0xb8] sm:$0xff]  ;;  %v166_v32 = vld [vmem:[#allocation4 + $0xa0] sm:$0xff]  ;;  %v164_v33 = vld [vmem:[#allocation4 + $0x90] sm:$0xff] }
  0x63   :  { %v4058_v31 = vpack.c.bf16 %v169_v29, %v165_v28  ;;  %v168_v34 = vld [vmem:[#allocation4 + $0xb0] sm:$0xff]  ;;  %v3892_v35 = vpack.c.bf16 %v166_v32, %v162_v30  ;;  %v171_v36 = vld [vmem:[#allocation4 + $0xc8] sm:$0xff]  ;;  %v173_v38 = vld [vmem:[#allocation4 + $0xd8] sm:$0xff] }
  0x64   :  { %3889 = vmatpush1.bf16.msra.mxu0 %v3888_v22  ;;  %v175_v37 = vld [vmem:[#allocation4 + $0xe8] sm:$0xff]  ;;  %v4060_v39 = vpack.c.bf16 %v168_v34, %v164_v33  ;;  %v177_v41 = vld [vmem:[#allocation4 + $0xf8] sm:$0xff]  ;;  %v170_v42 = vld [vmem:[#allocation4 + $0xc0] sm:$0xff] }
  0x65   :  { %4057 = vmatpush1.bf16.msra.mxu1 %v4056_v26  ;;  %3891 = vmatprep.subr.bf16.mxu0 %v3890_v27  ;;  %v3894_v40 = vpack.c.bf16 %v175_v37, %v171_v36  ;;  %v174_v43 = vld [vmem:[#allocation4 + $0xe0] sm:$0xff]  ;;  %v4062_v44 = vpack.c.bf16 %v177_v41, %v173_v38  ;;  %v172_v45 = vld [vmem:[#allocation4 + $0xd0] sm:$0xff]  ;;  %v179_v47 = vld [vmem:[#allocation4 + $0x108] sm:$0xff] }
  0x66   :  { %4059 = vmatprep.subr.bf16.mxu1 %v4058_v31  ;;  %v176_v46 = vld [vmem:[#allocation4 + $0xf0] sm:$0xff]  ;;  %v183_v48 = vld [vmem:[#allocation4 + $0x128] sm:$0xff]  ;;  %v181_v49 = vld [vmem:[#allocation4 + $0x118] sm:$0xff]  ;;  %v3896_v51 = vpack.c.bf16 %v174_v43, %v170_v42 }
  0x67   :  { %v185_v50 = vld [vmem:[#allocation4 + $0x138] sm:$0xff]  ;;  %v4064_v52 = vpack.c.bf16 %v176_v46, %v172_v45  ;;  %v3898_v53 = vpack.c.bf16 %v183_v48, %v179_v47  ;;  %v178_v54 = vld [vmem:[#allocation4 + $0x100] sm:$0xff]  ;;  %v180_v56 = vld [vmem:[#allocation4 + $0x110] sm:$0xff] }
  0x68   :  { %3893 = vmatpush1.bf16.msra.mxu0 %v3892_v35  ;;  %v182_v55 = vld [vmem:[#allocation4 + $0x120] sm:$0xff]  ;;  %v4066_v57 = vpack.c.bf16 %v185_v50, %v181_v49  ;;  %v184_v58 = vld [vmem:[#allocation4 + $0x130] sm:$0xff]  ;;  %v187_v59 = vld [vmem:[#allocation4 + $0x148] sm:$0xff] }
  0x69   :  { %4061 = vmatpush1.bf16.msra.mxu1 %v4060_v39  ;;  %3895 = vmatprep.subr.bf16.mxu0 %v3894_v40  ;;  %v191_v60 = vld [vmem:[#allocation4 + $0x168] sm:$0xff]  ;;  %v189_v61 = vld [vmem:[#allocation4 + $0x158] sm:$0xff]  ;;  %v3900_v63 = vpack.c.bf16 %v182_v55, %v178_v54  ;;  %v4068_v0 = vpack.c.bf16 %v184_v58, %v180_v56  ;;  %v186_v2 = vld [vmem:[#allocation4 + $0x140] sm:$0xff] }
  0x6a   :  { %4063 = vmatprep.subr.bf16.mxu1 %v4062_v44  ;;  %v193_v62 = vld [vmem:[#allocation4 + $0x178] sm:$0xff]  ;;  %v3902_v1 = vpack.c.bf16 %v191_v60, %v187_v59  ;;  %v190_v3 = vld [vmem:[#allocation4 + $0x160] sm:$0xff]  ;;  %v188_v4 = vld [vmem:[#allocation4 + $0x150] sm:$0xff] }
  0x6b   :  { %v4070_v5 = vpack.c.bf16 %v193_v62, %v189_v61  ;;  %v192_v6 = vld [vmem:[#allocation4 + $0x170] sm:$0xff]  ;;  %v195_v7 = vld [vmem:[#allocation4 + $0x188] sm:$0xff]  ;;  %v197_v9 = vld [vmem:[#allocation4 + $0x198] sm:$0xff]  ;;  %v3904_v11 = vpack.c.bf16 %v190_v3, %v186_v2 }
  0x6c   :  { %3897 = vmatpush1.bf16.msra.mxu0 %v3896_v51  ;;  %v199_v8 = vld [vmem:[#allocation4 + $0x1a8] sm:$0xff]  ;;  %v201_v10 = vld [vmem:[#allocation4 + $0x1b8] sm:$0xff]  ;;  %v4072_v12 = vpack.c.bf16 %v192_v6, %v188_v4  ;;  %v194_v14 = vld [vmem:[#allocation4 + $0x180] sm:$0xff] }
  0x6d   :  { %4065 = vmatpush1.bf16.msra.mxu1 %v4064_v52  ;;  %3899 = vmatprep.subr.bf16.mxu0 %v3898_v53  ;;  %v3906_v13 = vpack.c.bf16 %v199_v8, %v195_v7  ;;  %v198_v15 = vld [vmem:[#allocation4 + $0x1a0] sm:$0xff]  ;;  %v196_v16 = vld [vmem:[#allocation4 + $0x190] sm:$0xff]  ;;  %v4074_v17 = vpack.c.bf16 %v201_v10, %v197_v9  ;;  %v203_v19 = vld [vmem:[#allocation4 + $0x1c8] sm:$0xff] }
  0x6e   :  { %4067 = vmatprep.subr.bf16.mxu1 %v4066_v57  ;;  %v200_v18 = vld [vmem:[#allocation4 + $0x1b0] sm:$0xff]  ;;  %v207_v20 = vld [vmem:[#allocation4 + $0x1e8] sm:$0xff]  ;;  %v205_v21 = vld [vmem:[#allocation4 + $0x1d8] sm:$0xff]  ;;  %v3908_v23 = vpack.c.bf16 %v198_v15, %v194_v14 }
  0x6f   :  { %v209_v22 = vld [vmem:[#allocation4 + $0x1f8] sm:$0xff]  ;;  %v4076_v24 = vpack.c.bf16 %v200_v18, %v196_v16  ;;  %v3910_v25 = vpack.c.bf16 %v207_v20, %v203_v19  ;;  %v202_v26 = vld [vmem:[#allocation4 + $0x1c0] sm:$0xff]  ;;  %v204_v28 = vld [vmem:[#allocation4 + $0x1d0] sm:$0xff] }
  0x70   :  { %3901 = vmatpush1.bf16.msra.mxu0 %v3900_v63  ;;  %v206_v27 = vld [vmem:[#allocation4 + $0x1e0] sm:$0xff]  ;;  %v4078_v29 = vpack.c.bf16 %v209_v22, %v205_v21  ;;  %v208_v30 = vld [vmem:[#allocation4 + $0x1f0] sm:$0xff]  ;;  %v211_v31 = vld [vmem:[#allocation4 + $0x208] sm:$0xff] }
  0x71   :  { %4069 = vmatpush1.bf16.msra.mxu1 %v4068_v0  ;;  %3903 = vmatprep.subr.bf16.mxu0 %v3902_v1  ;;  %v215_v32 = vld [vmem:[#allocation4 + $0x228] sm:$0xff]  ;;  %v213_v33 = vld [vmem:[#allocation4 + $0x218] sm:$0xff]  ;;  %v3912_v35 = vpack.c.bf16 %v206_v27, %v202_v26  ;;  %v4080_v36 = vpack.c.bf16 %v208_v30, %v204_v28  ;;  %v210_v38 = vld [vmem:[#allocation4 + $0x200] sm:$0xff] }
  0x72   :  { %4071 = vmatprep.subr.bf16.mxu1 %v4070_v5  ;;  %v217_v34 = vld [vmem:[#allocation4 + $0x238] sm:$0xff]  ;;  %v3914_v37 = vpack.c.bf16 %v215_v32, %v211_v31  ;;  %v214_v39 = vld [vmem:[#allocation4 + $0x220] sm:$0xff]  ;;  %v212_v40 = vld [vmem:[#allocation4 + $0x210] sm:$0xff] }
  0x73   :  { %v4082_v41 = vpack.c.bf16 %v217_v34, %v213_v33  ;;  %v216_v42 = vld [vmem:[#allocation4 + $0x230] sm:$0xff]  ;;  %v219_v43 = vld [vmem:[#allocation4 + $0x248] sm:$0xff]  ;;  %v221_v45 = vld [vmem:[#allocation4 + $0x258] sm:$0xff]  ;;  %v3916_v47 = vpack.c.bf16 %v214_v39, %v210_v38 }
  0x74   :  { %3905 = vmatpush1.bf16.msra.mxu0 %v3904_v11  ;;  %v223_v44 = vld [vmem:[#allocation4 + $0x268] sm:$0xff]  ;;  %v225_v46 = vld [vmem:[#allocation4 + $0x278] sm:$0xff]  ;;  %v4084_v48 = vpack.c.bf16 %v216_v42, %v212_v40  ;;  %v218_v50 = vld [vmem:[#allocation4 + $0x240] sm:$0xff] }
  0x75   :  { %4073 = vmatpush1.bf16.msra.mxu1 %v4072_v12  ;;  %3907 = vmatprep.subr.bf16.mxu0 %v3906_v13  ;;  %v3918_v49 = vpack.c.bf16 %v223_v44, %v219_v43  ;;  %v222_v51 = vld [vmem:[#allocation4 + $0x260] sm:$0xff]  ;;  %v220_v52 = vld [vmem:[#allocation4 + $0x250] sm:$0xff]  ;;  %v4086_v53 = vpack.c.bf16 %v225_v46, %v221_v45  ;;  %v227_v55 = vld [vmem:[#allocation4 + $0x288] sm:$0xff] }
  0x76   :  { %4075 = vmatprep.subr.bf16.mxu1 %v4074_v17  ;;  %v224_v54 = vld [vmem:[#allocation4 + $0x270] sm:$0xff]  ;;  %v231_v56 = vld [vmem:[#allocation4 + $0x2a8] sm:$0xff]  ;;  %v229_v57 = vld [vmem:[#allocation4 + $0x298] sm:$0xff]  ;;  %v3920_v59 = vpack.c.bf16 %v222_v51, %v218_v50 }
  0x77   :  { %v233_v58 = vld [vmem:[#allocation4 + $0x2b8] sm:$0xff]  ;;  %v4088_v60 = vpack.c.bf16 %v224_v54, %v220_v52  ;;  %v3922_v61 = vpack.c.bf16 %v231_v56, %v227_v55  ;;  %v226_v62 = vld [vmem:[#allocation4 + $0x280] sm:$0xff]  ;;  %v228_v0 = vld [vmem:[#allocation4 + $0x290] sm:$0xff] }
  0x78   :  { %3909 = vmatpush1.bf16.msra.mxu0 %v3908_v23  ;;  %v230_v63 = vld [vmem:[#allocation4 + $0x2a0] sm:$0xff]  ;;  %v4090_v1 = vpack.c.bf16 %v233_v58, %v229_v57  ;;  %v232_v2 = vld [vmem:[#allocation4 + $0x2b0] sm:$0xff]  ;;  %v235_v3 = vld [vmem:[#allocation4 + $0x2c8] sm:$0xff] }
  0x79   :  { %4077 = vmatpush1.bf16.msra.mxu1 %v4076_v24  ;;  %3911 = vmatprep.subr.bf16.mxu0 %v3910_v25  ;;  %v239_v4 = vld [vmem:[#allocation4 + $0x2e8] sm:$0xff]  ;;  %v237_v5 = vld [vmem:[#allocation4 + $0x2d8] sm:$0xff]  ;;  %v3924_v7 = vpack.c.bf16 %v230_v63, %v226_v62  ;;  %v234_v8 = vld [vmem:[#allocation4 + $0x2c0] sm:$0xff]  ;;  %v4092_v9 = vpack.c.bf16 %v232_v2, %v228_v0 }
  0x7a   :  { %4079 = vmatprep.subr.bf16.mxu1 %v4078_v29  ;;  %v241_v6 = vld [vmem:[#allocation4 + $0x2f8] sm:$0xff]  ;;  %v3926_v10 = vpack.c.bf16 %v239_v4, %v235_v3  ;;  %v238_v11 = vld [vmem:[#allocation4 + $0x2e0] sm:$0xff]  ;;  %v236_v12 = vld [vmem:[#allocation4 + $0x2d0] sm:$0xff] }
  0x7b   :  { %v240_v13 = vld [vmem:[#allocation4 + $0x2f0] sm:$0xff]  ;;  %v4094_v14 = vpack.c.bf16 %v241_v6, %v237_v5  ;;  %v243_v15 = vld [vmem:[#allocation4 + $0x308] sm:$0xff]  ;;  %v245_v18 = vld [vmem:[#allocation4 + $0x318] sm:$0xff]  ;;  %v3928_v20 = vpack.c.bf16 %v238_v11, %v234_v8 }
  0x7c   :  { %3913 = vmatpush1.bf16.msra.mxu0 %v3912_v35  ;;  %v247_v16 = vld [vmem:[#allocation4 + $0x328] sm:$0xff]  ;;  %v249_v19 = vld [vmem:[#allocation4 + $0x338] sm:$0xff]  ;;  %v4096_v21 = vpack.c.bf16 %v240_v13, %v236_v12  ;;  %v242_v23 = vld [vmem:[#allocation4 + $0x300] sm:$0xff] }
  0x7d   :  { %4081 = vmatpush1.bf16.msra.mxu1 %v4080_v36  ;;  %3915 = vmatprep.subr.bf16.mxu0 %v3914_v37  ;;  %v99_v17 = vld [vmem:[%s6373_s0 + $0x8] sm:$0xff]  ;;  %v3930_v22 = vpack.c.bf16 %v247_v16, %v243_v15  ;;  %v244_v25 = vld [vmem:[#allocation4 + $0x310] sm:$0xff]  ;;  %v4098_v26 = vpack.c.bf16 %v249_v19, %v245_v18  ;;  %v253_v30 = vld [vmem:[#allocation4 + $0x358] sm:$0xff] }
  0x7e   :  { %4083 = vmatprep.subr.bf16.mxu1 %v4082_v41  ;;  %593 = vmatprep.mubr.f32.mxu0 %v99_v17  ;;  %v246_v24 = vld [vmem:[#allocation4 + $0x320] sm:$0xff]  ;;  %v248_v27 = vld [vmem:[#allocation4 + $0x330] sm:$0xff]  ;;  %v251_v28 = vld [vmem:[#allocation4 + $0x348] sm:$0xff] }
  0x7f   :  { %932 = vmatprep.mubr.f32.mxu1 %v99_v17  ;;  %v255_v29 = vld [vmem:[#allocation4 + $0x368] sm:$0xff]  ;;  %v257_v31 = vld [vmem:[#allocation4 + $0x378] sm:$0xff]  ;;  %v3932_v32 = vpack.c.bf16 %v246_v24, %v242_v23  ;;  %v4100_v33 = vpack.c.bf16 %v248_v27, %v244_v25  ;;  %v250_v35 = vld [vmem:[#allocation4 + $0x340] sm:$0xff] }
  0x80   :  { %3917 = vmatpush1.bf16.msra.mxu0 %v3916_v47  ;;  %v3934_v34 = vpack.c.bf16 %v255_v29, %v251_v28  ;;  %v254_v36 = vld [vmem:[#allocation4 + $0x360] sm:$0xff]  ;;  %v252_v37 = vld [vmem:[#allocation4 + $0x350] sm:$0xff]  ;;  %v4102_v38 = vpack.c.bf16 %v257_v31, %v253_v30  ;;  %v259_v40 = vld [vmem:[#allocation4 + $0x388] sm:$0xff] }
  0x81   :  { %4085 = vmatpush1.bf16.msra.mxu1 %v4084_v48  ;;  %3919 = vmatprep.subr.bf16.mxu0 %v3918_v49  ;;  %v256_v39 = vld [vmem:[#allocation4 + $0x370] sm:$0xff]  ;;  %v263_v41 = vld [vmem:[#allocation4 + $0x3a8] sm:$0xff]  ;;  %v261_v42 = vld [vmem:[#allocation4 + $0x398] sm:$0xff]  ;;  %v3936_v44 = vpack.c.bf16 %v254_v36, %v250_v35 }
  0x82   :  { %4087 = vmatprep.subr.bf16.mxu1 %v4086_v53  ;;  %v265_v43 = vld [vmem:[#allocation4 + $0x3b8] sm:$0xff]  ;;  %v4104_v45 = vpack.c.bf16 %v256_v39, %v252_v37  ;;  %v3938_v46 = vpack.c.bf16 %v263_v41, %v259_v40  ;;  %v258_v47 = vld [vmem:[#allocation4 + $0x380] sm:$0xff]  ;;  %v260_v49 = vld [vmem:[#allocation4 + $0x390] sm:$0xff] }
  0x83   :  { %v262_v48 = vld [vmem:[#allocation4 + $0x3a0] sm:$0xff]  ;;  %v4106_v50 = vpack.c.bf16 %v265_v43, %v261_v42  ;;  %v264_v51 = vld [vmem:[#allocation4 + $0x3b0] sm:$0xff]  ;;  %v267_v52 = vld [vmem:[#allocation4 + $0x3c8] sm:$0xff] }
  0x84   :  { %3921 = vmatpush1.bf16.msra.mxu0 %v3920_v59  ;;  %v271_v53 = vld [vmem:[#allocation4 + $0x3e8] sm:$0xff]  ;;  %v269_v54 = vld [vmem:[#allocation4 + $0x3d8] sm:$0xff]  ;;  %v3940_v56 = vpack.c.bf16 %v262_v48, %v258_v47  ;;  %v4108_v57 = vpack.c.bf16 %v264_v51, %v260_v49  ;;  %v266_v59 = vld [vmem:[#allocation4 + $0x3c0] sm:$0xff] }
  0x85   :  { %4089 = vmatpush1.bf16.msra.mxu1 %v4088_v60  ;;  %3923 = vmatprep.subr.bf16.mxu0 %v3922_v61  ;;  %v273_v55 = vld [vmem:[#allocation4 + $0x3f8] sm:$0xff]  ;;  %v3942_v58 = vpack.c.bf16 %v271_v53, %v267_v52  ;;  %v270_v60 = vld [vmem:[#allocation4 + $0x3e0] sm:$0xff]  ;;  %v268_v61 = vld [vmem:[#allocation4 + $0x3d0] sm:$0xff] }
  0x86   :  { %4091 = vmatprep.subr.bf16.mxu1 %v4090_v1  ;;  %v4110_v62 = vpack.c.bf16 %v273_v55, %v269_v54  ;;  %v272_v63 = vld [vmem:[#allocation4 + $0x3f0] sm:$0xff]  ;;  %v275_v0 = vld [vmem:[#allocation4 + $0x408] sm:$0xff]  ;;  %v277_v2 = vld [vmem:[#allocation4 + $0x418] sm:$0xff]  ;;  %v3944_v4 = vpack.c.bf16 %v270_v60, %v266_v59 }
  0x87   :  { %v279_v1 = vld [vmem:[#allocation4 + $0x428] sm:$0xff]  ;;  %v281_v3 = vld [vmem:[#allocation4 + $0x438] sm:$0xff]  ;;  %v4112_v5 = vpack.c.bf16 %v272_v63, %v268_v61  ;;  %v278_v8 = vld [vmem:[#allocation4 + $0x420] sm:$0xff] }
  0x88   :  { %3925 = vmatpush1.bf16.msra.mxu0 %v3924_v7  ;;  %v3946_v6 = vpack.c.bf16 %v279_v1, %v275_v0  ;;  %v274_v7 = vld [vmem:[#allocation4 + $0x400] sm:$0xff]  ;;  %v280_v11 = vld [vmem:[#allocation4 + $0x430] sm:$0xff]  ;;  %v283_v12 = vld [vmem:[#allocation4 + $0x448] sm:$0xff] }
  0x89   :  { %4093 = vmatpush1.bf16.msra.mxu1 %v4092_v9  ;;  %3927 = vmatprep.subr.bf16.mxu0 %v3926_v10  ;;  %v276_v9 = vld [vmem:[#allocation4 + $0x410] sm:$0xff]  ;;  %v4114_v10 = vpack.c.bf16 %v281_v3, %v277_v2  ;;  %v287_v13 = vld [vmem:[#allocation4 + $0x468] sm:$0xff]  ;;  %v289_v15 = vld [vmem:[#allocation4 + $0x478] sm:$0xff]  ;;  %v3948_v17 = vpack.c.bf16 %v278_v8, %v274_v7 }
  0x8a   :  { %4095 = vmatprep.subr.bf16.mxu1 %v4094_v14  ;;  %v285_v14 = vld [vmem:[#allocation4 + $0x458] sm:$0xff]  ;;  %v4116_v18 = vpack.c.bf16 %v280_v11, %v276_v9  ;;  %v3950_v19 = vpack.c.bf16 %v287_v13, %v283_v12  ;;  %v288_v24 = vld [vmem:[#allocation4 + $0x470] sm:$0xff]  ;;  %v291_v25 = vld [vmem:[#allocation4 + $0x488] sm:$0xff] }
  0x8b   :  { %v98_v16 = vld [vmem:[%s6373_s0] sm:$0xff]  ;;  %v4118_v23 = vpack.c.bf16 %v289_v15, %v285_v14  ;;  %v105_v29 = vld [vmem:[%s6373_s0 + $0x38] sm:$0xff]  ;;  %v104_v36 = vld [vmem:[%s6373_s0 + $0x30] sm:$0xff] }
  0x8c   :  { %3929 = vmatpush1.bf16.msra.mxu0 %v3928_v20  ;;  %v282_v20 = vld [vmem:[#allocation4 + $0x440] sm:$0xff]  ;;  %v293_v27 = vld [vmem:[#allocation4 + $0x498] sm:$0xff]  ;;  %v292_v35 = vld [vmem:[#allocation4 + $0x490] sm:$0xff] }
  0x8d   :  { %4097 = vmatpush1.bf16.msra.mxu1 %v4096_v21  ;;  %3931 = vmatprep.subr.bf16.mxu0 %v3930_v22  ;;  %v286_v21 = vld [vmem:[#allocation4 + $0x460] sm:$0xff]  ;;  %v284_v22 = vld [vmem:[#allocation4 + $0x450] sm:$0xff]  ;;  %v297_v28 = vld [vmem:[#allocation4 + $0x4b8] sm:$0xff] }
  0x8e   :  { %4099 = vmatprep.subr.bf16.mxu1 %v4098_v26  ;;  %v295_v26 = vld [vmem:[#allocation4 + $0x4a8] sm:$0xff]  ;;  %v3952_v30 = vpack.c.bf16 %v286_v21, %v282_v20  ;;  %v290_v31 = vld [vmem:[#allocation4 + $0x480] sm:$0xff]  ;;  %v4122_v37 = vpack.c.bf16 %v297_v28, %v293_v27  ;;  %v301_v41 = vld [vmem:[#allocation4 + $0x4d8] sm:$0xff] }
  0x8f   :  { %v299_v39 = vld [vmem:[#allocation4 + $0x4c8] sm:$0xff]  ;;  %v305_v42 = vld [vmem:[#allocation4 + $0x4f8] sm:$0xff]  ;;  %v298_v48 = vld [vmem:[#allocation4 + $0x4c0] sm:$0xff] }
  0x90   :  { %3933 = vmatpush1.bf16.msra.mxu0 %v3932_v32  ;;  %v4120_v32 = vpack.c.bf16 %v288_v24, %v284_v22  ;;  %v303_v40 = vld [vmem:[#allocation4 + $0x4e8] sm:$0xff]  ;;  %v302_v49 = vld [vmem:[#allocation4 + $0x4e0] sm:$0xff]  ;;  %v4126_v51 = vpack.c.bf16 %v305_v42, %v301_v41  ;;  %v304_v52 = vld [vmem:[#allocation4 + $0x4f0] sm:$0xff] }
  0x91   :  { %4101 = vmatpush1.bf16.msra.mxu1 %v4100_v33  ;;  %3935 = vmatprep.subr.bf16.mxu0 %v3934_v34  ;;  %v3954_v33 = vpack.c.bf16 %v295_v26, %v291_v25  ;;  %v294_v34 = vld [vmem:[#allocation4 + $0x4a0] sm:$0xff]  ;;  %v3958_v47 = vpack.c.bf16 %v303_v40, %v299_v39  ;;  %v307_v53 = vld [vmem:[#allocation4 + $0x508] sm:$0xff]  ;;  %v309_v55 = vld [vmem:[#allocation4 + $0x518] sm:$0xff] }
  0x92   :  { %4103 = vmatprep.subr.bf16.mxu1 %v4102_v38  ;;  %v296_v38 = vld [vmem:[#allocation4 + $0x4b0] sm:$0xff]  ;;  %v111_v43 = vld [vmem:[%s6373_s0 + $0x68] sm:$0xff]  ;;  %v122_v9 = vld [vmem:[%s6373_s0 + $0xc0] sm:$0xff] }
  0x93   :  { %v311_v54 = vld [vmem:[#allocation4 + $0x528] sm:$0xff]  ;;  %v310_v63 = vld [vmem:[#allocation4 + $0x520] sm:$0xff]  ;;  %v308_v0 = vld [vmem:[#allocation4 + $0x510] sm:$0xff] }
  0x94   :  { %3937 = vmatpush1.bf16.msra.mxu0 %v3936_v44  ;;  %v3956_v44 = vpack.c.bf16 %v294_v34, %v290_v31  ;;  %v116_v59 = vld [vmem:[%s6373_s0 + $0x90] sm:$0xff]  ;;  %v3962_v61 = vpack.c.bf16 %v311_v54, %v307_v53  ;;  %v123_v7 = vld [vmem:[%s6373_s0 + $0xc8] sm:$0xff]  ;;  %v329_v20 = vld [vmem:[#allocation4 + $0x5b8] sm:$0xff] }
  0x95   :  { %4105 = vmatpush1.bf16.msra.mxu1 %v4104_v45  ;;  %3939 = vmatprep.subr.bf16.mxu0 %v3938_v46  ;;  %v110_v45 = vld [vmem:[%s6373_s0 + $0x60] sm:$0xff]  ;;  %v4124_v46 = vpack.c.bf16 %v296_v38, %v292_v35  ;;  %v312_v2 = vld [vmem:[#allocation4 + $0x530] sm:$0xff]  ;;  %v315_v3 = vld [vmem:[#allocation4 + $0x548] sm:$0xff] }
  0x96   :  { %4107 = vmatprep.subr.bf16.mxu1 %v4106_v50  ;;  %v300_v50 = vld [vmem:[#allocation4 + $0x4d0] sm:$0xff]  ;;  %v314_v12 = vld [vmem:[#allocation4 + $0x540] sm:$0xff]  ;;  %v331_v31 = vld [vmem:[#allocation4 + $0x5c8] sm:$0xff] }
  0x97   :  { %v4128_v60 = vpack.c.bf16 %v304_v52, %v300_v50  ;;  %v318_v13 = vld [vmem:[#allocation4 + $0x560] sm:$0xff]  ;;  %v316_v14 = vld [vmem:[#allocation4 + $0x550] sm:$0xff]  ;;  %v337_v34 = vld [vmem:[#allocation4 + $0x5f8] sm:$0xff] }
  0x98   :  { %3941 = vmatpush1.bf16.msra.mxu0 %v3940_v56  ;;  %v313_v56 = vld [vmem:[#allocation4 + $0x538] sm:$0xff]  ;;  %v3968_v22 = vpack.c.bf16 %v318_v13, %v314_v12  ;;  %v322_v26 = vld [vmem:[#allocation4 + $0x580] sm:$0xff]  ;;  %v324_v28 = vld [vmem:[#allocation4 + $0x590] sm:$0xff] }
  0x99   :  { %4109 = vmatpush1.bf16.msra.mxu1 %v4108_v57  ;;  %3943 = vmatprep.subr.bf16.mxu0 %v3942_v58  ;;  %v117_v57 = vld [vmem:[%s6373_s0 + $0x98] sm:$0xff]  ;;  %v3960_v58 = vpack.c.bf16 %v302_v49, %v298_v48  ;;  %v4130_v1 = vpack.c.bf16 %v313_v56, %v309_v55  ;;  %v326_v27 = vld [vmem:[#allocation4 + $0x5a0] sm:$0xff] }
  0x9a   :  { %4111 = vmatprep.subr.bf16.mxu1 %v4110_v62  ;;  %v306_v62 = vld [vmem:[#allocation4 + $0x500] sm:$0xff]  ;;  %v129_v21 = vld [vmem:[%s6373_s0 + $0xf8] sm:$0xff] }
  0x9b   :  { %v3964_v8 = vpack.c.bf16 %v310_v63, %v306_v62  ;;  %v135_v35 = vld [vmem:[%s6373_s0 + $0x128] sm:$0xff]  ;;  %v332_v42 = vld [vmem:[#allocation4 + $0x5d0] sm:$0xff]  ;;  %v345_v48 = vld [vmem:[#allocation4 + $0x638] sm:$0xff] }
  0x9c   :  { %3945 = vmatpush1.bf16.msra.mxu0 %v3944_v4  ;;  %v319_v4 = vld [vmem:[#allocation4 + $0x568] sm:$0xff]  ;;  %v330_v40 = vld [vmem:[#allocation4 + $0x5c0] sm:$0xff]  ;;  %v141_v49 = vld [vmem:[%s6373_s0 + $0x158] sm:$0xff] }
  0x9d   :  { %4113 = vmatpush1.bf16.msra.mxu1 %v4112_v5  ;;  %3947 = vmatprep.subr.bf16.mxu0 %v3946_v6  ;;  %v317_v5 = vld [vmem:[#allocation4 + $0x558] sm:$0xff]  ;;  %v3966_v11 = vpack.c.bf16 %v319_v4, %v315_v3  ;;  %v334_v41 = vld [vmem:[#allocation4 + $0x5e0] sm:$0xff]  ;;  %v340_v56 = vld [vmem:[#allocation4 + $0x610] sm:$0xff] }
  0x9e   :  { %4115 = vmatprep.subr.bf16.mxu1 %v4114_v10  ;;  %v321_v6 = vld [vmem:[#allocation4 + $0x578] sm:$0xff]  ;;  %v4132_v10 = vpack.c.bf16 %v312_v2, %v308_v0  ;;  %v3976_v50 = vpack.c.bf16 %v334_v41, %v330_v40  ;;  %v338_v54 = vld [vmem:[#allocation4 + $0x600] sm:$0xff]  ;;  %v372_v41 = vld [vmem:[#allocation4 + $0x710] sm:$0xff] }
  0x9f   :  { %594 = vmatmul.mubr.f32.vlgmr.msra.gmra.mrb[0].mxu0 %v98_v16  ;;  %v4134_v15 = vpack.c.bf16 %v321_v6, %v317_v5  ;;  %v342_v55 = vld [vmem:[#allocation4 + $0x620] sm:$0xff]  ;;  %v353_v62 = vld [vmem:[#allocation4 + $0x678] sm:$0xff]  ;;  %v348_v5 = vld [vmem:[#allocation4 + $0x650] sm:$0xff] }
  0xa0   :  { %3949 = vmatpush1.bf16.msra.mxu0 %v3948_v17  ;;  %933 = vmatmul.mubr.f32.vlgmr.msra.gmra.mrb[0].mxu1 %v98_v16  ;;  %v320_v16 = vld [vmem:[#allocation4 + $0x570] sm:$0xff]  ;;  %v323_v17 = vld [vmem:[#allocation4 + $0x588] sm:$0xff]  ;;  %v3980_v0 = vpack.c.bf16 %v342_v55, %v338_v54  ;;  %v346_v3 = vld [vmem:[#allocation4 + $0x640] sm:$0xff] }
  0xa1   :  { %4117 = vmatpush1.bf16.msra.mxu1 %v4116_v18  ;;  %3951 = vmatprep.subr.bf16.mxu0 %v3950_v19  ;;  %v327_v18 = vld [vmem:[#allocation4 + $0x5a8] sm:$0xff]  ;;  %v325_v19 = vld [vmem:[#allocation4 + $0x598] sm:$0xff]  ;;  %v4136_v24 = vpack.c.bf16 %v320_v16, %v316_v14  ;;  %v350_v4 = vld [vmem:[#allocation4 + $0x660] sm:$0xff] }
  0xa2   :  { %4119 = vmatprep.subr.bf16.mxu1 %v4118_v23  ;;  %599 = vmatprep.mubr.f32.mxu0 %v105_v29  ;;  %v128_v23 = vld [vmem:[%s6373_s0 + $0xf0] sm:$0xff]  ;;  %v3970_v25 = vpack.c.bf16 %v327_v18, %v323_v17  ;;  %v101_v63 = vld [vmem:[%s6373_s0 + $0x18] sm:$0xff]  ;;  %v3984_v12 = vpack.c.bf16 %v350_v4, %v346_v3  ;;  %v358_v16 = vld [vmem:[#allocation4 + $0x6a0] sm:$0xff] }
  0xa3   :  { %938 = vmatprep.mubr.f32.mxu1 %v105_v29  ;;  %600 = vmatmul.mubr.f32.gmra.mrb[2].mxu0 %v104_v36  ;;  %v4138_v29 = vpack.c.bf16 %v329_v20, %v325_v19  ;;  %v356_v17 = vld [vmem:[#allocation4 + $0x690] sm:$0xff]  ;;  %v363_v20 = vld [vmem:[#allocation4 + $0x6c8] sm:$0xff]  ;;  %v374_v40 = vld [vmem:[#allocation4 + $0x720] sm:$0xff] }
  0xa4   :  { %3953 = vmatpush1.bf16.msra.mxu0 %v3952_v30  ;;  %939 = vmatmul.mubr.f32.gmra.mrb[2].mxu1 %v104_v36  ;;  %v328_v30 = vld [vmem:[#allocation4 + $0x5b0] sm:$0xff]  ;;  %v3972_v36 = vpack.c.bf16 %v326_v27, %v322_v26  ;;  %v362_v27 = vld [vmem:[#allocation4 + $0x6c0] sm:$0xff]  ;;  %v395_v4 = vld [vmem:[#allocation4 + $0x7c8] sm:$0xff] }
  0xa5   :  { %4121 = vmatpush1.bf16.msra.mxu1 %v4120_v32  ;;  %3955 = vmatprep.subr.bf16.mxu0 %v3954_v33  ;;  %v335_v32 = vld [vmem:[#allocation4 + $0x5e8] sm:$0xff]  ;;  %v333_v33 = vld [vmem:[#allocation4 + $0x5d8] sm:$0xff]  ;;  %v4140_v38 = vpack.c.bf16 %v328_v30, %v324_v28  ;;  %v360_v19 = vld [vmem:[#allocation4 + $0x6b0] sm:$0xff] }
  0xa6   :  { %4123 = vmatprep.subr.bf16.mxu1 %v4122_v37  ;;  %605 = vmatprep.mubr.f32.mxu0 %v111_v43  ;;  %v134_v37 = vld [vmem:[%s6373_s0 + $0x120] sm:$0xff]  ;;  %v3974_v39 = vpack.c.bf16 %v335_v32, %v331_v31  ;;  %v368_v31 = vld [vmem:[#allocation4 + $0x6f0] sm:$0xff]  ;;  %v371_v32 = vld [vmem:[#allocation4 + $0x708] sm:$0xff] }
  0xa7   :  { %944 = vmatprep.mubr.f32.mxu1 %v111_v43  ;;  %606 = vmatmul.mubr.f32.gmra.mrb[4].mxu0 %v110_v45  ;;  %v4142_v43 = vpack.c.bf16 %v337_v34, %v333_v33  ;;  %v366_v28 = vld [vmem:[#allocation4 + $0x6e0] sm:$0xff]  ;;  %v375_v33 = vld [vmem:[#allocation4 + $0x728] sm:$0xff]  ;;  %v373_v34 = vld [vmem:[#allocation4 + $0x718] sm:$0xff] }
  0xa8   :  { %3957 = vmatpush1.bf16.msra.mxu0 %v3956_v44  ;;  %945 = vmatmul.mubr.f32.gmra.mrb[4].mxu1 %v110_v45  ;;  %v336_v44 = vld [vmem:[#allocation4 + $0x5f0] sm:$0xff]  ;;  %v339_v45 = vld [vmem:[#allocation4 + $0x608] sm:$0xff] }
  0xa9   :  { %4125 = vmatpush1.bf16.msra.mxu1 %v4124_v46  ;;  %3959 = vmatprep.subr.bf16.mxu0 %v3958_v47  ;;  %v343_v46 = vld [vmem:[#allocation4 + $0x628] sm:$0xff]  ;;  %v341_v47 = vld [vmem:[#allocation4 + $0x618] sm:$0xff]  ;;  %v4144_v52 = vpack.c.bf16 %v336_v44, %v332_v42  ;;  %v384_v55 = vld [vmem:[#allocation4 + $0x770] sm:$0xff] }
  0xaa   :  { %4127 = vmatprep.subr.bf16.mxu1 %v4126_v51  ;;  %611 = vmatprep.mubr.f32.mxu0 %v117_v57  ;;  %v140_v51 = vld [vmem:[%s6373_s0 + $0x150] sm:$0xff]  ;;  %v3978_v53 = vpack.c.bf16 %v343_v46, %v339_v45  ;;  %v381_v46 = vld [vmem:[#allocation4 + $0x758] sm:$0xff] }
  0xab   :  { %950 = vmatprep.mubr.f32.mxu1 %v117_v57  ;;  %612 = vmatmul.mubr.f32.gmra.mrb[6].mxu0 %v116_v59  ;;  %v4146_v57 = vpack.c.bf16 %v345_v48, %v341_v47  ;;  %v379_v44 = vld [vmem:[#allocation4 + $0x748] sm:$0xff]  ;;  %v385_v47 = vld [vmem:[#allocation4 + $0x778] sm:$0xff]  ;;  %v392_v3 = vld [vmem:[#allocation4 + $0x7b0] sm:$0xff] }
  0xac   :  { %3961 = vmatpush1.bf16.msra.mxu0 %v3960_v58  ;;  %951 = vmatmul.mubr.f32.gmra.mrb[6].mxu1 %v116_v59  ;;  %v344_v58 = vld [vmem:[#allocation4 + $0x630] sm:$0xff]  ;;  %v347_v59 = vld [vmem:[#allocation4 + $0x648] sm:$0xff]  ;;  %v4166_v54 = vpack.c.bf16 %v385_v47, %v381_v46  ;;  %v106_v47 = vld [vmem:[%s6373_s0 + $0x40] sm:$0xff] }
  0xad   :  { %4129 = vmatpush1.bf16.msra.mxu1 %v4128_v60  ;;  %3963 = vmatprep.subr.bf16.mxu0 %v3962_v61  ;;  %v351_v60 = vld [vmem:[#allocation4 + $0x668] sm:$0xff]  ;;  %v349_v61 = vld [vmem:[#allocation4 + $0x658] sm:$0xff] }
  0xae   :  { %4131 = vmatprep.subr.bf16.mxu1 %v4130_v1  ;;  %617 = vmatprep.mubr.f32.mxu0 %v123_v7  ;;  %v4148_v1 = vpack.c.bf16 %v344_v58, %v340_v56  ;;  %v3982_v2 = vpack.c.bf16 %v351_v60, %v347_v59  ;;  %v4150_v6 = vpack.c.bf16 %v353_v62, %v349_v61  ;;  %v383_v45 = vld [vmem:[#allocation4 + $0x768] sm:$0xff]  ;;  %v389_v58 = vld [vmem:[#allocation4 + $0x798] sm:$0xff] }
  0xaf   :  { %956 = vmatprep.mubr.f32.mxu1 %v123_v7  ;;  %618 = vmatmul.mubr.f32.gmra.mrb[8].mxu0 %v122_v9  ;;  %v352_v7 = vld [vmem:[#allocation4 + $0x670] sm:$0xff]  ;;  %v387_v56 = vld [vmem:[#allocation4 + $0x788] sm:$0xff]  ;;  %v393_v59 = vld [vmem:[#allocation4 + $0x7b8] sm:$0xff] }
  0xb0   :  { %3965 = vmatpush1.bf16.msra.mxu0 %v3964_v8  ;;  %957 = vmatmul.mubr.f32.gmra.mrb[8].mxu1 %v122_v9  ;;  %v355_v8 = vld [vmem:[#allocation4 + $0x688] sm:$0xff]  ;;  %v4152_v13 = vpack.c.bf16 %v352_v7, %v348_v5  ;;  %v401_v7 = vld [vmem:[#allocation4 + $0x7f8] sm:$0xff] }
  0xb1   :  { %4133 = vmatpush1.bf16.msra.mxu1 %v4132_v10  ;;  %3967 = vmatprep.subr.bf16.mxu0 %v3966_v11  ;;  %v359_v9 = vld [vmem:[#allocation4 + $0x6a8] sm:$0xff]  ;;  %v357_v10 = vld [vmem:[#allocation4 + $0x698] sm:$0xff] }
  0xb2   :  { %4135 = vmatprep.subr.bf16.mxu1 %v4134_v15  ;;  %623 = vmatprep.mubr.f32.mxu0 %v129_v21  ;;  %v361_v11 = vld [vmem:[#allocation4 + $0x6b8] sm:$0xff]  ;;  %v3986_v14 = vpack.c.bf16 %v359_v9, %v355_v8  ;;  %v354_v15 = vld [vmem:[#allocation4 + $0x680] sm:$0xff]  ;;  %v399_v5 = vld [vmem:[#allocation4 + $0x7e8] sm:$0xff] }
  0xb3   :  { %962 = vmatprep.mubr.f32.mxu1 %v129_v21  ;;  %624 = vmatmul.mubr.f32.gmra.mrb[10].mxu0 %v128_v23  ;;  %v4154_v18 = vpack.c.bf16 %v361_v11, %v357_v10  ;;  %v367_v21 = vld [vmem:[#allocation4 + $0x6e8] sm:$0xff]  ;;  %v4006_v10 = vpack.c.bf16 %v399_v5, %v395_v4  ;;  %v394_v11 = vld [vmem:[#allocation4 + $0x7c0] sm:$0xff]  ;;  %v432_v4 = vld [vmem:[#allocation4 + $0x8f0] sm:$0xff] }
  0xb4   :  { %3969 = vmatpush1.bf16.msra.mxu0 %v3968_v22  ;;  %963 = vmatmul.mubr.f32.gmra.mrb[10].mxu1 %v128_v23  ;;  %v365_v22 = vld [vmem:[#allocation4 + $0x6d8] sm:$0xff]  ;;  %v3990_v26 = vpack.c.bf16 %v367_v21, %v363_v20  ;;  %v435_v5 = vld [vmem:[#allocation4 + $0x908] sm:$0xff] }
  0xb5   :  { %4137 = vmatpush1.bf16.msra.mxu1 %v4136_v24  ;;  %3971 = vmatprep.subr.bf16.mxu0 %v3970_v25  ;;  %v369_v23 = vld [vmem:[#allocation4 + $0x6f8] sm:$0xff]  ;;  %v3988_v24 = vpack.c.bf16 %v358_v16, %v354_v15  ;;  %v4156_v25 = vpack.c.bf16 %v360_v19, %v356_v17  ;;  %v400_v15 = vld [vmem:[#allocation4 + $0x7f0] sm:$0xff]  ;;  %v403_v16 = vld [vmem:[#allocation4 + $0x808] sm:$0xff] }
  0xb6   :  { %4139 = vmatprep.subr.bf16.mxu1 %v4138_v29  ;;  %629 = vmatprep.mubr.f32.mxu0 %v135_v35  ;;  %v364_v29 = vld [vmem:[#allocation4 + $0x6d0] sm:$0xff]  ;;  %v4158_v30 = vpack.c.bf16 %v369_v23, %v365_v22  ;;  %v407_v17 = vld [vmem:[#allocation4 + $0x828] sm:$0xff]  ;;  %v409_v19 = vld [vmem:[#allocation4 + $0x838] sm:$0xff] }
  0xb7   :  { %968 = vmatprep.mubr.f32.mxu1 %v135_v35  ;;  %630 = vmatmul.mubr.f32.gmra.mrb[12].mxu0 %v134_v37  ;;  %v377_v35 = vld [vmem:[#allocation4 + $0x738] sm:$0xff]  ;;  %v4010_v22 = vpack.c.bf16 %v407_v17, %v403_v16  ;;  %v402_v23 = vld [vmem:[#allocation4 + $0x800] sm:$0xff]  ;;  %v436_v16 = vld [vmem:[#allocation4 + $0x910] sm:$0xff] }
  0xb8   :  { %3973 = vmatpush1.bf16.msra.mxu0 %v3972_v36  ;;  %969 = vmatmul.mubr.f32.gmra.mrb[12].mxu1 %v134_v37  ;;  %v3992_v36 = vpack.c.bf16 %v366_v28, %v362_v27  ;;  %v4160_v37 = vpack.c.bf16 %v368_v31, %v364_v29  ;;  %v4162_v42 = vpack.c.bf16 %v377_v35, %v373_v34  ;;  %v408_v27 = vld [vmem:[#allocation4 + $0x830] sm:$0xff]  ;;  %v411_v28 = vld [vmem:[#allocation4 + $0x848] sm:$0xff]  ;;  %v417_v31 = vld [vmem:[#allocation4 + $0x878] sm:$0xff] }
  0xb9   :  { %4141 = vmatpush1.bf16.msra.mxu1 %v4140_v38  ;;  %3975 = vmatprep.subr.bf16.mxu0 %v3974_v39  ;;  %v3994_v38 = vpack.c.bf16 %v375_v33, %v371_v32  ;;  %v370_v39 = vld [vmem:[#allocation4 + $0x700] sm:$0xff]  ;;  %v415_v29 = vld [vmem:[#allocation4 + $0x868] sm:$0xff] }
  0xba   :  { %4143 = vmatprep.subr.bf16.mxu1 %v4142_v43  ;;  %635 = vmatprep.mubr.f32.mxu0 %v141_v49  ;;  %v376_v43 = vld [vmem:[#allocation4 + $0x730] sm:$0xff]  ;;  %v3996_v48 = vpack.c.bf16 %v374_v40, %v370_v39  ;;  %v4014_v35 = vpack.c.bf16 %v415_v29, %v411_v28  ;;  %v442_v28 = vld [vmem:[#allocation4 + $0x940] sm:$0xff] }
  0xbb   :  { %974 = vmatprep.mubr.f32.mxu1 %v141_v49  ;;  %636 = vmatmul.mubr.f32.gmra.mrb[14].mxu0 %v140_v51  ;;  %v4164_v49 = vpack.c.bf16 %v376_v43, %v372_v41  ;;  %v100_v32 = vld [vmem:[%s6373_s0 + $0x10] sm:$0xff]  ;;  %v421_v43 = vld [vmem:[#allocation4 + $0x898] sm:$0xff]  ;;  %v446_v29 = vld [vmem:[#allocation4 + $0x960] sm:$0xff] }
  0xbc   :  { %3977 = vmatpush1.bf16.msra.mxu0 %v3976_v50  ;;  %975 = vmatmul.mubr.f32.gmra.mrb[14].mxu1 %v140_v51  ;;  %v3998_v50 = vpack.c.bf16 %v383_v45, %v379_v44  ;;  %v378_v51 = vld [vmem:[#allocation4 + $0x740] sm:$0xff]  ;;  %v416_v40 = vld [vmem:[#allocation4 + $0x870] sm:$0xff]  ;;  %v419_v41 = vld [vmem:[#allocation4 + $0x888] sm:$0xff] }
  0xbd   :  { %4145 = vmatpush1.bf16.msra.mxu1 %v4144_v52  ;;  %3979 = vmatprep.subr.bf16.mxu0 %v3978_v53  ;;  %v382_v52 = vld [vmem:[#allocation4 + $0x760] sm:$0xff]  ;;  %v380_v53 = vld [vmem:[#allocation4 + $0x750] sm:$0xff]  ;;  %v425_v44 = vld [vmem:[#allocation4 + $0x8b8] sm:$0xff] }
  0xbe   :  { %4147 = vmatprep.subr.bf16.mxu1 %v4146_v57  ;;  %706 = vmatprep.mubr.f32.mxu0 %v101_v63  ;;  %v391_v57 = vld [vmem:[#allocation4 + $0x7a8] sm:$0xff]  ;;  %v4000_v60 = vpack.c.bf16 %v382_v52, %v378_v51  ;;  %v4168_v61 = vpack.c.bf16 %v384_v55, %v380_v53  ;;  %v422_v51 = vld [vmem:[#allocation4 + $0x8a0] sm:$0xff]  ;;  %v420_v52 = vld [vmem:[#allocation4 + $0x890] sm:$0xff]  ;;  %v4186_v53 = vpack.c.bf16 %v425_v44, %v421_v43 }
  0xbf   :  { %1045 = vmatprep.mubr.f32.mxu1 %v101_v63  ;;  %v4002_v62 = vpack.c.bf16 %v391_v57, %v387_v56  ;;  %v386_v63 = vld [vmem:[#allocation4 + $0x780] sm:$0xff]  ;;  %v427_v55 = vld [vmem:[#allocation4 + $0x8c8] sm:$0xff]  ;;  %v429_v57 = vld [vmem:[#allocation4 + $0x8d8] sm:$0xff] }
  0xc0   :  { %3981 = vmatpush1.bf16.msra.mxu0 %v3980_v0  ;;  %v390_v0 = vld [vmem:[#allocation4 + $0x7a0] sm:$0xff]  ;;  %v431_v56 = vld [vmem:[#allocation4 + $0x8e8] sm:$0xff]  ;;  %v452_v44 = vld [vmem:[#allocation4 + $0x990] sm:$0xff] }
  0xc1   :  { %4149 = vmatpush1.bf16.msra.mxu1 %v4148_v1  ;;  %3983 = vmatprep.subr.bf16.mxu0 %v3982_v2  ;;  %v388_v1 = vld [vmem:[#allocation4 + $0x790] sm:$0xff]  ;;  %v4170_v2 = vpack.c.bf16 %v393_v59, %v389_v58  ;;  %v4004_v8 = vpack.c.bf16 %v390_v0, %v386_v63  ;;  %v107_v45 = vld [vmem:[%s6373_s0 + $0x48] sm:$0xff]  ;;  %v433_v58 = vld [vmem:[#allocation4 + $0x8f8] sm:$0xff]  ;;  %v4022_v63 = vpack.c.bf16 %v431_v56, %v427_v55 }
  0xc2   :  { %4151 = vmatprep.subr.bf16.mxu1 %v4150_v6  ;;  %v397_v6 = vld [vmem:[#allocation4 + $0x7d8] sm:$0xff]  ;;  %v4172_v9 = vpack.c.bf16 %v392_v3, %v388_v1  ;;  %v426_v0 = vld [vmem:[#allocation4 + $0x8c0] sm:$0xff]  ;;  %v4190_v3 = vpack.c.bf16 %v433_v58, %v429_v57  ;;  %v460_v58 = vld [vmem:[#allocation4 + $0x9d0] sm:$0xff] }
  0xc3   :  { %v113_v59 = vld [vmem:[%s6373_s0 + $0x78] sm:$0xff]  ;;  %v430_v1 = vld [vmem:[#allocation4 + $0x8e0] sm:$0xff] }
  0xc4   :  { %3985 = vmatpush1.bf16.msra.mxu0 %v3984_v12  ;;  %v398_v12 = vld [vmem:[#allocation4 + $0x7e0] sm:$0xff] }
  0xc5   :  { %4153 = vmatpush1.bf16.msra.mxu1 %v4152_v13  ;;  %3987 = vmatprep.subr.bf16.mxu0 %v3986_v14  ;;  %v396_v13 = vld [vmem:[#allocation4 + $0x7d0] sm:$0xff]  ;;  %v4174_v14 = vpack.c.bf16 %v401_v7, %v397_v6  ;;  %v4008_v20 = vpack.c.bf16 %v398_v12, %v394_v11  ;;  %v439_v6 = vld [vmem:[#allocation4 + $0x928] sm:$0xff]  ;;  %v437_v7 = vld [vmem:[#allocation4 + $0x918] sm:$0xff] }
  0xc6   :  { %4155 = vmatprep.subr.bf16.mxu1 %v4154_v18  ;;  %v405_v18 = vld [vmem:[#allocation4 + $0x818] sm:$0xff]  ;;  %v4176_v21 = vpack.c.bf16 %v400_v15, %v396_v13  ;;  %v4026_v13 = vpack.c.bf16 %v439_v6, %v435_v5  ;;  %v438_v15 = vld [vmem:[#allocation4 + $0x920] sm:$0xff] }
  0xc7   :  { %v118_v11 = vld [vmem:[%s6373_s0 + $0xa0] sm:$0xff] }
  0xc8   :  { %3989 = vmatpush1.bf16.msra.mxu0 %v3988_v24  ;;  %v406_v24 = vld [vmem:[#allocation4 + $0x820] sm:$0xff] }
  0xc9   :  { %4157 = vmatpush1.bf16.msra.mxu1 %v4156_v25  ;;  %3991 = vmatprep.subr.bf16.mxu0 %v3990_v26  ;;  %v404_v25 = vld [vmem:[#allocation4 + $0x810] sm:$0xff]  ;;  %v4178_v26 = vpack.c.bf16 %v409_v19, %v405_v18  ;;  %v4012_v33 = vpack.c.bf16 %v406_v24, %v402_v23  ;;  %v443_v19 = vld [vmem:[#allocation4 + $0x948] sm:$0xff]  ;;  %v454_v43 = vld [vmem:[#allocation4 + $0x9a0] sm:$0xff] }
  0xca   :  { %4159 = vmatprep.subr.bf16.mxu1 %v4158_v30  ;;  %v413_v30 = vld [vmem:[#allocation4 + $0x858] sm:$0xff]  ;;  %v4180_v34 = vpack.c.bf16 %v408_v27, %v404_v25  ;;  %v440_v18 = vld [vmem:[#allocation4 + $0x930] sm:$0xff]  ;;  %v458_v56 = vld [vmem:[#allocation4 + $0x9c0] sm:$0xff] }
  0xcb   :  { %v4182_v39 = vpack.c.bf16 %v417_v31, %v413_v30  ;;  %v125_v23 = vld [vmem:[%s6373_s0 + $0xd8] sm:$0xff]  ;;  %v124_v25 = vld [vmem:[%s6373_s0 + $0xd0] sm:$0xff]  ;;  %v462_v57 = vld [vmem:[#allocation4 + $0x9e0] sm:$0xff] }
  0xcc   :  { %3993 = vmatpush1.bf16.msra.mxu0 %v3992_v36  ;;  %v410_v36 = vld [vmem:[#allocation4 + $0x840] sm:$0xff]  ;;  %v444_v30 = vld [vmem:[#allocation4 + $0x950] sm:$0xff] }
  0xcd   :  { %4161 = vmatpush1.bf16.msra.mxu1 %v4160_v37  ;;  %3995 = vmatprep.subr.bf16.mxu0 %v3994_v38  ;;  %v414_v37 = vld [vmem:[#allocation4 + $0x860] sm:$0xff]  ;;  %v412_v38 = vld [vmem:[#allocation4 + $0x850] sm:$0xff] }
  0xce   :  { %4163 = vmatprep.subr.bf16.mxu1 %v4162_v42  ;;  %v423_v42 = vld [vmem:[#allocation4 + $0x8a8] sm:$0xff]  ;;  %v4016_v46 = vpack.c.bf16 %v414_v37, %v410_v36  ;;  %v457_v36 = vld [vmem:[#allocation4 + $0x9b8] sm:$0xff]  ;;  %v466_v6 = vld [vmem:[#allocation4 + $0xa00] sm:$0xff] }
  0xcf   :  { %v131_v37 = vld [vmem:[%s6373_s0 + $0x108] sm:$0xff] }
  0xd0   :  { %3997 = vmatpush1.bf16.msra.mxu0 %v3996_v48  ;;  %v4184_v48 = vpack.c.bf16 %v416_v40, %v412_v38  ;;  %v4032_v38 = vpack.c.bf16 %v446_v29, %v442_v28 }
  0xd1   :  { %4165 = vmatpush1.bf16.msra.mxu1 %v4164_v49  ;;  %3999 = vmatprep.subr.bf16.mxu0 %v3998_v50  ;;  %v4018_v49 = vpack.c.bf16 %v423_v42, %v419_v41  ;;  %v418_v50 = vld [vmem:[#allocation4 + $0x880] sm:$0xff] }
  0xd2   :  { %4167 = vmatprep.subr.bf16.mxu1 %v4166_v54  ;;  %v424_v54 = vld [vmem:[#allocation4 + $0x8b0] sm:$0xff]  ;;  %v450_v42 = vld [vmem:[#allocation4 + $0x980] sm:$0xff] }
  0xd4   :  { %4001 = vmatpush1.bf16.msra.mxu0 %v4000_v60  ;;  %v4020_v60 = vpack.c.bf16 %v422_v51, %v418_v50  ;;  %v465_v50 = vld [vmem:[#allocation4 + $0x9f8] sm:$0xff] }
  0xd5   :  { %4169 = vmatpush1.bf16.msra.mxu1 %v4168_v61  ;;  %4003 = vmatprep.subr.bf16.mxu0 %v4002_v62  ;;  %v112_v61 = vld [vmem:[%s6373_s0 + $0x70] sm:$0xff]  ;;  %v4188_v62 = vpack.c.bf16 %v424_v54, %v420_v52  ;;  %v137_v51 = vld [vmem:[%s6373_s0 + $0x138] sm:$0xff]  ;;  %v4036_v52 = vpack.c.bf16 %v454_v43, %v450_v42 }
  0xd6   :  { %4171 = vmatprep.subr.bf16.mxu1 %v4170_v2  ;;  %v428_v2 = vld [vmem:[#allocation4 + $0x8d0] sm:$0xff] }
  0xd7   :  { %v4192_v12 = vpack.c.bf16 %v432_v4, %v428_v2  ;;  %v4040_v2 = vpack.c.bf16 %v462_v57, %v458_v56 }
  0xd8   :  { %4005 = vmatpush1.bf16.msra.mxu0 %v4004_v8  ;;  %v441_v8 = vld [vmem:[#allocation4 + $0x938] sm:$0xff] }
  0xd9   :  { %4173 = vmatpush1.bf16.msra.mxu1 %v4172_v9  ;;  %4007 = vmatprep.subr.bf16.mxu0 %v4006_v10  ;;  %v119_v9 = vld [vmem:[%s6373_s0 + $0xa8] sm:$0xff]  ;;  %v4024_v10 = vpack.c.bf16 %v430_v1, %v426_v0  ;;  %v4194_v17 = vpack.c.bf16 %v441_v8, %v437_v7  ;;  %v473_v0 = vld [vmem:[#allocation4 + $0xa38] sm:$0xff]  ;;  %v468_v8 = vld [vmem:[#allocation4 + $0xa10] sm:$0xff] }
  0xda   :  { %4175 = vmatprep.subr.bf16.mxu1 %v4174_v14  ;;  %v434_v14 = vld [vmem:[#allocation4 + $0x900] sm:$0xff] }
  0xdb   :  { %v4028_v24 = vpack.c.bf16 %v438_v15, %v434_v14  ;;  %v143_v1 = vld [vmem:[%s6373_s0 + $0x168] sm:$0xff]  ;;  %v481_v14 = vld [vmem:[#allocation4 + $0xa78] sm:$0xff] }
  0xdc   :  { %4009 = vmatpush1.bf16.msra.mxu0 %v4008_v20  ;;  %v447_v20 = vld [vmem:[#allocation4 + $0x968] sm:$0xff]  ;;  %v470_v7 = vld [vmem:[#allocation4 + $0xa20] sm:$0xff] }
  0xdd   :  { %4177 = vmatpush1.bf16.msra.mxu1 %v4176_v21  ;;  %4011 = vmatprep.subr.bf16.mxu0 %v4010_v22  ;;  %v445_v21 = vld [vmem:[#allocation4 + $0x958] sm:$0xff]  ;;  %v4030_v27 = vpack.c.bf16 %v447_v20, %v443_v19  ;;  %v103_v15 = vld [vmem:[%s6373_s0 + $0x28] sm:$0xff] }
  0xde   :  { %4179 = vmatprep.subr.bf16.mxu1 %v4178_v26  ;;  %v449_v22 = vld [vmem:[#allocation4 + $0x978] sm:$0xff]  ;;  %v4196_v26 = vpack.c.bf16 %v440_v18, %v436_v16  ;;  %v4044_v16 = vpack.c.bf16 %v470_v7, %v466_v6  ;;  %v474_v19 = vld [vmem:[#allocation4 + $0xa40] sm:$0xff] }
  0xdf   :  { %707 = vmatmul.mubr.f32.vlgmr.msra.gmra.mrb[0].mxu0 %v100_v32  ;;  %v4198_v31 = vpack.c.bf16 %v449_v22, %v445_v21  ;;  %v478_v20 = vld [vmem:[#allocation4 + $0xa60] sm:$0xff]  ;;  %v476_v21 = vld [vmem:[#allocation4 + $0xa50] sm:$0xff] }
  0xe0   :  { %4013 = vmatpush1.bf16.msra.mxu0 %v4012_v33  ;;  %1046 = vmatmul.mubr.f32.vlgmr.msra.gmra.mrb[0].mxu1 %v100_v32  ;;  %v448_v32 = vld [vmem:[#allocation4 + $0x970] sm:$0xff]  ;;  %v451_v33 = vld [vmem:[#allocation4 + $0x988] sm:$0xff]  ;;  %v4048_v28 = vpack.c.bf16 %v478_v20, %v474_v19 }
  0xe1   :  { %4181 = vmatpush1.bf16.msra.mxu1 %v4180_v34  ;;  %4015 = vmatprep.subr.bf16.mxu0 %v4014_v35  ;;  %v455_v34 = vld [vmem:[#allocation4 + $0x9a8] sm:$0xff]  ;;  %v453_v35 = vld [vmem:[#allocation4 + $0x998] sm:$0xff]  ;;  %v4200_v40 = vpack.c.bf16 %v448_v32, %v444_v30  ;;  %v1249_v32 = vld [vmem:[#allocation6 + $0x20] sm:$0xff] }
  0xe2   :  { %4183 = vmatprep.subr.bf16.mxu1 %v4182_v39  ;;  %712 = vmatprep.mubr.f32.mxu0 %v107_v45  ;;  %v130_v39 = vld [vmem:[%s6373_s0 + $0x100] sm:$0xff]  ;;  %v4034_v41 = vpack.c.bf16 %v455_v34, %v451_v33  ;;  %v1247_v33 = vld [vmem:[#allocation6 + $0x10] sm:$0xff] }
  0xe3   :  { %1051 = vmatprep.mubr.f32.mxu1 %v107_v45  ;;  %713 = vmatmul.mubr.f32.gmra.mrb[2].mxu0 %v106_v47  ;;  %v4202_v45 = vpack.c.bf16 %v457_v36, %v453_v35  ;;  %v1251_v35 = vld [vmem:[#allocation6 + $0x30] sm:$0xff]  ;;  %v1254_v36 = vld [vmem:[#allocation6 + $0x48] sm:$0xff] }
  0xe4   :  { %4017 = vmatpush1.bf16.msra.mxu0 %v4016_v46  ;;  %1052 = vmatmul.mubr.f32.gmra.mrb[2].mxu1 %v106_v47  ;;  %v456_v46 = vld [vmem:[#allocation4 + $0x9b0] sm:$0xff]  ;;  %v459_v47 = vld [vmem:[#allocation4 + $0x9c8] sm:$0xff]  ;;  %v4388_v42 = vpack.c.bf16 %v1251_v35, %v1247_v33  ;;  %v126_v33 = vld [vmem:[%s6373_s0 + $0xe0] sm:$0xff] }
  0xe5   :  { %4185 = vmatpush1.bf16.msra.mxu1 %v4184_v48  ;;  %4019 = vmatprep.subr.bf16.mxu0 %v4018_v49  ;;  %v463_v48 = vld [vmem:[#allocation4 + $0x9e8] sm:$0xff]  ;;  %v461_v49 = vld [vmem:[#allocation4 + $0x9d8] sm:$0xff]  ;;  %v4204_v54 = vpack.c.bf16 %v456_v46, %v452_v44  ;;  %v1253_v44 = vld [vmem:[#allocation6 + $0x40] sm:$0xff] }
  0xe6   :  { %4187 = vmatprep.subr.bf16.mxu1 %v4186_v53  ;;  %718 = vmatprep.mubr.f32.mxu0 %v113_v59  ;;  %v136_v53 = vld [vmem:[%s6373_s0 + $0x130] sm:$0xff]  ;;  %v4038_v55 = vpack.c.bf16 %v463_v48, %v459_v47 }
  0xe7   :  { %1057 = vmatprep.mubr.f32.mxu1 %v113_v59  ;;  %719 = vmatmul.mubr.f32.gmra.mrb[4].mxu0 %v112_v61  ;;  %v4206_v59 = vpack.c.bf16 %v465_v50, %v461_v49  ;;  %v1255_v46 = vld [vmem:[#allocation6 + $0x50] sm:$0xff]  ;;  %v1262_v49 = vld [vmem:[#allocation6 + $0x88] sm:$0xff] }
  0xe8   :  { %4021 = vmatpush1.bf16.msra.mxu0 %v4020_v60  ;;  %1058 = vmatmul.mubr.f32.gmra.mrb[4].mxu1 %v112_v61  ;;  %v464_v60 = vld [vmem:[#allocation4 + $0x9f0] sm:$0xff]  ;;  %v467_v61 = vld [vmem:[#allocation4 + $0xa08] sm:$0xff] }
  0xe9   :  { %4189 = vmatpush1.bf16.msra.mxu1 %v4188_v62  ;;  %4023 = vmatprep.subr.bf16.mxu0 %v4022_v63  ;;  %v471_v62 = vld [vmem:[#allocation4 + $0xa28] sm:$0xff]  ;;  %v469_v63 = vld [vmem:[#allocation4 + $0xa18] sm:$0xff]  ;;  %v4208_v4 = vpack.c.bf16 %v464_v60, %v460_v58  ;;  %v1259_v48 = vld [vmem:[#allocation6 + $0x70] sm:$0xff] }
  0xea   :  { %4191 = vmatprep.subr.bf16.mxu1 %v4190_v3  ;;  %724 = vmatprep.mubr.f32.mxu0 %v119_v9  ;;  %v142_v3 = vld [vmem:[%s6373_s0 + $0x160] sm:$0xff]  ;;  %v4042_v5 = vpack.c.bf16 %v471_v62, %v467_v61  ;;  %v1266_v50 = vld [vmem:[#allocation6 + $0xa8] sm:$0xff]  ;;  %v4392_v56 = vpack.c.bf16 %v1259_v48, %v1255_v46  ;;  %v1263_v60 = vld [vmem:[#allocation6 + $0x90] sm:$0xff] }
  0xeb   :  { %1063 = vmatprep.mubr.f32.mxu1 %v119_v9  ;;  %725 = vmatmul.mubr.f32.gmra.mrb[6].mxu0 %v118_v11  ;;  %v4210_v9 = vpack.c.bf16 %v473_v0, %v469_v63  ;;  %v4226_v57 = vpack.c.bf16 %v1266_v50, %v1262_v49  ;;  %v1261_v58 = vld [vmem:[#allocation6 + $0x80] sm:$0xff]  ;;  %v1267_v62 = vld [vmem:[#allocation6 + $0xb0] sm:$0xff]  ;;  %v1270_v63 = vld [vmem:[#allocation6 + $0xc8] sm:$0xff] }
  0xec   :  { %4025 = vmatpush1.bf16.msra.mxu0 %v4024_v10  ;;  %1064 = vmatmul.mubr.f32.gmra.mrb[6].mxu1 %v118_v11  ;;  %v472_v10 = vld [vmem:[#allocation4 + $0xa30] sm:$0xff]  ;;  %v475_v11 = vld [vmem:[#allocation4 + $0xa48] sm:$0xff]  ;;  %v4396_v6 = vpack.c.bf16 %v1267_v62, %v1263_v60  ;;  %v1293_v50 = vld [vmem:[#allocation6 + $0x180] sm:$0xff] }
  0xed   :  { %4193 = vmatpush1.bf16.msra.mxu1 %v4192_v12  ;;  %4027 = vmatprep.subr.bf16.mxu0 %v4026_v13  ;;  %v479_v12 = vld [vmem:[#allocation4 + $0xa68] sm:$0xff]  ;;  %v477_v13 = vld [vmem:[#allocation4 + $0xa58] sm:$0xff] }
  0xee   :  { %4195 = vmatprep.subr.bf16.mxu1 %v4194_v17  ;;  %730 = vmatprep.mubr.f32.mxu0 %v125_v23  ;;  %v4212_v17 = vpack.c.bf16 %v472_v10, %v468_v8  ;;  %v4046_v18 = vpack.c.bf16 %v479_v12, %v475_v11  ;;  %v4214_v22 = vpack.c.bf16 %v481_v14, %v477_v13  ;;  %v1274_v0 = vld [vmem:[#allocation6 + $0xe8] sm:$0xff]  ;;  %v1269_v8 = vld [vmem:[#allocation6 + $0xc0] sm:$0xff]  ;;  %v1271_v10 = vld [vmem:[#allocation6 + $0xd0] sm:$0xff] }
  0xef   :  { %1069 = vmatprep.mubr.f32.mxu1 %v125_v23  ;;  %731 = vmatmul.mubr.f32.gmra.mrb[8].mxu0 %v124_v25  ;;  %v480_v23 = vld [vmem:[#allocation4 + $0xa70] sm:$0xff]  ;;  %v4230_v7 = vpack.c.bf16 %v1274_v0, %v1270_v63  ;;  %v1278_v13 = vld [vmem:[#allocation6 + $0x108] sm:$0xff]  ;;  %v1301_v0 = vld [vmem:[#allocation6 + $0x1c0] sm:$0xff] }
  0xf0   :  { %4029 = vmatpush1.bf16.msra.mxu0 %v4028_v24  ;;  %1070 = vmatmul.mubr.f32.gmra.mrb[8].mxu1 %v124_v25  ;;  %v1246_v24 = vld [vmem:[#allocation6 + $0x8] sm:$0xff]  ;;  %v4216_v29 = vpack.c.bf16 %v480_v23, %v476_v21  ;;  %v1275_v12 = vld [vmem:[#allocation6 + $0xf0] sm:$0xff]  ;;  %v1281_v23 = vld [vmem:[#allocation6 + $0x120] sm:$0xff] }
  0xf1   :  { %4197 = vmatpush1.bf16.msra.mxu1 %v4196_v26  ;;  %4031 = vmatprep.subr.bf16.mxu0 %v4030_v27  ;;  %v1250_v25 = vld [vmem:[#allocation6 + $0x28] sm:$0xff]  ;;  %v1248_v26 = vld [vmem:[#allocation6 + $0x18] sm:$0xff]  ;;  %v4400_v20 = vpack.c.bf16 %v1275_v12, %v1271_v10 }
  0xf2   :  { %4199 = vmatprep.subr.bf16.mxu1 %v4198_v31  ;;  %736 = vmatprep.mubr.f32.mxu0 %v131_v37  ;;  %v1252_v27 = vld [vmem:[#allocation6 + $0x38] sm:$0xff]  ;;  %v4218_v30 = vpack.c.bf16 %v1250_v25, %v1246_v24  ;;  %v1245_v31 = vld [vmem:[#allocation6] sm:$0xff]  ;;  %v1282_v14 = vld [vmem:[#allocation6 + $0x128] sm:$0xff] }
  0xf3   :  { %1075 = vmatprep.mubr.f32.mxu1 %v131_v37  ;;  %737 = vmatmul.mubr.f32.gmra.mrb[10].mxu0 %v130_v39  ;;  %v4386_v34 = vpack.c.bf16 %v1252_v27, %v1248_v26  ;;  %v1258_v37 = vld [vmem:[#allocation6 + $0x68] sm:$0xff]  ;;  %v4234_v21 = vpack.c.bf16 %v1282_v14, %v1278_v13  ;;  %v1279_v24 = vld [vmem:[#allocation6 + $0x110] sm:$0xff]  ;;  %v1309_v14 = vld [vmem:[#allocation6 + $0x200] sm:$0xff] }
  0xf4   :  { %4033 = vmatpush1.bf16.msra.mxu0 %v4032_v38  ;;  %1076 = vmatmul.mubr.f32.gmra.mrb[10].mxu1 %v130_v39  ;;  %v1256_v38 = vld [vmem:[#allocation6 + $0x58] sm:$0xff]  ;;  %v4222_v43 = vpack.c.bf16 %v1258_v37, %v1254_v36  ;;  %v120_v19 = vld [vmem:[%s6373_s0 + $0xb0] sm:$0xff]  ;;  %v1285_v36 = vld [vmem:[#allocation6 + $0x140] sm:$0xff] }
  0xf5   :  { %4201 = vmatpush1.bf16.msra.mxu1 %v4200_v40  ;;  %4035 = vmatprep.subr.bf16.mxu0 %v4034_v41  ;;  %v1260_v39 = vld [vmem:[#allocation6 + $0x78] sm:$0xff]  ;;  %v4220_v41 = vpack.c.bf16 %v1249_v32, %v1245_v31  ;;  %v1283_v26 = vld [vmem:[#allocation6 + $0x130] sm:$0xff]  ;;  %v1286_v27 = vld [vmem:[#allocation6 + $0x148] sm:$0xff] }
  0xf6   :  { %4203 = vmatprep.subr.bf16.mxu1 %v4202_v45  ;;  %742 = vmatprep.mubr.f32.mxu0 %v137_v51  ;;  %v102_v40 = vld [vmem:[%s6373_s0 + $0x20] sm:$0xff]  ;;  %v4390_v47 = vpack.c.bf16 %v1260_v39, %v1256_v38  ;;  %v127_v31 = vld [vmem:[%s6373_s0 + $0xe8] sm:$0xff]  ;;  %v1287_v38 = vld [vmem:[#allocation6 + $0x150] sm:$0xff] }
  0xf7   :  { %1081 = vmatprep.mubr.f32.mxu1 %v137_v51  ;;  %743 = vmatmul.mubr.f32.gmra.mrb[12].mxu0 %v136_v53  ;;  %v1257_v45 = vld [vmem:[#allocation6 + $0x60] sm:$0xff]  ;;  %v1264_v51 = vld [vmem:[#allocation6 + $0x98] sm:$0xff] }
  0xf8   :  { %4037 = vmatpush1.bf16.msra.mxu0 %v4036_v52  ;;  %1082 = vmatmul.mubr.f32.gmra.mrb[12].mxu1 %v136_v53  ;;  %v1268_v52 = vld [vmem:[#allocation6 + $0xb8] sm:$0xff]  ;;  %v1289_v37 = vld [vmem:[#allocation6 + $0x160] sm:$0xff] }
  0xf9   :  { %4205 = vmatpush1.bf16.msra.mxu1 %v4204_v54  ;;  %4039 = vmatprep.subr.bf16.mxu0 %v4038_v55  ;;  %v109_v53 = vld [vmem:[%s6373_s0 + $0x58] sm:$0xff]  ;;  %v4224_v54 = vpack.c.bf16 %v1257_v45, %v1253_v44  ;;  %v108_v55 = vld [vmem:[%s6373_s0 + $0x50] sm:$0xff]  ;;  %v4394_v61 = vpack.c.bf16 %v1268_v52, %v1264_v51  ;;  %v4240_v46 = vpack.c.bf16 %v1289_v37, %v1285_v36  ;;  %v1297_v51 = vld [vmem:[#allocation6 + $0x1a0] sm:$0xff] }
  0xfa   :  { %4207 = vmatprep.subr.bf16.mxu1 %v4206_v59  ;;  %748 = vmatprep.mubr.f32.mxu0 %v143_v1  ;;  %v1265_v59 = vld [vmem:[#allocation6 + $0xa0] sm:$0xff]  ;;  %v1300_v44 = vld [vmem:[#allocation6 + $0x1b8] sm:$0xff]  ;;  %v1295_v52 = vld [vmem:[#allocation6 + $0x190] sm:$0xff]  ;;  %v4244_v60 = vpack.c.bf16 %v1297_v51, %v1293_v50 }
  0xfb   :  { %1087 = vmatprep.mubr.f32.mxu1 %v143_v1  ;;  %749 = vmatmul.mubr.f32.gmra.mrb[14].mxu0 %v142_v3  ;;  %v1272_v1 = vld [vmem:[#allocation6 + $0xd8] sm:$0xff]  ;;  %v1333_v51 = vld [vmem:[#allocation6 + $0x2c0] sm:$0xff] }
  0xfc   :  { %4041 = vmatpush1.bf16.msra.mxu0 %v4040_v2  ;;  %1088 = vmatmul.mubr.f32.gmra.mrb[14].mxu1 %v142_v3  ;;  %v1276_v2 = vld [vmem:[#allocation6 + $0xf8] sm:$0xff]  ;;  %v115_v3 = vld [vmem:[%s6373_s0 + $0x88] sm:$0xff] }
  0xfd   :  { %4209 = vmatpush1.bf16.msra.mxu1 %v4208_v4  ;;  %4043 = vmatprep.subr.bf16.mxu0 %v4042_v5  ;;  %v4228_v4 = vpack.c.bf16 %v1265_v59, %v1261_v58  ;;  %v114_v5 = vld [vmem:[%s6373_s0 + $0x80] sm:$0xff]  ;;  %v4398_v11 = vpack.c.bf16 %v1276_v2, %v1272_v1  ;;  %v133_v45 = vld [vmem:[%s6373_s0 + $0x118] sm:$0xff]  ;;  %v139_v59 = vld [vmem:[%s6373_s0 + $0x148] sm:$0xff] }
  0xfe   :  { %4211 = vmatprep.subr.bf16.mxu1 %v4210_v9  ;;  %3732 = vmatprep.mubr.msk.f32.mxu0 %vm504_vm0, %v103_v15  ;;  %v1273_v9 = vld [vmem:[#allocation6 + $0xe0] sm:$0xff]  ;;  %v1308_v58 = vld [vmem:[#allocation6 + $0x1f8] sm:$0xff]  ;;  %v1303_v2 = vld [vmem:[#allocation6 + $0x1d0] sm:$0xff] }
  0xff   :  { %3740 = vmatprep.mubr.msk.f32.mxu1 %vm504_vm0, %v103_v15  ;;  %v1280_v15 = vld [vmem:[#allocation6 + $0x118] sm:$0xff]  ;;  %v1305_v1 = vld [vmem:[#allocation6 + $0x1e0] sm:$0xff] }
 0x100   :  { %4045 = vmatpush1.bf16.msra.mxu0 %v4044_v16  ;;  %v1284_v16 = vld [vmem:[#allocation6 + $0x138] sm:$0xff]  ;;  %v4248_v10 = vpack.c.bf16 %v1305_v1, %v1301_v0  ;;  %v1345_v0 = vld [vmem:[#allocation6 + $0x320] sm:$0xff]  ;;  %v1343_v1 = vld [vmem:[#allocation6 + $0x310] sm:$0xff] }
 0x101   :  { %4213 = vmatpush1.bf16.msra.mxu1 %v4212_v17  ;;  %4047 = vmatprep.subr.bf16.mxu0 %v4046_v18  ;;  %v121_v17 = vld [vmem:[%s6373_s0 + $0xb8] sm:$0xff]  ;;  %v4232_v18 = vpack.c.bf16 %v1273_v9, %v1269_v8  ;;  %v4402_v25 = vpack.c.bf16 %v1284_v16, %v1280_v15  ;;  %v1313_v15 = vld [vmem:[#allocation6 + $0x220] sm:$0xff] }
 0x102   :  { %4215 = vmatprep.subr.bf16.mxu1 %v4214_v22  ;;  %v1277_v22 = vld [vmem:[#allocation6 + $0x100] sm:$0xff]  ;;  %v1316_v8 = vld [vmem:[#allocation6 + $0x238] sm:$0xff]  ;;  %v1311_v16 = vld [vmem:[#allocation6 + $0x210] sm:$0xff] }
 0x103   :  { %v4236_v32 = vpack.c.bf16 %v1281_v23, %v1277_v22  ;;  %v5819_v9 = vld [vmem:[%s6373_s0 + $0x178] sm:$0xff] }
 0x104   :  { %4049 = vmatpush1.bf16.msra.mxu0 %v4048_v28  ;;  %v1290_v28 = vld [vmem:[#allocation6 + $0x168] sm:$0xff]  ;;  %v1324_v22 = vld [vmem:[#allocation6 + $0x278] sm:$0xff] }
 0x105   :  { %4217 = vmatpush1.bf16.msra.mxu1 %v4216_v29  ;;  %4219 = vmatprep.subr.bf16.mxu0 %v4218_v30  ;;  %v1288_v29 = vld [vmem:[#allocation6 + $0x158] sm:$0xff]  ;;  %v4238_v35 = vpack.c.bf16 %v1290_v28, %v1286_v27  ;;  %v1317_v27 = vld [vmem:[#allocation6 + $0x240] sm:$0xff] }
 0x106   :  { %4387 = vmatprep.subr.bf16.mxu1 %v4386_v34  ;;  %v1292_v30 = vld [vmem:[#allocation6 + $0x178] sm:$0xff]  ;;  %v4404_v34 = vpack.c.bf16 %v1283_v26, %v1279_v24  ;;  %v4252_v24 = vpack.c.bf16 %v1313_v15, %v1309_v14  ;;  %v1321_v28 = vld [vmem:[#allocation6 + $0x260] sm:$0xff]  ;;  %v1351_v14 = vld [vmem:[#allocation6 + $0x350] sm:$0xff] }
 0x107   :  { %820 = vmatmul.mubr.f32.vlgmr.msra.gmra.mrb[0].mxu0 %v102_v40  ;;  %v4406_v39 = vpack.c.bf16 %v1292_v30, %v1288_v29  ;;  %v1240_v23 = vld [vmem:[%s6373_s0 + $0x158] sm:$0xff]  ;;  %v4256_v36 = vpack.c.bf16 %v1321_v28, %v1317_v27 }
 0x108   :  { %1159 = vmatmul.mubr.f32.vlgmr.msra.gmra.mrb[0].mxu1 %v102_v40  ;;  %4221 = vmatpush1.bf16.msra.mxu0 %v4220_v41  ;;  %v1291_v40 = vld [vmem:[#allocation6 + $0x170] sm:$0xff]  ;;  %v1294_v41 = vld [vmem:[#allocation6 + $0x188] sm:$0xff] }
 0x109   :  { %4389 = vmatpush1.bf16.msra.mxu1 %v4388_v42  ;;  %4223 = vmatprep.subr.bf16.mxu0 %v4222_v43  ;;  %v1298_v42 = vld [vmem:[#allocation6 + $0x1a8] sm:$0xff]  ;;  %v1296_v43 = vld [vmem:[#allocation6 + $0x198] sm:$0xff]  ;;  %v4408_v48 = vpack.c.bf16 %v1291_v40, %v1287_v38  ;;  %v1319_v29 = vld [vmem:[#allocation6 + $0x250] sm:$0xff] }
 0x10a   :  { %4391 = vmatprep.subr.bf16.mxu1 %v4390_v47  ;;  %3733 = vmatprep.mubr.msk.f32.mxu0 %vm504_vm0, %v109_v53  ;;  %v132_v47 = vld [vmem:[%s6373_s0 + $0x110] sm:$0xff]  ;;  %v4242_v49 = vpack.c.bf16 %v1298_v42, %v1294_v41  ;;  %v1329_v40 = vld [vmem:[#allocation6 + $0x2a0] sm:$0xff] }
 0x10b   :  { %3741 = vmatprep.mubr.msk.f32.mxu1 %vm504_vm0, %v109_v53  ;;  %826 = vmatmul.mubr.f32.gmra.mrb[2].mxu0 %v108_v55  ;;  %v4410_v53 = vpack.c.bf16 %v1300_v44, %v1296_v43  ;;  %v1327_v41 = vld [vmem:[#allocation6 + $0x290] sm:$0xff]  ;;  %v1334_v44 = vld [vmem:[#allocation6 + $0x2c8] sm:$0xff] }
 0x10c   :  { %4225 = vmatpush1.bf16.msra.mxu0 %v4224_v54  ;;  %1165 = vmatmul.mubr.f32.gmra.mrb[2].mxu1 %v108_v55  ;;  %v1299_v54 = vld [vmem:[#allocation6 + $0x1b0] sm:$0xff]  ;;  %v1302_v55 = vld [vmem:[#allocation6 + $0x1c8] sm:$0xff] }
 0x10d   :  { %4393 = vmatpush1.bf16.msra.mxu1 %v4392_v56  ;;  %4227 = vmatprep.subr.bf16.mxu0 %v4226_v57  ;;  %v1306_v56 = vld [vmem:[#allocation6 + $0x1e8] sm:$0xff]  ;;  %v1304_v57 = vld [vmem:[#allocation6 + $0x1d8] sm:$0xff]  ;;  %v4412_v62 = vpack.c.bf16 %v1299_v54, %v1295_v52  ;;  %v1331_v43 = vld [vmem:[#allocation6 + $0x2b0] sm:$0xff] }
 0x10e   :  { %4395 = vmatprep.subr.bf16.mxu1 %v4394_v61  ;;  %3734 = vmatprep.mubr.msk.f32.mxu0 %vm504_vm0, %v115_v3  ;;  %v138_v61 = vld [vmem:[%s6373_s0 + $0x140] sm:$0xff]  ;;  %v4246_v63 = vpack.c.bf16 %v1306_v56, %v1302_v55  ;;  %v1339_v55 = vld [vmem:[#allocation6 + $0x2f0] sm:$0xff]  ;;  %v1342_v56 = vld [vmem:[#allocation6 + $0x308] sm:$0xff] }
 0x10f   :  { %3742 = vmatprep.mubr.msk.f32.mxu1 %vm504_vm0, %v115_v3  ;;  %832 = vmatmul.mubr.f32.gmra.mrb[4].mxu0 %v114_v5  ;;  %v4414_v3 = vpack.c.bf16 %v1308_v58, %v1304_v57  ;;  %v1337_v52 = vld [vmem:[#allocation6 + $0x2e0] sm:$0xff]  ;;  %v1346_v57 = vld [vmem:[#allocation6 + $0x328] sm:$0xff]  ;;  %v1344_v58 = vld [vmem:[#allocation6 + $0x318] sm:$0xff] }
 0x110   :  { %4229 = vmatpush1.bf16.msra.mxu0 %v4228_v4  ;;  %1171 = vmatmul.mubr.f32.gmra.mrb[4].mxu1 %v114_v5  ;;  %v1307_v4 = vld [vmem:[#allocation6 + $0x1f0] sm:$0xff]  ;;  %v1310_v5 = vld [vmem:[#allocation6 + $0x208] sm:$0xff] }
 0x111   :  { %4397 = vmatpush1.bf16.msra.mxu1 %v4396_v6  ;;  %4231 = vmatprep.subr.bf16.mxu0 %v4230_v7  ;;  %v1314_v6 = vld [vmem:[#allocation6 + $0x228] sm:$0xff]  ;;  %v1312_v7 = vld [vmem:[#allocation6 + $0x218] sm:$0xff]  ;;  %v4416_v12 = vpack.c.bf16 %v1307_v4, %v1303_v2  ;;  %v1363_v28 = vld [vmem:[#allocation6 + $0x3b0] sm:$0xff] }
 0x112   :  { %4399 = vmatprep.subr.bf16.mxu1 %v4398_v11  ;;  %3735 = vmatprep.mubr.msk.f32.mxu0 %vm504_vm0, %v121_v17  ;;  %v144_v11 = vld [vmem:[%s6373_s0 + $0x170] sm:$0xff]  ;;  %v4250_v13 = vpack.c.bf16 %v1314_v6, %v1310_v5  ;;  %v1352_v6 = vld [vmem:[#allocation6 + $0x358] sm:$0xff] }
 0x113   :  { %3743 = vmatprep.mubr.msk.f32.mxu1 %vm504_vm0, %v121_v17  ;;  %838 = vmatmul.mubr.f32.gmra.mrb[6].mxu0 %v120_v19  ;;  %v4418_v17 = vpack.c.bf16 %v1316_v8, %v1312_v7  ;;  %v1350_v4 = vld [vmem:[#allocation6 + $0x348] sm:$0xff]  ;;  %v1356_v7 = vld [vmem:[#allocation6 + $0x378] sm:$0xff] }
 0x114   :  { %4233 = vmatpush1.bf16.msra.mxu0 %v4232_v18  ;;  %1177 = vmatmul.mubr.f32.gmra.mrb[6].mxu1 %v120_v19  ;;  %v1315_v18 = vld [vmem:[#allocation6 + $0x230] sm:$0xff]  ;;  %v1318_v19 = vld [vmem:[#allocation6 + $0x248] sm:$0xff]  ;;  %v4438_v15 = vpack.c.bf16 %v1356_v7, %v1352_v6 }
 0x115   :  { %4401 = vmatpush1.bf16.msra.mxu1 %v4400_v20  ;;  %4235 = vmatprep.subr.bf16.mxu0 %v4234_v21  ;;  %v1322_v20 = vld [vmem:[#allocation6 + $0x268] sm:$0xff]  ;;  %v1320_v21 = vld [vmem:[#allocation6 + $0x258] sm:$0xff] }
 0x116   :  { %4403 = vmatprep.subr.bf16.mxu1 %v4402_v25  ;;  %3736 = vmatprep.mubr.msk.f32.mxu0 %vm504_vm0, %v127_v31  ;;  %v4420_v25 = vpack.c.bf16 %v1315_v18, %v1311_v16  ;;  %v4254_v26 = vpack.c.bf16 %v1322_v20, %v1318_v19  ;;  %v4422_v30 = vpack.c.bf16 %v1324_v22, %v1320_v21  ;;  %v1354_v5 = vld [vmem:[#allocation6 + $0x368] sm:$0xff]  ;;  %v1355_v16 = vld [vmem:[#allocation6 + $0x370] sm:$0xff]  ;;  %v1360_v19 = vld [vmem:[#allocation6 + $0x398] sm:$0xff] }
 0x117   :  { %3744 = vmatprep.mubr.msk.f32.mxu1 %vm504_vm0, %v127_v31  ;;  %844 = vmatmul.mubr.f32.gmra.mrb[8].mxu0 %v126_v33  ;;  %v1323_v31 = vld [vmem:[#allocation6 + $0x270] sm:$0xff]  ;;  %v1362_v18 = vld [vmem:[#allocation6 + $0x3a8] sm:$0xff]  ;;  %v1364_v20 = vld [vmem:[#allocation6 + $0x3b8] sm:$0xff]  ;;  %v4440_v22 = vpack.c.bf16 %v1355_v16, %v1351_v14 }
 0x118   :  { %4237 = vmatpush1.bf16.msra.mxu0 %v4236_v32  ;;  %1183 = vmatmul.mubr.f32.gmra.mrb[8].mxu1 %v126_v33  ;;  %v1326_v32 = vld [vmem:[#allocation6 + $0x288] sm:$0xff]  ;;  %v4424_v37 = vpack.c.bf16 %v1323_v31, %v1319_v29  ;;  %v4442_v27 = vpack.c.bf16 %v1364_v20, %v1360_v19  ;;  %v1368_v31 = vld [vmem:[#allocation6 + $0x3d8] sm:$0xff] }
 0x119   :  { %4405 = vmatpush1.bf16.msra.mxu1 %v4404_v34  ;;  %4239 = vmatprep.subr.bf16.mxu0 %v4238_v35  ;;  %v1330_v33 = vld [vmem:[#allocation6 + $0x2a8] sm:$0xff]  ;;  %v1328_v34 = vld [vmem:[#allocation6 + $0x298] sm:$0xff] }
 0x11a   :  { %4407 = vmatprep.subr.bf16.mxu1 %v4406_v39  ;;  %3737 = vmatprep.mubr.msk.f32.mxu0 %vm504_vm0, %v133_v45  ;;  %v1332_v35 = vld [vmem:[#allocation6 + $0x2b8] sm:$0xff]  ;;  %v4258_v38 = vpack.c.bf16 %v1330_v33, %v1326_v32  ;;  %v1325_v39 = vld [vmem:[#allocation6 + $0x280] sm:$0xff]  ;;  %v1366_v29 = vld [vmem:[#allocation6 + $0x3c8] sm:$0xff] }
 0x11b   :  { %3745 = vmatprep.mubr.msk.f32.mxu1 %vm504_vm0, %v133_v45  ;;  %850 = vmatmul.mubr.f32.gmra.mrb[10].mxu0 %v132_v47  ;;  %v4426_v42 = vpack.c.bf16 %v1332_v35, %v1328_v34  ;;  %v1338_v45 = vld [vmem:[#allocation6 + $0x2e8] sm:$0xff]  ;;  %v1372_v32 = vld [vmem:[#allocation6 + $0x3f8] sm:$0xff] }
 0x11c   :  { %4241 = vmatpush1.bf16.msra.mxu0 %v4240_v46  ;;  %1189 = vmatmul.mubr.f32.gmra.mrb[10].mxu1 %v132_v47  ;;  %v1336_v46 = vld [vmem:[#allocation6 + $0x2d8] sm:$0xff]  ;;  %v4262_v50 = vpack.c.bf16 %v1338_v45, %v1334_v44  ;;  %v1242_v6 = vld [vmem:[%s6373_s0 + $0x168] sm:$0xff] }
 0x11d   :  { %4409 = vmatpush1.bf16.msra.mxu1 %v4408_v48  ;;  %4243 = vmatprep.subr.bf16.mxu0 %v4242_v49  ;;  %v1340_v47 = vld [vmem:[#allocation6 + $0x2f8] sm:$0xff]  ;;  %v4260_v48 = vpack.c.bf16 %v1329_v40, %v1325_v39  ;;  %v4428_v49 = vpack.c.bf16 %v1331_v43, %v1327_v41  ;;  %v4446_v39 = vpack.c.bf16 %v1372_v32, %v1368_v31  ;;  %v1371_v40 = vld [vmem:[#allocation6 + $0x3f0] sm:$0xff]  ;;  %v1374_v41 = vld [vmem:[#allocation6 + $0x408] sm:$0xff] }
 0x11e   :  { %4411 = vmatprep.subr.bf16.mxu1 %v4410_v53  ;;  %3738 = vmatprep.mubr.msk.f32.mxu0 %vm504_vm0, %v139_v59  ;;  %v1335_v53 = vld [vmem:[#allocation6 + $0x2d0] sm:$0xff]  ;;  %v4430_v54 = vpack.c.bf16 %v1340_v47, %v1336_v46  ;;  %v1376_v43 = vld [vmem:[#allocation6 + $0x418] sm:$0xff]  ;;  %v1398_v16 = vld [vmem:[#allocation6 + $0x4c8] sm:$0xff] }
 0x11f   :  { %3746 = vmatprep.mubr.msk.f32.mxu1 %vm504_vm0, %v139_v59  ;;  %856 = vmatmul.mubr.f32.gmra.mrb[12].mxu0 %v138_v61  ;;  %v1348_v59 = vld [vmem:[#allocation6 + $0x338] sm:$0xff] }
 0x120   :  { %4245 = vmatpush1.bf16.msra.mxu0 %v4244_v60  ;;  %1195 = vmatmul.mubr.f32.gmra.mrb[12].mxu1 %v138_v61  ;;  %v4264_v60 = vpack.c.bf16 %v1337_v52, %v1333_v51  ;;  %v4432_v61 = vpack.c.bf16 %v1339_v55, %v1335_v53  ;;  %v4434_v2 = vpack.c.bf16 %v1348_v59, %v1344_v58  ;;  %v1380_v44 = vld [vmem:[#allocation6 + $0x438] sm:$0xff]  ;;  %v1379_v52 = vld [vmem:[#allocation6 + $0x430] sm:$0xff]  ;;  %v1382_v53 = vld [vmem:[#allocation6 + $0x448] sm:$0xff] }
 0x121   :  { %4413 = vmatpush1.bf16.msra.mxu1 %v4412_v62  ;;  %4247 = vmatprep.subr.bf16.mxu0 %v4246_v63  ;;  %v4266_v62 = vpack.c.bf16 %v1346_v57, %v1342_v56  ;;  %v1341_v63 = vld [vmem:[#allocation6 + $0x300] sm:$0xff]  ;;  %v4450_v51 = vpack.c.bf16 %v1380_v44, %v1376_v43  ;;  %v1384_v55 = vld [vmem:[#allocation6 + $0x458] sm:$0xff]  ;;  %v1239_v57 = vld [vmem:[%s6373_s0 + $0x150] sm:$0xff] }
 0x122   :  { %4415 = vmatprep.subr.bf16.mxu1 %v4414_v3  ;;  %3739 = vmatprep.mubr.msk.f32.mxu0 %vm504_vm0, %v5819_v9  ;;  %v1347_v3 = vld [vmem:[#allocation6 + $0x330] sm:$0xff]  ;;  %v4268_v8 = vpack.c.bf16 %v1345_v0, %v1341_v63  ;;  %v1388_v56 = vld [vmem:[#allocation6 + $0x478] sm:$0xff] }
 0x123   :  { %3747 = vmatprep.mubr.msk.f32.mxu1 %vm504_vm0, %v5819_v9  ;;  %862 = vmatmul.mubr.f32.gmra.mrb[14].mxu0 %v144_v11  ;;  %v1383_v63 = vld [vmem:[#allocation6 + $0x450] sm:$0xff]  ;;  %v4454_v0 = vpack.c.bf16 %v1388_v56, %v1384_v55  ;;  %v1404_v19 = vld [vmem:[#allocation6 + $0x4f8] sm:$0xff] }
 0x124   :  { %4249 = vmatpush1.bf16.msra.mxu0 %v4248_v10  ;;  %1201 = vmatmul.mubr.f32.gmra.mrb[14].mxu1 %v144_v11  ;;  %v4436_v10 = vpack.c.bf16 %v1347_v3, %v1343_v1  ;;  %v4270_v11 = vpack.c.bf16 %v1354_v5, %v1350_v4  ;;  %v1387_v1 = vld [vmem:[#allocation6 + $0x470] sm:$0xff]  ;;  %v1394_v3 = vld [vmem:[#allocation6 + $0x4a8] sm:$0xff]  ;;  %v1392_v4 = vld [vmem:[#allocation6 + $0x498] sm:$0xff] }
 0x125   :  { %4417 = vmatpush1.bf16.msra.mxu1 %v4416_v12  ;;  %4251 = vmatprep.subr.bf16.mxu0 %v4250_v13  ;;  %v1349_v12 = vld [vmem:[#allocation6 + $0x340] sm:$0xff]  ;;  %v1396_v5 = vld [vmem:[#allocation6 + $0x4b8] sm:$0xff] }
 0x126   :  { %4419 = vmatprep.subr.bf16.mxu1 %v4418_v17  ;;  %1670 = vmatprep.mubr.f32.mxu0 %v1240_v23  ;;  %v1353_v13 = vld [vmem:[#allocation6 + $0x360] sm:$0xff]  ;;  %v1358_v17 = vld [vmem:[#allocation6 + $0x388] sm:$0xff]  ;;  %v4458_v14 = vpack.c.bf16 %v1396_v5, %v1392_v4  ;;  %v1412_v31 = vld [vmem:[#allocation6 + $0x538] sm:$0xff] }
 0x127   :  { %1883 = vmatprep.mubr.f32.mxu1 %v1240_v23  ;;  %v4272_v21 = vpack.c.bf16 %v1353_v13, %v1349_v12  ;;  %v4274_v23 = vpack.c.bf16 %v1362_v18, %v1358_v17  ;;  %v1393_v12 = vld [vmem:[#allocation6 + $0x4a0] sm:$0xff]  ;;  %v1391_v13 = vld [vmem:[#allocation6 + $0x490] sm:$0xff]  ;;  %v1402_v17 = vld [vmem:[#allocation6 + $0x4e8] sm:$0xff] }
 0x128   :  { %4253 = vmatpush1.bf16.msra.mxu0 %v4252_v24  ;;  %v1357_v24 = vld [vmem:[#allocation6 + $0x380] sm:$0xff]  ;;  %v1400_v18 = vld [vmem:[#allocation6 + $0x4d8] sm:$0xff] }
 0x129   :  { %4421 = vmatpush1.bf16.msra.mxu1 %v4420_v25  ;;  %4255 = vmatprep.subr.bf16.mxu0 %v4254_v26  ;;  %v1361_v25 = vld [vmem:[#allocation6 + $0x3a0] sm:$0xff]  ;;  %v1359_v26 = vld [vmem:[#allocation6 + $0x390] sm:$0xff]  ;;  %v1420_v43 = vld [vmem:[#allocation6 + $0x578] sm:$0xff] }
 0x12a   :  { %4423 = vmatprep.subr.bf16.mxu1 %v4422_v30  ;;  %v1370_v30 = vld [vmem:[#allocation6 + $0x3e8] sm:$0xff]  ;;  %v4276_v33 = vpack.c.bf16 %v1361_v25, %v1357_v24  ;;  %v4444_v34 = vpack.c.bf16 %v1363_v28, %v1359_v26  ;;  %v1401_v24 = vld [vmem:[#allocation6 + $0x4e0] sm:$0xff]  ;;  %v1399_v25 = vld [vmem:[#allocation6 + $0x4d0] sm:$0xff]  ;;  %v4462_v26 = vpack.c.bf16 %v1404_v19, %v1400_v18 }
 0x12b   :  { %v4278_v35 = vpack.c.bf16 %v1370_v30, %v1366_v29  ;;  %v1406_v28 = vld [vmem:[#allocation6 + $0x508] sm:$0xff]  ;;  %v1408_v30 = vld [vmem:[#allocation6 + $0x518] sm:$0xff] }
 0x12c   :  { %4257 = vmatpush1.bf16.msra.mxu0 %v4256_v36  ;;  %v1365_v36 = vld [vmem:[#allocation6 + $0x3c0] sm:$0xff]  ;;  %v1410_v29 = vld [vmem:[#allocation6 + $0x528] sm:$0xff]  ;;  %v1428_v55 = vld [vmem:[#allocation6 + $0x5b8] sm:$0xff] }
 0x12d   :  { %4425 = vmatpush1.bf16.msra.mxu1 %v4424_v37  ;;  %4259 = vmatprep.subr.bf16.mxu0 %v4258_v38  ;;  %v1369_v37 = vld [vmem:[#allocation6 + $0x3e0] sm:$0xff]  ;;  %v1367_v38 = vld [vmem:[#allocation6 + $0x3d0] sm:$0xff] }
 0x12e   :  { %4427 = vmatprep.subr.bf16.mxu1 %v4426_v42  ;;  %v1378_v42 = vld [vmem:[#allocation6 + $0x428] sm:$0xff]  ;;  %v4280_v45 = vpack.c.bf16 %v1369_v37, %v1365_v36  ;;  %v4448_v46 = vpack.c.bf16 %v1371_v40, %v1367_v38  ;;  %v1409_v36 = vld [vmem:[#allocation6 + $0x520] sm:$0xff]  ;;  %v1407_v37 = vld [vmem:[#allocation6 + $0x510] sm:$0xff]  ;;  %v4466_v38 = vpack.c.bf16 %v1412_v31, %v1408_v30 }
 0x12f   :  { %v4282_v47 = vpack.c.bf16 %v1378_v42, %v1374_v41  ;;  %v1414_v40 = vld [vmem:[#allocation6 + $0x548] sm:$0xff]  ;;  %v1416_v42 = vld [vmem:[#allocation6 + $0x558] sm:$0xff] }
 0x130   :  { %4261 = vmatpush1.bf16.msra.mxu0 %v4260_v48  ;;  %v1373_v48 = vld [vmem:[#allocation6 + $0x400] sm:$0xff]  ;;  %v1418_v41 = vld [vmem:[#allocation6 + $0x568] sm:$0xff] }
 0x131   :  { %4429 = vmatpush1.bf16.msra.mxu1 %v4428_v49  ;;  %4263 = vmatprep.subr.bf16.mxu0 %v4262_v50  ;;  %v1377_v49 = vld [vmem:[#allocation6 + $0x420] sm:$0xff]  ;;  %v1375_v50 = vld [vmem:[#allocation6 + $0x410] sm:$0xff] }
 0x132   :  { %4431 = vmatprep.subr.bf16.mxu1 %v4430_v54  ;;  %v1386_v54 = vld [vmem:[#allocation6 + $0x468] sm:$0xff]  ;;  %v4284_v58 = vpack.c.bf16 %v1377_v49, %v1373_v48  ;;  %v4452_v59 = vpack.c.bf16 %v1379_v52, %v1375_v50  ;;  %v1417_v48 = vld [vmem:[#allocation6 + $0x560] sm:$0xff]  ;;  %v1415_v49 = vld [vmem:[#allocation6 + $0x550] sm:$0xff]  ;;  %v4470_v50 = vpack.c.bf16 %v1420_v43, %v1416_v42 }
 0x133   :  { %v1422_v52 = vld [vmem:[#allocation6 + $0x588] sm:$0xff] }
 0x134   :  { %4265 = vmatpush1.bf16.msra.mxu0 %v4264_v60  ;;  %v4286_v60 = vpack.c.bf16 %v1386_v54, %v1382_v53  ;;  %v1426_v53 = vld [vmem:[#allocation6 + $0x5a8] sm:$0xff]  ;;  %v1424_v54 = vld [vmem:[#allocation6 + $0x598] sm:$0xff] }
 0x135   :  { %4433 = vmatpush1.bf16.msra.mxu1 %v4432_v61  ;;  %4267 = vmatprep.subr.bf16.mxu0 %v4266_v62  ;;  %v1381_v61 = vld [vmem:[#allocation6 + $0x440] sm:$0xff] }
 0x136   :  { %4435 = vmatprep.subr.bf16.mxu1 %v4434_v2  ;;  %v1385_v62 = vld [vmem:[#allocation6 + $0x460] sm:$0xff]  ;;  %v1390_v2 = vld [vmem:[#allocation6 + $0x488] sm:$0xff] }
 0x137   :  { %v4288_v7 = vpack.c.bf16 %v1385_v62, %v1381_v61  ;;  %v1423_v61 = vld [vmem:[#allocation6 + $0x590] sm:$0xff]  ;;  %v4474_v62 = vpack.c.bf16 %v1428_v55, %v1424_v54 }
 0x138   :  { %4269 = vmatpush1.bf16.msra.mxu0 %v4268_v8  ;;  %v4456_v8 = vpack.c.bf16 %v1387_v1, %v1383_v63  ;;  %v1427_v63 = vld [vmem:[#allocation6 + $0x5b0] sm:$0xff]  ;;  %v1434_v1 = vld [vmem:[#allocation6 + $0x5e8] sm:$0xff] }
 0x139   :  { %4437 = vmatpush1.bf16.msra.mxu1 %v4436_v10  ;;  %4271 = vmatprep.subr.bf16.mxu0 %v4270_v11  ;;  %v4290_v10 = vpack.c.bf16 %v1394_v3, %v1390_v2  ;;  %v1389_v11 = vld [vmem:[#allocation6 + $0x480] sm:$0xff]  ;;  %v1432_v2 = vld [vmem:[#allocation6 + $0x5d8] sm:$0xff]  ;;  %v4476_v5 = vpack.c.bf16 %v1427_v63, %v1423_v61  ;;  %v1470_v61 = vld [vmem:[#allocation6 + $0x708] sm:$0xff] }
 0x13a   :  { %4439 = vmatprep.subr.bf16.mxu1 %v4438_v15  ;;  %v1395_v15 = vld [vmem:[#allocation6 + $0x4b0] sm:$0xff]  ;;  %v4292_v20 = vpack.c.bf16 %v1393_v12, %v1389_v11  ;;  %v1436_v3 = vld [vmem:[#allocation6 + $0x5f8] sm:$0xff] }
 0x13b   :  { %v4478_v11 = vpack.c.bf16 %v1436_v3, %v1432_v2  ;;  %v1435_v12 = vld [vmem:[#allocation6 + $0x5f0] sm:$0xff]  ;;  %v1472_v63 = vld [vmem:[#allocation6 + $0x718] sm:$0xff] }
 0x13c   :  { %4273 = vmatpush1.bf16.msra.mxu0 %v4272_v21  ;;  %v4460_v21 = vpack.c.bf16 %v1395_v15, %v1391_v13  ;;  %v1438_v13 = vld [vmem:[#allocation6 + $0x608] sm:$0xff]  ;;  %v1440_v15 = vld [vmem:[#allocation6 + $0x618] sm:$0xff] }
 0x13d   :  { %4441 = vmatpush1.bf16.msra.mxu1 %v4440_v22  ;;  %4275 = vmatprep.subr.bf16.mxu0 %v4274_v23  ;;  %v4294_v22 = vpack.c.bf16 %v1402_v17, %v1398_v16  ;;  %v1397_v23 = vld [vmem:[#allocation6 + $0x4c0] sm:$0xff]  ;;  %v1444_v16 = vld [vmem:[#allocation6 + $0x638] sm:$0xff] }
 0x13e   :  { %4443 = vmatprep.subr.bf16.mxu1 %v4442_v27  ;;  %v1403_v27 = vld [vmem:[#allocation6 + $0x4f0] sm:$0xff]  ;;  %v4296_v32 = vpack.c.bf16 %v1401_v24, %v1397_v23  ;;  %v4482_v23 = vpack.c.bf16 %v1444_v16, %v1440_v15 }
 0x13f   :  { %v1443_v24 = vld [vmem:[#allocation6 + $0x630] sm:$0xff] }
 0x140   :  { %4277 = vmatpush1.bf16.msra.mxu0 %v4276_v33  ;;  %v4464_v33 = vpack.c.bf16 %v1403_v27, %v1399_v25  ;;  %v1446_v25 = vld [vmem:[#allocation6 + $0x648] sm:$0xff]  ;;  %v1448_v27 = vld [vmem:[#allocation6 + $0x658] sm:$0xff] }
 0x141   :  { %4445 = vmatpush1.bf16.msra.mxu1 %v4444_v34  ;;  %4279 = vmatprep.subr.bf16.mxu0 %v4278_v35  ;;  %v4298_v34 = vpack.c.bf16 %v1410_v29, %v1406_v28  ;;  %v1405_v35 = vld [vmem:[#allocation6 + $0x500] sm:$0xff]  ;;  %v1452_v28 = vld [vmem:[#allocation6 + $0x678] sm:$0xff] }
 0x142   :  { %4447 = vmatprep.subr.bf16.mxu1 %v4446_v39  ;;  %v1411_v39 = vld [vmem:[#allocation6 + $0x530] sm:$0xff]  ;;  %v4300_v44 = vpack.c.bf16 %v1409_v36, %v1405_v35  ;;  %v4486_v35 = vpack.c.bf16 %v1452_v28, %v1448_v27 }
 0x143   :  { %v1451_v36 = vld [vmem:[#allocation6 + $0x670] sm:$0xff] }
 0x144   :  { %4281 = vmatpush1.bf16.msra.mxu0 %v4280_v45  ;;  %v4468_v45 = vpack.c.bf16 %v1411_v39, %v1407_v37  ;;  %v1454_v37 = vld [vmem:[#allocation6 + $0x688] sm:$0xff]  ;;  %v1456_v39 = vld [vmem:[#allocation6 + $0x698] sm:$0xff] }
 0x145   :  { %4449 = vmatpush1.bf16.msra.mxu1 %v4448_v46  ;;  %4283 = vmatprep.subr.bf16.mxu0 %v4282_v47  ;;  %v4302_v46 = vpack.c.bf16 %v1418_v41, %v1414_v40  ;;  %v1413_v47 = vld [vmem:[#allocation6 + $0x540] sm:$0xff]  ;;  %v1460_v40 = vld [vmem:[#allocation6 + $0x6b8] sm:$0xff] }
 0x146   :  { %4451 = vmatprep.subr.bf16.mxu1 %v4450_v51  ;;  %v1419_v51 = vld [vmem:[#allocation6 + $0x570] sm:$0xff]  ;;  %v4304_v56 = vpack.c.bf16 %v1417_v48, %v1413_v47  ;;  %v4490_v47 = vpack.c.bf16 %v1460_v40, %v1456_v39 }
 0x147   :  { %1671 = vmatmul.mubr.f32.vlgmr.msra.gmra.mrb[16].mxu0 %v1239_v57  ;;  %v1459_v48 = vld [vmem:[#allocation6 + $0x6b0] sm:$0xff] }
 0x148   :  { %4285 = vmatpush1.bf16.msra.mxu0 %v4284_v58  ;;  %1884 = vmatmul.mubr.f32.vlgmr.msra.gmra.mrb[16].mxu1 %v1239_v57  ;;  %v4472_v57 = vpack.c.bf16 %v1419_v51, %v1415_v49  ;;  %v4306_v58 = vpack.c.bf16 %v1426_v53, %v1422_v52  ;;  %v1462_v49 = vld [vmem:[#allocation6 + $0x6c8] sm:$0xff]  ;;  %v1464_v51 = vld [vmem:[#allocation6 + $0x6d8] sm:$0xff] }
 0x149   :  { %4453 = vmatpush1.bf16.msra.mxu1 %v4452_v59  ;;  %4287 = vmatprep.subr.bf16.mxu0 %v4286_v60  ;;  %v1421_v59 = vld [vmem:[#allocation6 + $0x580] sm:$0xff]  ;;  %v1468_v52 = vld [vmem:[#allocation6 + $0x6f8] sm:$0xff] }
 0x14a   :  { %4455 = vmatprep.subr.bf16.mxu1 %v4454_v0  ;;  %1741 = vmatprep.mubr.f32.mxu0 %v1242_v6  ;;  %v1425_v60 = vld [vmem:[#allocation6 + $0x5a0] sm:$0xff]  ;;  %v1430_v0 = vld [vmem:[#allocation6 + $0x5c8] sm:$0xff] }
 0x14b   :  { %1954 = vmatprep.mubr.f32.mxu1 %v1242_v6  ;;  %v4308_v4 = vpack.c.bf16 %v1425_v60, %v1421_v59  ;;  %v4310_v6 = vpack.c.bf16 %v1434_v1, %v1430_v0  ;;  %v4494_v59 = vpack.c.bf16 %v1468_v52, %v1464_v51  ;;  %v1467_v60 = vld [vmem:[#allocation6 + $0x6f0] sm:$0xff]  ;;  %v1476_v0 = vld [vmem:[#allocation6 + $0x738] sm:$0xff] }
 0x14c   :  { %4289 = vmatpush1.bf16.msra.mxu0 %v4288_v7  ;;  %v1429_v7 = vld [vmem:[#allocation6 + $0x5c0] sm:$0xff] }
 0x14d   :  { %4457 = vmatpush1.bf16.msra.mxu1 %v4456_v8  ;;  %4291 = vmatprep.subr.bf16.mxu0 %v4290_v10  ;;  %v1433_v8 = vld [vmem:[#allocation6 + $0x5e0] sm:$0xff]  ;;  %v1431_v10 = vld [vmem:[#allocation6 + $0x5d0] sm:$0xff] }
 0x14e   :  { %4459 = vmatprep.subr.bf16.mxu1 %v4458_v14  ;;  %v1442_v14 = vld [vmem:[#allocation6 + $0x628] sm:$0xff]  ;;  %v4312_v17 = vpack.c.bf16 %v1433_v8, %v1429_v7  ;;  %v4480_v18 = vpack.c.bf16 %v1435_v12, %v1431_v10  ;;  %v4498_v7 = vpack.c.bf16 %v1476_v0, %v1472_v63  ;;  %v1475_v8 = vld [vmem:[#allocation6 + $0x730] sm:$0xff]  ;;  %v1480_v12 = vld [vmem:[#allocation6 + $0x758] sm:$0xff] }
 0x14f   :  { %v4314_v19 = vpack.c.bf16 %v1442_v14, %v1438_v13  ;;  %v1478_v10 = vld [vmem:[#allocation6 + $0x748] sm:$0xff]  ;;  %v1484_v13 = vld [vmem:[#allocation6 + $0x778] sm:$0xff] }
 0x150   :  { %4293 = vmatpush1.bf16.msra.mxu0 %v4292_v20  ;;  %v1437_v20 = vld [vmem:[#allocation6 + $0x600] sm:$0xff] }
 0x151   :  { %4461 = vmatpush1.bf16.msra.mxu1 %v4460_v21  ;;  %4295 = vmatprep.subr.bf16.mxu0 %v4294_v22  ;;  %v1441_v21 = vld [vmem:[#allocation6 + $0x620] sm:$0xff]  ;;  %v1439_v22 = vld [vmem:[#allocation6 + $0x610] sm:$0xff] }
 0x152   :  { %4463 = vmatprep.subr.bf16.mxu1 %v4462_v26  ;;  %v1450_v26 = vld [vmem:[#allocation6 + $0x668] sm:$0xff]  ;;  %v4316_v29 = vpack.c.bf16 %v1441_v21, %v1437_v20  ;;  %v4484_v30 = vpack.c.bf16 %v1443_v24, %v1439_v22  ;;  %v4502_v20 = vpack.c.bf16 %v1484_v13, %v1480_v12  ;;  %v1483_v21 = vld [vmem:[#allocation6 + $0x770] sm:$0xff]  ;;  %v1488_v24 = vld [vmem:[#allocation6 + $0x798] sm:$0xff] }
 0x153   :  { %v4318_v31 = vpack.c.bf16 %v1450_v26, %v1446_v25  ;;  %v1486_v22 = vld [vmem:[#allocation6 + $0x788] sm:$0xff]  ;;  %v1492_v25 = vld [vmem:[#allocation6 + $0x7b8] sm:$0xff] }
 0x154   :  { %4297 = vmatpush1.bf16.msra.mxu0 %v4296_v32  ;;  %v1445_v32 = vld [vmem:[#allocation6 + $0x640] sm:$0xff] }
 0x155   :  { %4465 = vmatpush1.bf16.msra.mxu1 %v4464_v33  ;;  %4299 = vmatprep.subr.bf16.mxu0 %v4298_v34  ;;  %v1449_v33 = vld [vmem:[#allocation6 + $0x660] sm:$0xff]  ;;  %v1447_v34 = vld [vmem:[#allocation6 + $0x650] sm:$0xff] }
 0x156   :  { %4467 = vmatprep.subr.bf16.mxu1 %v4466_v38  ;;  %v1458_v38 = vld [vmem:[#allocation6 + $0x6a8] sm:$0xff]  ;;  %v4320_v41 = vpack.c.bf16 %v1449_v33, %v1445_v32  ;;  %v4488_v42 = vpack.c.bf16 %v1451_v36, %v1447_v34  ;;  %v4506_v32 = vpack.c.bf16 %v1492_v25, %v1488_v24  ;;  %v1491_v33 = vld [vmem:[#allocation6 + $0x7b0] sm:$0xff]  ;;  %v1496_v36 = vld [vmem:[#allocation6 + $0x7d8] sm:$0xff] }
 0x157   :  { %v4322_v43 = vpack.c.bf16 %v1458_v38, %v1454_v37  ;;  %v1494_v34 = vld [vmem:[#allocation6 + $0x7c8] sm:$0xff]  ;;  %v1500_v37 = vld [vmem:[#allocation6 + $0x7f8] sm:$0xff] }
 0x158   :  { %4301 = vmatpush1.bf16.msra.mxu0 %v4300_v44  ;;  %v1453_v44 = vld [vmem:[#allocation6 + $0x680] sm:$0xff] }
 0x159   :  { %4469 = vmatpush1.bf16.msra.mxu1 %v4468_v45  ;;  %4303 = vmatprep.subr.bf16.mxu0 %v4302_v46  ;;  %v1457_v45 = vld [vmem:[#allocation6 + $0x6a0] sm:$0xff]  ;;  %v1455_v46 = vld [vmem:[#allocation6 + $0x690] sm:$0xff] }
 0x15a   :  { %4471 = vmatprep.subr.bf16.mxu1 %v4470_v50  ;;  %v1466_v50 = vld [vmem:[#allocation6 + $0x6e8] sm:$0xff]  ;;  %v4324_v53 = vpack.c.bf16 %v1457_v45, %v1453_v44  ;;  %v4492_v54 = vpack.c.bf16 %v1459_v48, %v1455_v46  ;;  %v4510_v44 = vpack.c.bf16 %v1500_v37, %v1496_v36  ;;  %v1499_v45 = vld [vmem:[#allocation6 + $0x7f0] sm:$0xff]  ;;  %v1504_v48 = vld [vmem:[#allocation6 + $0x818] sm:$0xff] }
 0x15b   :  { %v4326_v55 = vpack.c.bf16 %v1466_v50, %v1462_v49  ;;  %v1502_v46 = vld [vmem:[#allocation6 + $0x808] sm:$0xff]  ;;  %v1508_v49 = vld [vmem:[#allocation6 + $0x838] sm:$0xff] }
 0x15c   :  { %4305 = vmatpush1.bf16.msra.mxu0 %v4304_v56  ;;  %v1461_v56 = vld [vmem:[#allocation6 + $0x6c0] sm:$0xff] }
 0x15d   :  { %4473 = vmatpush1.bf16.msra.mxu1 %v4472_v57  ;;  %4307 = vmatprep.subr.bf16.mxu0 %v4306_v58  ;;  %v1465_v57 = vld [vmem:[#allocation6 + $0x6e0] sm:$0xff]  ;;  %v1463_v58 = vld [vmem:[#allocation6 + $0x6d0] sm:$0xff] }
 0x15e   :  { %4475 = vmatprep.subr.bf16.mxu1 %v4474_v62  ;;  %v1474_v62 = vld [vmem:[#allocation6 + $0x728] sm:$0xff]  ;;  %v4328_v1 = vpack.c.bf16 %v1465_v57, %v1461_v56  ;;  %v4496_v2 = vpack.c.bf16 %v1467_v60, %v1463_v58  ;;  %v4514_v56 = vpack.c.bf16 %v1508_v49, %v1504_v48  ;;  %v1507_v57 = vld [vmem:[#allocation6 + $0x830] sm:$0xff]  ;;  %v1512_v60 = vld [vmem:[#allocation6 + $0x858] sm:$0xff] }
 0x15f   :  { %v4330_v3 = vpack.c.bf16 %v1474_v62, %v1470_v61  ;;  %v1510_v58 = vld [vmem:[#allocation6 + $0x848] sm:$0xff]  ;;  %v1516_v61 = vld [vmem:[#allocation6 + $0x878] sm:$0xff] }
 0x160   :  { %4309 = vmatpush1.bf16.msra.mxu0 %v4308_v4  ;;  %v1469_v4 = vld [vmem:[#allocation6 + $0x700] sm:$0xff] }
 0x161   :  { %4477 = vmatpush1.bf16.msra.mxu1 %v4476_v5  ;;  %4311 = vmatprep.subr.bf16.mxu0 %v4310_v6  ;;  %v1473_v5 = vld [vmem:[#allocation6 + $0x720] sm:$0xff]  ;;  %v1471_v6 = vld [vmem:[#allocation6 + $0x710] sm:$0xff] }
 0x162   :  { %4479 = vmatprep.subr.bf16.mxu1 %v4478_v11  ;;  %v1482_v11 = vld [vmem:[#allocation6 + $0x768] sm:$0xff]  ;;  %v4332_v14 = vpack.c.bf16 %v1473_v5, %v1469_v4  ;;  %v4500_v15 = vpack.c.bf16 %v1475_v8, %v1471_v6  ;;  %v1241_v62 = vld [vmem:[%s6373_s0 + $0x160] sm:$0xff]  ;;  %v1511_v4 = vld [vmem:[#allocation6 + $0x850] sm:$0xff]  ;;  %v4518_v5 = vpack.c.bf16 %v1516_v61, %v1512_v60 }
 0x163   :  { %v4334_v16 = vpack.c.bf16 %v1482_v11, %v1478_v10  ;;  %v1515_v6 = vld [vmem:[#allocation6 + $0x870] sm:$0xff]  ;;  %v1522_v8 = vld [vmem:[#allocation6 + $0x8a8] sm:$0xff]  ;;  %v1520_v10 = vld [vmem:[#allocation6 + $0x898] sm:$0xff] }
 0x164   :  { %4313 = vmatpush1.bf16.msra.mxu0 %v4312_v17  ;;  %v1477_v17 = vld [vmem:[#allocation6 + $0x740] sm:$0xff]  ;;  %v1524_v11 = vld [vmem:[#allocation6 + $0x8b8] sm:$0xff]  ;;  %v4520_v13 = vpack.c.bf16 %v1515_v6, %v1511_v4  ;;  %v1562_v4 = vld [vmem:[#allocation6 + $0x9e8] sm:$0xff] }
 0x165   :  { %4481 = vmatpush1.bf16.msra.mxu1 %v4480_v18  ;;  %4315 = vmatprep.subr.bf16.mxu0 %v4314_v19  ;;  %v1481_v18 = vld [vmem:[#allocation6 + $0x760] sm:$0xff]  ;;  %v1479_v19 = vld [vmem:[#allocation6 + $0x750] sm:$0xff]  ;;  %v1564_v6 = vld [vmem:[#allocation6 + $0x9f8] sm:$0xff] }
 0x166   :  { %4483 = vmatprep.subr.bf16.mxu1 %v4482_v23  ;;  %v1490_v23 = vld [vmem:[#allocation6 + $0x7a8] sm:$0xff]  ;;  %v4336_v26 = vpack.c.bf16 %v1481_v18, %v1477_v17  ;;  %v4504_v27 = vpack.c.bf16 %v1483_v21, %v1479_v19  ;;  %v1519_v17 = vld [vmem:[#allocation6 + $0x890] sm:$0xff]  ;;  %v4522_v18 = vpack.c.bf16 %v1524_v11, %v1520_v10  ;;  %v1557_v11 = vld [vmem:[#allocation6 + $0x9c0] sm:$0xff] }
 0x167   :  { %v4338_v28 = vpack.c.bf16 %v1490_v23, %v1486_v22  ;;  %v1523_v19 = vld [vmem:[#allocation6 + $0x8b0] sm:$0xff]  ;;  %v1530_v21 = vld [vmem:[#allocation6 + $0x8e8] sm:$0xff]  ;;  %v1528_v22 = vld [vmem:[#allocation6 + $0x8d8] sm:$0xff] }
 0x168   :  { %4317 = vmatpush1.bf16.msra.mxu0 %v4316_v29  ;;  %v1485_v29 = vld [vmem:[#allocation6 + $0x780] sm:$0xff]  ;;  %v1532_v23 = vld [vmem:[#allocation6 + $0x8f8] sm:$0xff]  ;;  %v4524_v25 = vpack.c.bf16 %v1523_v19, %v1519_v17  ;;  %v1570_v17 = vld [vmem:[#allocation6 + $0xa28] sm:$0xff] }
 0x169   :  { %4485 = vmatpush1.bf16.msra.mxu1 %v4484_v30  ;;  %4319 = vmatprep.subr.bf16.mxu0 %v4318_v31  ;;  %v1489_v30 = vld [vmem:[#allocation6 + $0x7a0] sm:$0xff]  ;;  %v1487_v31 = vld [vmem:[#allocation6 + $0x790] sm:$0xff]  ;;  %v1572_v19 = vld [vmem:[#allocation6 + $0xa38] sm:$0xff] }
 0x16a   :  { %4487 = vmatprep.subr.bf16.mxu1 %v4486_v35  ;;  %v1498_v35 = vld [vmem:[#allocation6 + $0x7e8] sm:$0xff]  ;;  %v4340_v38 = vpack.c.bf16 %v1489_v30, %v1485_v29  ;;  %v4508_v39 = vpack.c.bf16 %v1491_v33, %v1487_v31  ;;  %v1527_v29 = vld [vmem:[#allocation6 + $0x8d0] sm:$0xff]  ;;  %v4526_v30 = vpack.c.bf16 %v1532_v23, %v1528_v22  ;;  %v1565_v23 = vld [vmem:[#allocation6 + $0xa00] sm:$0xff] }
 0x16b   :  { %v4342_v40 = vpack.c.bf16 %v1498_v35, %v1494_v34  ;;  %v1531_v31 = vld [vmem:[#allocation6 + $0x8f0] sm:$0xff]  ;;  %v1538_v33 = vld [vmem:[#allocation6 + $0x928] sm:$0xff]  ;;  %v1536_v34 = vld [vmem:[#allocation6 + $0x918] sm:$0xff] }
 0x16c   :  { %4321 = vmatpush1.bf16.msra.mxu0 %v4320_v41  ;;  %v1493_v41 = vld [vmem:[#allocation6 + $0x7c0] sm:$0xff]  ;;  %v1540_v35 = vld [vmem:[#allocation6 + $0x938] sm:$0xff] }
 0x16d   :  { %4489 = vmatpush1.bf16.msra.mxu1 %v4488_v42  ;;  %4323 = vmatprep.subr.bf16.mxu0 %v4322_v43  ;;  %v1497_v42 = vld [vmem:[#allocation6 + $0x7e0] sm:$0xff]  ;;  %v1495_v43 = vld [vmem:[#allocation6 + $0x7d0] sm:$0xff] }
 0x16e   :  { %4491 = vmatprep.subr.bf16.mxu1 %v4490_v47  ;;  %v1506_v47 = vld [vmem:[#allocation6 + $0x828] sm:$0xff]  ;;  %v4344_v50 = vpack.c.bf16 %v1497_v42, %v1493_v41  ;;  %v4512_v51 = vpack.c.bf16 %v1499_v45, %v1495_v43  ;;  %v4530_v41 = vpack.c.bf16 %v1540_v35, %v1536_v34  ;;  %v1539_v42 = vld [vmem:[#allocation6 + $0x930] sm:$0xff]  ;;  %v1544_v45 = vld [vmem:[#allocation6 + $0x958] sm:$0xff] }
 0x16f   :  { %v4346_v52 = vpack.c.bf16 %v1506_v47, %v1502_v46  ;;  %v1542_v43 = vld [vmem:[#allocation6 + $0x948] sm:$0xff]  ;;  %v1548_v46 = vld [vmem:[#allocation6 + $0x978] sm:$0xff]  ;;  %v1573_v35 = vld [vmem:[#allocation6 + $0xa40] sm:$0xff] }
 0x170   :  { %4325 = vmatpush1.bf16.msra.mxu0 %v4324_v53  ;;  %v1501_v53 = vld [vmem:[#allocation6 + $0x800] sm:$0xff] }
 0x171   :  { %4493 = vmatpush1.bf16.msra.mxu1 %v4492_v54  ;;  %4327 = vmatprep.subr.bf16.mxu0 %v4326_v55  ;;  %v1505_v54 = vld [vmem:[#allocation6 + $0x820] sm:$0xff]  ;;  %v1503_v55 = vld [vmem:[#allocation6 + $0x810] sm:$0xff] }
 0x172   :  { %4495 = vmatprep.subr.bf16.mxu1 %v4494_v59  ;;  %v1514_v59 = vld [vmem:[#allocation6 + $0x868] sm:$0xff]  ;;  %v4348_v63 = vpack.c.bf16 %v1505_v54, %v1501_v53  ;;  %v4516_v0 = vpack.c.bf16 %v1507_v57, %v1503_v55  ;;  %v4534_v53 = vpack.c.bf16 %v1548_v46, %v1544_v45  ;;  %v1547_v54 = vld [vmem:[#allocation6 + $0x970] sm:$0xff]  ;;  %v1552_v57 = vld [vmem:[#allocation6 + $0x998] sm:$0xff] }
 0x173   :  { %v1550_v55 = vld [vmem:[#allocation6 + $0x988] sm:$0xff]  ;;  %v2056_v46 = vld [vmem:[#allocation8] sm:$0xff] }
 0x174   :  { %4329 = vmatpush1.bf16.msra.mxu0 %v4328_v1  ;;  %v4350_v1 = vpack.c.bf16 %v1514_v59, %v1510_v58  ;;  %v1556_v58 = vld [vmem:[#allocation6 + $0x9b8] sm:$0xff] }
 0x175   :  { %4497 = vmatpush1.bf16.msra.mxu1 %v4496_v2  ;;  %4331 = vmatprep.subr.bf16.mxu0 %v4330_v3  ;;  %v1509_v2 = vld [vmem:[#allocation6 + $0x840] sm:$0xff] }
 0x176   :  { %4499 = vmatprep.subr.bf16.mxu1 %v4498_v7  ;;  %v1513_v3 = vld [vmem:[#allocation6 + $0x860] sm:$0xff]  ;;  %v1518_v7 = vld [vmem:[#allocation6 + $0x888] sm:$0xff] }
 0x177   :  { %v4352_v12 = vpack.c.bf16 %v1513_v3, %v1509_v2  ;;  %v1555_v2 = vld [vmem:[#allocation6 + $0x9b0] sm:$0xff]  ;;  %v1558_v3 = vld [vmem:[#allocation6 + $0x9c8] sm:$0xff] }
 0x178   :  { %4333 = vmatpush1.bf16.msra.mxu0 %v4332_v14  ;;  %v4354_v14 = vpack.c.bf16 %v1522_v8, %v1518_v7  ;;  %v4374_v10 = vpack.c.bf16 %v1562_v4, %v1558_v3  ;;  %v2079_v3 = vld [vmem:[#allocation8 + $0xb8] sm:$0xff] }
 0x179   :  { %4501 = vmatpush1.bf16.msra.mxu1 %v4500_v15  ;;  %4335 = vmatprep.subr.bf16.mxu0 %v4334_v16  ;;  %v1517_v15 = vld [vmem:[#allocation6 + $0x880] sm:$0xff] }
 0x17a   :  { %4503 = vmatprep.subr.bf16.mxu1 %v4502_v20  ;;  %v1521_v16 = vld [vmem:[#allocation6 + $0x8a0] sm:$0xff]  ;;  %v1526_v20 = vld [vmem:[#allocation6 + $0x8c8] sm:$0xff] }
 0x17b   :  { %v4356_v24 = vpack.c.bf16 %v1521_v16, %v1517_v15  ;;  %v1563_v15 = vld [vmem:[#allocation6 + $0x9f0] sm:$0xff]  ;;  %v1566_v16 = vld [vmem:[#allocation6 + $0xa08] sm:$0xff] }
 0x17c   :  { %4337 = vmatpush1.bf16.msra.mxu0 %v4336_v26  ;;  %v4358_v26 = vpack.c.bf16 %v1530_v21, %v1526_v20  ;;  %v4378_v22 = vpack.c.bf16 %v1570_v17, %v1566_v16  ;;  %v2083_v16 = vld [vmem:[#allocation8 + $0xd8] sm:$0xff] }
 0x17d   :  { %4505 = vmatpush1.bf16.msra.mxu1 %v4504_v27  ;;  %4339 = vmatprep.subr.bf16.mxu0 %v4338_v28  ;;  %v1525_v27 = vld [vmem:[#allocation6 + $0x8c0] sm:$0xff]  ;;  %v2087_v17 = vld [vmem:[#allocation8 + $0xf8] sm:$0xff] }
 0x17e   :  { %4507 = vmatprep.subr.bf16.mxu1 %v4506_v32  ;;  %v1529_v28 = vld [vmem:[#allocation6 + $0x8e0] sm:$0xff]  ;;  %v1534_v32 = vld [vmem:[#allocation6 + $0x908] sm:$0xff] }
 0x17f   :  { %v4360_v36 = vpack.c.bf16 %v1529_v28, %v1525_v27  ;;  %v4362_v37 = vpack.c.bf16 %v1538_v33, %v1534_v32  ;;  %v1571_v27 = vld [vmem:[#allocation6 + $0xa30] sm:$0xff]  ;;  %v1574_v28 = vld [vmem:[#allocation6 + $0xa48] sm:$0xff] }
 0x180   :  { %4341 = vmatpush1.bf16.msra.mxu0 %v4340_v38  ;;  %v1533_v38 = vld [vmem:[#allocation6 + $0x900] sm:$0xff] }
 0x181   :  { %4509 = vmatpush1.bf16.msra.mxu1 %v4508_v39  ;;  %4343 = vmatprep.subr.bf16.mxu0 %v4342_v40  ;;  %v1537_v39 = vld [vmem:[#allocation6 + $0x920] sm:$0xff]  ;;  %v1535_v40 = vld [vmem:[#allocation6 + $0x910] sm:$0xff] }
 0x182   :  { %4511 = vmatprep.subr.bf16.mxu1 %v4510_v44  ;;  %v1546_v44 = vld [vmem:[#allocation6 + $0x968] sm:$0xff]  ;;  %v4364_v47 = vpack.c.bf16 %v1537_v39, %v1533_v38  ;;  %v4532_v48 = vpack.c.bf16 %v1539_v42, %v1535_v40  ;;  %v1579_v38 = vld [vmem:[#allocation6 + $0xa70] sm:$0xff]  ;;  %v2063_v42 = vld [vmem:[#allocation8 + $0x38] sm:$0xff] }
 0x183   :  { %v4366_v49 = vpack.c.bf16 %v1546_v44, %v1542_v43  ;;  %v2057_v39 = vld [vmem:[#allocation8 + $0x8] sm:$0xff] }
 0x184   :  { %4345 = vmatpush1.bf16.msra.mxu0 %v4344_v50  ;;  %v1541_v50 = vld [vmem:[#allocation6 + $0x940] sm:$0xff]  ;;  %v2061_v40 = vld [vmem:[#allocation8 + $0x28] sm:$0xff] }
 0x185   :  { %4513 = vmatpush1.bf16.msra.mxu1 %v4512_v51  ;;  %4347 = vmatprep.subr.bf16.mxu0 %v4346_v52  ;;  %v1545_v51 = vld [vmem:[#allocation6 + $0x960] sm:$0xff]  ;;  %v1543_v52 = vld [vmem:[#allocation6 + $0x950] sm:$0xff]  ;;  %v5844_v45 = vpack.c.bf16 %v2061_v40, %v2057_v39  ;;  %v2099_v39 = vld [vmem:[#allocation8 + $0x158] sm:$0xff] }
 0x186   :  { %4515 = vmatprep.subr.bf16.mxu1 %v4514_v56  ;;  %v1554_v56 = vld [vmem:[#allocation6 + $0x9a8] sm:$0xff]  ;;  %v4368_v59 = vpack.c.bf16 %v1545_v51, %v1541_v50  ;;  %v4536_v60 = vpack.c.bf16 %v1547_v54, %v1543_v52  ;;  %v2062_v50 = vld [vmem:[#allocation8 + $0x30] sm:$0xff]  ;;  %v2071_v54 = vld [vmem:[#allocation8 + $0x78] sm:$0xff] }
 0x187   :  { %1742 = vmatmul.mubr.f32.vlgmr.msra.gmra.mrb[16].mxu0 %v1241_v62  ;;  %v4370_v61 = vpack.c.bf16 %v1554_v56, %v1550_v55  ;;  %v2065_v51 = vld [vmem:[#allocation8 + $0x48] sm:$0xff]  ;;  %v2103_v40 = vld [vmem:[#allocation8 + $0x178] sm:$0xff] }
 0x188   :  { %4349 = vmatpush1.bf16.msra.mxu0 %v4348_v63  ;;  %1955 = vmatmul.mubr.f32.vlgmr.msra.gmra.mrb[16].mxu1 %v1241_v62  ;;  %v1549_v62 = vld [vmem:[#allocation6 + $0x980] sm:$0xff]  ;;  %v2069_v52 = vld [vmem:[#allocation8 + $0x68] sm:$0xff] }
 0x189   :  { %4517 = vmatpush1.bf16.msra.mxu1 %v4516_v0  ;;  %4351 = vmatprep.subr.bf16.mxu0 %v4350_v1  ;;  %v1553_v63 = vld [vmem:[#allocation6 + $0x9a0] sm:$0xff]  ;;  %v1551_v0 = vld [vmem:[#allocation6 + $0x990] sm:$0xff]  ;;  %v4538_v1 = vpack.c.bf16 %v1556_v58, %v1552_v57  ;;  %v5853_v57 = vpack.c.bf16 %v2069_v52, %v2065_v51  ;;  %v2105_v51 = vld [vmem:[#allocation8 + $0x188] sm:$0xff] }
 0x18a   :  { %4519 = vmatprep.subr.bf16.mxu1 %v4518_v5  ;;  %3748 = vmatprep.mubr.msk.f32.mxu0 %vm504_vm0, %v5819_v9  ;;  %v1560_v5 = vld [vmem:[#allocation6 + $0x9d8] sm:$0xff]  ;;  %v4372_v7 = vpack.c.bf16 %v1553_v63, %v1549_v62  ;;  %v4540_v8 = vpack.c.bf16 %v1555_v2, %v1551_v0  ;;  %v2064_v58 = vld [vmem:[#allocation8 + $0x40] sm:$0xff]  ;;  %v2070_v62 = vld [vmem:[#allocation8 + $0x70] sm:$0xff] }
 0x18b   :  { %3749 = vmatprep.mubr.msk.f32.mxu1 %vm504_vm0, %v5819_v9  ;;  %v4528_v9 = vpack.c.bf16 %v1531_v31, %v1527_v29  ;;  %v1578_v29 = vld [vmem:[#allocation6 + $0xa68] sm:$0xff]  ;;  %v1580_v31 = vld [vmem:[#allocation6 + $0xa78] sm:$0xff] }
 0x18c   :  { %4353 = vmatpush1.bf16.msra.mxu0 %v4352_v12  ;;  %v1561_v12 = vld [vmem:[#allocation6 + $0x9e0] sm:$0xff]  ;;  %v4382_v34 = vpack.c.bf16 %v1578_v29, %v1574_v28  ;;  %v2073_v63 = vld [vmem:[#allocation8 + $0x88] sm:$0xff]  ;;  %v2075_v2 = vld [vmem:[#allocation8 + $0x98] sm:$0xff] }
 0x18d   :  { %4521 = vmatpush1.bf16.msra.mxu1 %v4520_v13  ;;  %4355 = vmatprep.subr.bf16.mxu0 %v4354_v14  ;;  %v1559_v13 = vld [vmem:[#allocation6 + $0x9d0] sm:$0xff]  ;;  %v4542_v14 = vpack.c.bf16 %v1564_v6, %v1560_v5  ;;  %v4376_v20 = vpack.c.bf16 %v1561_v12, %v1557_v11  ;;  %v2077_v0 = vld [vmem:[#allocation8 + $0xa8] sm:$0xff]  ;;  %v5871_v11 = vpack.c.bf16 %v2079_v3, %v2075_v2  ;;  %v2091_v28 = vld [vmem:[#allocation8 + $0x118] sm:$0xff] }
 0x18e   :  { %4523 = vmatprep.subr.bf16.mxu1 %v4522_v18  ;;  %v1568_v18 = vld [vmem:[#allocation6 + $0xa18] sm:$0xff]  ;;  %v4544_v21 = vpack.c.bf16 %v1563_v15, %v1559_v13  ;;  %v5868_v6 = vpack.c.bf16 %v2077_v0, %v2073_v63  ;;  %v2078_v12 = vld [vmem:[#allocation8 + $0xb0] sm:$0xff]  ;;  %v2081_v13 = vld [vmem:[#allocation8 + $0xc8] sm:$0xff]  ;;  %v5532_v15 = vmov 0.0  }
 0x18f   :  { %v2095_v29 = vld [vmem:[#allocation8 + $0x138] sm:$0xff]  ;;  %v2109_v52 = vld [vmem:[#allocation8 + $0x1a8] sm:$0xff]  ;;  %v2108_v63 = vld [vmem:[#allocation8 + $0x1a0] sm:$0xff] }
 0x190   :  { %4357 = vmatpush1.bf16.msra.mxu0 %v4356_v24  ;;  %v1569_v24 = vld [vmem:[#allocation6 + $0xa20] sm:$0xff]  ;;  %v2106_v0 = vld [vmem:[#allocation8 + $0x190] sm:$0xff]  ;;  %v2113_v3 = vld [vmem:[#allocation8 + $0x1c8] sm:$0xff] }
 0x191   :  { %4525 = vmatpush1.bf16.msra.mxu1 %v4524_v25  ;;  %4359 = vmatprep.subr.bf16.mxu0 %v4358_v26  ;;  %v1567_v25 = vld [vmem:[#allocation6 + $0xa10] sm:$0xff]  ;;  %v4546_v26 = vpack.c.bf16 %v1572_v19, %v1568_v18  ;;  %v4380_v32 = vpack.c.bf16 %v1569_v24, %v1565_v23  ;;  %v5885_v24 = vpack.c.bf16 %v2087_v17, %v2083_v16  ;;  %v2112_v16 = vld [vmem:[#allocation8 + $0x1c0] sm:$0xff] }
 0x192   :  { %4527 = vmatprep.subr.bf16.mxu1 %v4526_v30  ;;  %v1576_v30 = vld [vmem:[#allocation6 + $0xa58] sm:$0xff]  ;;  %v4548_v33 = vpack.c.bf16 %v1571_v27, %v1567_v25  ;;  %v2082_v23 = vld [vmem:[#allocation8 + $0xd0] sm:$0xff]  ;;  %v2093_v27 = vld [vmem:[#allocation8 + $0x128] sm:$0xff] }
 0x193   :  { %v2086_v25 = vld [vmem:[#allocation8 + $0xf0] sm:$0xff]  ;;  %v2116_v17 = vld [vmem:[#allocation8 + $0x1e0] sm:$0xff] }
 0x194   :  { %4361 = vmatpush1.bf16.msra.mxu0 %v4360_v36  ;;  %v1577_v36 = vld [vmem:[#allocation6 + $0xa60] sm:$0xff]  ;;  %v2110_v2 = vld [vmem:[#allocation8 + $0x1b0] sm:$0xff] }
 0x195   :  { %4529 = vmatpush1.bf16.msra.mxu1 %v4528_v9  ;;  %4363 = vmatprep.subr.bf16.mxu0 %v4362_v37  ;;  %v1575_v9 = vld [vmem:[#allocation6 + $0xa50] sm:$0xff]  ;;  %v4550_v37 = vpack.c.bf16 %v1580_v31, %v1576_v30  ;;  %v4384_v43 = vpack.c.bf16 %v1577_v36, %v1573_v35  ;;  %v5892_v31 = vpack.c.bf16 %v2086_v25, %v2082_v23 }
 0x196   :  { %4531 = vmatprep.subr.bf16.mxu1 %v4530_v41  ;;  %v2059_v41 = vld [vmem:[#allocation8 + $0x18] sm:$0xff]  ;;  %v4552_v44 = vpack.c.bf16 %v1579_v38, %v1575_v9  ;;  %v2090_v35 = vld [vmem:[#allocation8 + $0x110] sm:$0xff]  ;;  %v5897_v36 = vpack.c.bf16 %v2095_v29, %v2091_v28  ;;  %v2101_v38 = vld [vmem:[#allocation8 + $0x168] sm:$0xff]  ;;  %v5936_v25 = vpack.c.bf16 %v2116_v17, %v2112_v16 }
 0x197   :  { %v2094_v9 = vld [vmem:[#allocation8 + $0x130] sm:$0xff]  ;;  %v482_v16 = vld [vmem:[#allocation9] sm:$0xf] }
 0x198   :  { %4365 = vmatpush1.bf16.msra.mxu0 %v4364_v47  ;;  %v2060_v47 = vld [vmem:[#allocation8 + $0x20] sm:$0xff]  ;;  %v2118_v23 = vld [vmem:[#allocation8 + $0x1f0] sm:$0xff] }
 0x199   :  { %4533 = vmatpush1.bf16.msra.mxu1 %v4532_v48  ;;  %4367 = vmatprep.subr.bf16.mxu0 %v4366_v49  ;;  %v2058_v48 = vld [vmem:[#allocation8 + $0x10] sm:$0xff]  ;;  %v5846_v49 = vpack.c.bf16 %v2063_v42, %v2059_v41  ;;  %v5848_v55 = vpack.c.bf16 %v2060_v47, %v2056_v46  ;;  %v5904_v42 = vpack.c.bf16 %v2094_v9, %v2090_v35  ;;  %v2100_v46 = vld [vmem:[#allocation8 + $0x160] sm:$0xff] }
 0x19a   :  { %4535 = vmatprep.subr.bf16.mxu1 %v4534_v53  ;;  %v2067_v53 = vld [vmem:[#allocation8 + $0x58] sm:$0xff]  ;;  %v5851_v56 = vpack.c.bf16 %v2062_v50, %v2058_v48  ;;  %v2098_v47 = vld [vmem:[#allocation8 + $0x150] sm:$0xff]  ;;  %v5909_v48 = vpack.c.bf16 %v2103_v40, %v2099_v39 }
 0x19b   :  { %v2102_v50 = vld [vmem:[#allocation8 + $0x170] sm:$0xff] }
 0x19c   :  { %4369 = vmatpush1.bf16.msra.mxu0 %v4368_v59  ;;  %v2068_v59 = vld [vmem:[#allocation8 + $0x60] sm:$0xff] }
 0x19d   :  { %4537 = vmatpush1.bf16.msra.mxu1 %v4536_v60  ;;  %4371 = vmatprep.subr.bf16.mxu0 %v4370_v61  ;;  %v2066_v60 = vld [vmem:[#allocation8 + $0x50] sm:$0xff]  ;;  %v5856_v61 = vpack.c.bf16 %v2071_v54, %v2067_v53  ;;  %v5862_v4 = vpack.c.bf16 %v2068_v59, %v2064_v58  ;;  %v2107_v53 = vld [vmem:[#allocation8 + $0x198] sm:$0xff]  ;;  %v5916_v59 = vpack.c.bf16 %v2102_v50, %v2098_v47 }
 0x19e   :  { %4539 = vmatprep.subr.bf16.mxu1 %v4538_v1  ;;  %v5408_v1 = vld [vmem:[%s6373_s0 + $0x170] sm:$0xff]  ;;  %v5866_v5 = vpack.c.bf16 %v2070_v62, %v2066_v60  ;;  %v2111_v54 = vld [vmem:[#allocation8 + $0x1b8] sm:$0xff]  ;;  %v5918_v60 = vpack.c.bf16 %v2109_v52, %v2105_v51  ;;  %v2104_v62 = vld [vmem:[#allocation8 + $0x180] sm:$0xff] }
 0x1a0   :  { %4373 = vmatpush1.bf16.msra.mxu0 %v4372_v7  ;;  %v2072_v7 = vld [vmem:[#allocation8 + $0x80] sm:$0xff] }
 0x1a1   :  { %4541 = vmatpush1.bf16.msra.mxu1 %v4540_v8  ;;  %4375 = vmatprep.subr.bf16.mxu0 %v4374_v10  ;;  %v2076_v8 = vld [vmem:[#allocation8 + $0xa0] sm:$0xff]  ;;  %v2074_v10 = vld [vmem:[#allocation8 + $0x90] sm:$0xff] }
 0x1a2   :  { %4543 = vmatprep.subr.bf16.mxu1 %v4542_v14  ;;  %v2085_v14 = vld [vmem:[#allocation8 + $0xe8] sm:$0xff]  ;;  %v5876_v18 = vpack.c.bf16 %v2076_v8, %v2072_v7  ;;  %v5880_v19 = vpack.c.bf16 %v2078_v12, %v2074_v10  ;;  %v2115_v8 = vld [vmem:[#allocation8 + $0x1d8] sm:$0xff]  ;;  %v5924_v12 = vpack.c.bf16 %v2108_v63, %v2104_v62 }
 0x1a3   :  { %v2117_v7 = vld [vmem:[#allocation8 + $0x1e8] sm:$0xff]  ;;  %v2119_v10 = vld [vmem:[#allocation8 + $0x1f8] sm:$0xff] }
 0x1a4   :  { %4377 = vmatpush1.bf16.msra.mxu0 %v4376_v20  ;;  %v5882_v20 = vpack.c.bf16 %v2085_v14, %v2081_v13  ;;  %v5928_v13 = vpack.c.bf16 %v2110_v2, %v2106_v0  ;;  %v5930_v14 = vpack.c.bf16 %v2117_v7, %v2113_v3 }
 0x1a5   :  { %4545 = vmatpush1.bf16.msra.mxu1 %v4544_v21  ;;  %4379 = vmatprep.subr.bf16.mxu0 %v4378_v22  ;;  %v2080_v21 = vld [vmem:[#allocation8 + $0xc0] sm:$0xff] }
 0x1a6   :  { %4547 = vmatprep.subr.bf16.mxu1 %v4546_v26  ;;  %v2084_v22 = vld [vmem:[#allocation8 + $0xe0] sm:$0xff]  ;;  %v2089_v26 = vld [vmem:[#allocation8 + $0x108] sm:$0xff] }
 0x1a7   :  { %v5888_v30 = vpack.c.bf16 %v2084_v22, %v2080_v21  ;;  %v5933_v21 = vpack.c.bf16 %v2119_v10, %v2115_v8  ;;  %v2114_v22 = vld [vmem:[#allocation8 + $0x1d0] sm:$0xff] }
 0x1a8   :  { %4381 = vmatpush1.bf16.msra.mxu0 %v4380_v32  ;;  %v5894_v32 = vpack.c.bf16 %v2093_v27, %v2089_v26  ;;  %v5940_v26 = vpack.c.bf16 %v2118_v23, %v2114_v22  ;;  %v484_v27 = vlaneseq }
 0x1a9   :  { %4549 = vmatpush1.bf16.msra.mxu1 %v4548_v33  ;;  %4383 = vmatprep.subr.bf16.mxu0 %v4382_v34  ;;  %v2088_v33 = vld [vmem:[#allocation8 + $0x100] sm:$0xff] }
 0x1aa   :  { %4551 = vmatprep.subr.bf16.mxu1 %v4550_v37  ;;  %v2092_v34 = vld [vmem:[#allocation8 + $0x120] sm:$0xff]  ;;  %v2097_v37 = vld [vmem:[#allocation8 + $0x148] sm:$0xff]  ;;  %v485_v28 = vshrl.u32 %v484_v27, 7 }
 0x1ab   :  { %v5900_v41 = vpack.c.bf16 %v2092_v34, %v2088_v33  ;;  %v1581_v33 = vld [vmem:[#allocation11] sm:$0xf] }
 0x1ac   :  { %4385 = vmatpush1.bf16.msra.mxu0 %v4384_v43  ;;  %v5906_v43 = vpack.c.bf16 %v2101_v38, %v2097_v37  ;;  %v486_v29 = vsub.s32 0, %v485_v28  ;;  %v494_v34 = vsub.s32 2, %v485_v28  ;;  %v490_v35 = vsub.s32 1, %v485_v28 }
 0x1ad   :  { %4553 = vmatpush1.bf16.msra.mxu1 %v4552_v44  ;;  %4555 = vmatprep.subr.bf16.mxu0 %v5844_v45  ;;  %v2096_v44 = vld [vmem:[#allocation8 + $0x140] sm:$0xff]  ;;  %v498_v9 = vsub.s32 3, %v485_v28 }
 0x1ae   :  { %4587 = vmatprep.subr.bf16.mxu1 %v5846_v49  ;;  %v5912_v58 = vpack.c.bf16 %v2100_v46, %v2096_v44  ;;  %v1586_v37 = vrot.slane %v1581_v33, %v486_v29  ;;  %v1594_v38 = vrot.slane %v1581_v33, %v494_v34  ;;  %v1590_v39 = vrot.slane %v1581_v33, %v490_v35 }
 0x1af   :  { %1813 = vmatmul.mubr.f32.vlgmr.msra.gmra.mrb[16].mxu0 %v5408_v1  ;;  %v1598_v40 = vrot.slane %v1581_v33, %v498_v9  ;;  %v5983_v27 = vrot.slane %v482_v16, %v486_v29 }
 0x1b0   :  { %2026 = vmatmul.mubr.f32.vlgmr.msra.gmra.mrb[16].mxu1 %v5408_v1  ;;  %4557 = vmatpush1.bf16.msra.mxu0 %v5848_v55  ;;  %v5921_v1 = vpack.c.bf16 %v2111_v54, %v2107_v53 }
 0x1b1   :  { %4589 = vmatpush1.bf16.msra.mxu1 %v5851_v56  ;;  %4559 = vmatprep.subr.bf16.mxu0 %v5853_v57 }
 0x1b2   :  { %4591 = vmatprep.subr.bf16.mxu1 %v5856_v61  ;;  %2191 = vmatprep.mubr.f32.mxu0 %v5532_v15 }
 0x1b3   :  { %2262 = vmatprep.mubr.f32.mxu1 %v5532_v15 }
 0x1b4   :  { %4561 = vmatpush1.bf16.msra.mxu0 %v5862_v4 }
 0x1b5   :  { %4593 = vmatpush1.bf16.msra.mxu1 %v5866_v5  ;;  %4563 = vmatprep.subr.bf16.mxu0 %v5868_v6 }
 0x1b6   :  { %4595 = vmatprep.subr.bf16.mxu1 %v5871_v11 }
 0x1b8   :  { %4565 = vmatpush1.bf16.msra.mxu0 %v5876_v18 }
 0x1b9   :  { %4597 = vmatpush1.bf16.msra.mxu1 %v5880_v19  ;;  %4567 = vmatprep.subr.bf16.mxu0 %v5882_v20 }
 0x1ba   :  { %4599 = vmatprep.subr.bf16.mxu1 %v5885_v24 }
 0x1bc   :  { %4569 = vmatpush1.bf16.msra.mxu0 %v5888_v30 }
 0x1bd   :  { %4601 = vmatpush1.bf16.msra.mxu1 %v5892_v31  ;;  %4571 = vmatprep.subr.bf16.mxu0 %v5894_v32 }
 0x1be   :  { %4603 = vmatprep.subr.bf16.mxu1 %v5897_v36 }
 0x1c0   :  { %4573 = vmatpush1.bf16.msra.mxu0 %v5900_v41 }
 0x1c1   :  { %4605 = vmatpush1.bf16.msra.mxu1 %v5904_v42  ;;  %4575 = vmatprep.subr.bf16.mxu0 %v5906_v43 }
 0x1c2   :  { %4607 = vmatprep.subr.bf16.mxu1 %v5909_v48 }
 0x1c4   :  { %4577 = vmatpush1.bf16.msra.mxu0 %v5912_v58 }
 0x1c5   :  { %4609 = vmatpush1.bf16.msra.mxu1 %v5916_v59  ;;  %4579 = vmatprep.subr.bf16.mxu0 %v5918_v60 }
 0x1c6   :  { %4611 = vmatprep.subr.bf16.mxu1 %v5921_v1 }
 0x1c8   :  { %4581 = vmatpush1.bf16.msra.mxu0 %v5924_v12 }
 0x1c9   :  { %4613 = vmatpush1.bf16.msra.mxu1 %v5928_v13  ;;  %4583 = vmatprep.subr.bf16.mxu0 %v5930_v14 }
 0x1ca   :  { %4615 = vmatprep.subr.bf16.mxu1 %v5933_v21 }
 0x1cc   :  { %4585 = vmatpush1.bf16.msra.mxu0 %v5936_v25 }
 0x1cd   :  { %4617 = vmatpush1.bf16.msra.mxu1 %v5940_v26  ;;  %4619 = vmatprep.subr.bf16.mxu0 %v5844_v45 }
 0x1ce   :  { %4651 = vmatprep.subr.bf16.mxu1 %v5846_v49 }
 0x1cf   :  { %2192 = vmatmul.mubr.f32.vlgmr.msra.gmra.mrb[0].mxu0 %v5532_v15 }
 0x1d0   :  { %2263 = vmatmul.mubr.f32.vlgmr.msra.gmra.mrb[0].mxu1 %v5532_v15  ;;  %4621 = vmatpush1.bf16.msra.mxu0 %v5848_v55 }
 0x1d1   :  { %4653 = vmatpush1.bf16.msra.mxu1 %v5851_v56  ;;  %4623 = vmatprep.subr.bf16.mxu0 %v5853_v57 }
 0x1d2   :  { %4655 = vmatprep.subr.bf16.mxu1 %v5856_v61  ;;  %2368 = vmatprep.mubr.f32.mxu0 %v5532_v15 }
 0x1d3   :  { %2439 = vmatprep.mubr.f32.mxu1 %v5532_v15 }
 0x1d4   :  { %4625 = vmatpush1.bf16.msra.mxu0 %v5862_v4 }
 0x1d5   :  { %4657 = vmatpush1.bf16.msra.mxu1 %v5866_v5  ;;  %4627 = vmatprep.subr.bf16.mxu0 %v5868_v6 }
 0x1d6   :  { %4659 = vmatprep.subr.bf16.mxu1 %v5871_v11 }
 0x1d8   :  { %4629 = vmatpush1.bf16.msra.mxu0 %v5876_v18 }
 0x1d9   :  { %4661 = vmatpush1.bf16.msra.mxu1 %v5880_v19  ;;  %4631 = vmatprep.subr.bf16.mxu0 %v5882_v20 }
 0x1da   :  { %4663 = vmatprep.subr.bf16.mxu1 %v5885_v24 }
 0x1dc   :  { %4633 = vmatpush1.bf16.msra.mxu0 %v5888_v30 }
 0x1dd   :  { %4665 = vmatpush1.bf16.msra.mxu1 %v5892_v31  ;;  %4635 = vmatprep.subr.bf16.mxu0 %v5894_v32 }
 0x1de   :  { %4667 = vmatprep.subr.bf16.mxu1 %v5897_v36 }
 0x1e0   :  { %4637 = vmatpush1.bf16.msra.mxu0 %v5900_v41 }
 0x1e1   :  { %4669 = vmatpush1.bf16.msra.mxu1 %v5904_v42  ;;  %4639 = vmatprep.subr.bf16.mxu0 %v5906_v43 }
 0x1e2   :  { %4671 = vmatprep.subr.bf16.mxu1 %v5909_v48 }
 0x1e4   :  { %4641 = vmatpush1.bf16.msra.mxu0 %v5912_v58 }
 0x1e5   :  { %4673 = vmatpush1.bf16.msra.mxu1 %v5916_v59  ;;  %4643 = vmatprep.subr.bf16.mxu0 %v5918_v60 }
 0x1e6   :  { %4675 = vmatprep.subr.bf16.mxu1 %v5921_v1 }
 0x1e8   :  { %4645 = vmatpush1.bf16.msra.mxu0 %v5924_v12 }
 0x1e9   :  { %4677 = vmatpush1.bf16.msra.mxu1 %v5928_v13  ;;  %4647 = vmatprep.subr.bf16.mxu0 %v5930_v14 }
 0x1ea   :  { %4679 = vmatprep.subr.bf16.mxu1 %v5933_v21 }
 0x1ec   :  { %4649 = vmatpush1.bf16.msra.mxu0 %v5936_v25 }
 0x1ed   :  { %4681 = vmatpush1.bf16.msra.mxu1 %v5940_v26  ;;  %4683 = vmatprep.subr.bf16.mxu0 %v5844_v45 }
 0x1ee   :  { %4715 = vmatprep.subr.bf16.mxu1 %v5846_v49 }
 0x282   :  { %v1814_v44 = vpop.f32.mrb[16].mxu0 }
 0x283   :  { %v5146_v46 = vadd.f32 %v1814_v44, %v1586_v37  ;;  %v2027_v47 = vpop.f32.mrb[16].mxu1  ;;  %v1816_v50 = vpop.f32.mrb[17].mxu0  ;;  %v5985_v37 = vrot.slane %v482_v16, %v490_v35 }
 0x284   :  { %v5148_v51 = vadd.f32 %v2027_v47, %v1594_v38  ;;  %v5147_v52 = vadd.f32 %v1816_v50, %v1590_v39  ;;  %v2029_v53 = vpop.f32.mrb[17].mxu1 }
 0x285   :  { %v3750_v54 = vmul.f32 -1.442695, %v5146_v46  ;;  %v5149_v62 = vadd.f32 %v2029_v53, %v1598_v40  ;;  %v5989_v53 = vrot.slane %v482_v16, %v498_v9 }
 0x286   :  { %v3751_v63 = vmul.f32 -1.442695, %v5147_v52 }
 0x287   :  { %5264 = vpow2.f32 %v3750_v54  ;;  %v3752_v0 = vmul.f32 -1.442695, %v5149_v62  ;;  %v5992_v54 = vrot.slane %v482_v16, %v494_v34 }
 0x288   :  { %5266 = vpow2.f32 %v3751_v63 }
 0x289   :  { %5268 = vpow2.f32 %v3752_v0 }
 0x28a   :  { %5270 = vtanh.f32 %v5148_v51 }
 0x291   :  { %v5265_v2 = vpop.eup %5264 }
 0x292   :  { %v5267_v3 = vpop.eup %5266  ;;  %v2035_v7 = vadd.f32 1.0, %v5265_v2 }
 0x293   :  { %v2041_v8 = vadd.f32 1.0, %v5267_v3  ;;  %v5269_v10 = vpop.eup %5268 }
 0x294   :  { %5272 = vrcp.f32 %v2035_v7  ;;  %v5271_v17 = vpop.eup %5270  ;;  %v2048_v33 = vadd.f32 1.0, %v5269_v10 }
 0x295   :  { %5274 = vrcp.f32 %v2041_v8 }
 0x296   :  { %5276 = vrcp.f32 %v2048_v33 }
 0x29e   :  { %v5273_v22 = vpop.eup %5272 }
 0x29f   :  { %v5275_v23 = vpop.eup %5274  ;;  %v2052_v28 = vmul.f32 %v5273_v22, %v5271_v17 }
 0x2a0   :  { %v2051_v38 = vmul.f32 0.0, %v5275_v23  ;;  %v5277_v62 = vpop.eup %5276 }
 0x2a2   :  { %v2053_v39 = vadd.f32 %v2052_v28, %v2051_v38  ;;  %v2193_v40 = vpop.f32.mrb[0].mxu0 }
 0x2a3   :  { %v5114_v44 = vadd.f32 %v2193_v40, %v5983_v27  ;;  %v2264_v46 = vpop.f32.mrb[0].mxu1  ;;  %v2195_v47 = vpop.f32.mrb[1].mxu0 }
 0x2a4   :  { %5278 = vtanh.f32 %v2053_v39  ;;  %v5115_v50 = vadd.f32 %v2195_v47, %v5985_v37  ;;  %v2266_v51 = vpop.f32.mrb[1].mxu1  ;;  %v5130_v2 = vadd.f32 %v2264_v46, %v5992_v54 }
 0x2a5   :  { %v3753_v52 = vmul.f32 -1.442695, %v5114_v44  ;;  %v5131_v35 = vadd.f32 %v2266_v51, %v5989_v53 }
 0x2a6   :  { %v3754_v29 = vmul.f32 -1.442695, %v5115_v50 }
 0x2a7   :  { %5280 = vpow2.f32 %v3753_v52  ;;  %v3755_v0 = vmul.f32 -1.442695, %v5131_v35 }
 0x2a8   :  { %5282 = vpow2.f32 %v3754_v29 }
 0x2a9   :  { %5284 = vpow2.f32 %v3755_v0 }
 0x2aa   :  { %5286 = vtanh.f32 %v5130_v2 }
 0x2ae   :  { %v5279_v63 = vpop.eup %5278 }
 0x2af   :  { %v5995_v3 = vmul.f32 %v5279_v63, %v5277_v62 }
 0x2b1   :  { %v5281_v7 = vpop.eup %5280 }
 0x2b2   :  { %v5283_v8 = vpop.eup %5282  ;;  %v2276_v10 = vadd.f32 1.0, %v5281_v7 }
 0x2b3   :  { %v2282_v9 = vadd.f32 1.0, %v5283_v8  ;;  %v5285_v17 = vpop.eup %5284 }
 0x2b4   :  { %5288 = vrcp.f32 %v2276_v10  ;;  %v5287_v22 = vpop.eup %5286  ;;  %v2289_v28 = vadd.f32 1.0, %v5285_v17 }
 0x2b5   :  { %5290 = vrcp.f32 %v2282_v9 }
 0x2b6   :  { %5292 = vrcp.f32 %v2289_v28 }
 0x2be   :  { %v5289_v23 = vpop.eup %5288 }
 0x2bf   :  { %v5291_v34 = vpop.eup %5290  ;;  %v2293_v16 = vmul.f32 %v5289_v23, %v5287_v22 }
 0x2c0   :  { %v2292_v33 = vmul.f32 0.0, %v5291_v34  ;;  %v5293_v39 = vpop.eup %5292 }
 0x2c2   :  { %v5997_v38 = vadd.f32 %v2293_v16, %v2292_v33 }
 0x2c4   :  { %5294 = vtanh.f32 %v5997_v38 }
 0x2ce   :  { %v5295_v40 = vpop.eup %5294 }
 0x2cf   :  { %v2296_v44 = vmul.f32 %v5295_v40, %v5293_v39 }
 0x2d1   :  { %2369 = vmatmul.mubr.f32.vlgmr.msra.gmra.mrb[2].mxu0 %v2296_v44  ;;  %2440 = vmatmul.mubr.f32.vlgmr.msra.gmra.mrb[2].mxu1 %v2296_v44 }
 0x2d2   :  { %4685 = vmatpush1.bf16.msra.mxu0 %v5848_v55  ;;  %4717 = vmatpush1.bf16.msra.mxu1 %v5851_v56 }
 0x2d3   :  { %4687 = vmatprep.subr.bf16.mxu0 %v5853_v57  ;;  %4719 = vmatprep.subr.bf16.mxu1 %v5856_v61 }
 0x2d4   :  { %2545 = vmatprep.mubr.f32.mxu0 %v5532_v15  ;;  %2616 = vmatprep.mubr.f32.mxu1 %v5532_v15 }
 0x2d6   :  { %4689 = vmatpush1.bf16.msra.mxu0 %v5862_v4  ;;  %4721 = vmatpush1.bf16.msra.mxu1 %v5866_v5 }
 0x2d7   :  { %4691 = vmatprep.subr.bf16.mxu0 %v5868_v6  ;;  %4723 = vmatprep.subr.bf16.mxu1 %v5871_v11 }
 0x2da   :  { %4693 = vmatpush1.bf16.msra.mxu0 %v5876_v18  ;;  %4725 = vmatpush1.bf16.msra.mxu1 %v5880_v19 }
 0x2db   :  { %4695 = vmatprep.subr.bf16.mxu0 %v5882_v20  ;;  %4727 = vmatprep.subr.bf16.mxu1 %v5885_v24 }
 0x2de   :  { %4697 = vmatpush1.bf16.msra.mxu0 %v5888_v30  ;;  %4729 = vmatpush1.bf16.msra.mxu1 %v5892_v31 }
 0x2df   :  { %4699 = vmatprep.subr.bf16.mxu0 %v5894_v32  ;;  %4731 = vmatprep.subr.bf16.mxu1 %v5897_v36 }
 0x2e2   :  { %4701 = vmatpush1.bf16.msra.mxu0 %v5900_v41  ;;  %4733 = vmatpush1.bf16.msra.mxu1 %v5904_v42 }
 0x2e3   :  { %4703 = vmatprep.subr.bf16.mxu0 %v5906_v43  ;;  %4735 = vmatprep.subr.bf16.mxu1 %v5909_v48 }
 0x2e6   :  { %4705 = vmatpush1.bf16.msra.mxu0 %v5912_v58  ;;  %4737 = vmatpush1.bf16.msra.mxu1 %v5916_v59 }
 0x2e7   :  { %4707 = vmatprep.subr.bf16.mxu0 %v5918_v60  ;;  %4739 = vmatprep.subr.bf16.mxu1 %v5921_v1 }
 0x2ea   :  { %4709 = vmatpush1.bf16.msra.mxu0 %v5924_v12  ;;  %4741 = vmatpush1.bf16.msra.mxu1 %v5928_v13 }
 0x2eb   :  { %4711 = vmatprep.subr.bf16.mxu0 %v5930_v14  ;;  %4743 = vmatprep.subr.bf16.mxu1 %v5933_v21 }
 0x2ee   :  { %4713 = vmatpush1.bf16.msra.mxu0 %v5936_v25  ;;  %4745 = vmatpush1.bf16.msra.mxu1 %v5940_v26 }
 0x2ef   :  { %4747 = vmatprep.subr.bf16.mxu0 %v5844_v45  ;;  %4779 = vmatprep.subr.bf16.mxu1 %v5846_v49 }
 0x3a4   :  { %v2370_v46 = vpop.f32.mrb[2].mxu0  ;;  %v2441_v47 = vpop.f32.mrb[2].mxu1 }
 0x3a5   :  { %v5116_v50 = vadd.f32 %v2370_v46, %v5983_v27  ;;  %v2372_v51 = vpop.f32.mrb[3].mxu0  ;;  %v2443_v52 = vpop.f32.mrb[3].mxu1  ;;  %v5132_v2 = vadd.f32 %v2441_v47, %v5992_v54 }
 0x3a6   :  { %v5117_v29 = vadd.f32 %v2372_v51, %v5985_v37  ;;  %v5133_v63 = vadd.f32 %v2443_v52, %v5989_v53 }
 0x3a7   :  { %v3756_v35 = vmul.f32 -1.442695, %v5116_v50 }
 0x3a8   :  { %v3757_v62 = vmul.f32 -1.442695, %v5117_v29  ;;  %v3758_v0 = vmul.f32 -1.442695, %v5133_v63 }
 0x3a9   :  { %5296 = vpow2.f32 %v3756_v35 }
 0x3aa   :  { %5298 = vpow2.f32 %v3757_v62 }
 0x3ab   :  { %5300 = vpow2.f32 %v3758_v0 }
 0x3ac   :  { %5302 = vtanh.f32 %v5132_v2 }
 0x3b3   :  { %v5297_v7 = vpop.eup %5296 }
 0x3b4   :  { %v5299_v8 = vpop.eup %5298  ;;  %v2453_v10 = vadd.f32 1.0, %v5297_v7 }
 0x3b5   :  { %v2459_v9 = vadd.f32 1.0, %v5299_v8  ;;  %v5301_v17 = vpop.eup %5300 }
 0x3b6   :  { %5304 = vrcp.f32 %v2453_v10  ;;  %v5303_v22 = vpop.eup %5302  ;;  %v2466_v28 = vadd.f32 1.0, %v5301_v17 }
 0x3b7   :  { %5306 = vrcp.f32 %v2459_v9 }
 0x3b8   :  { %5308 = vrcp.f32 %v2466_v28 }
 0x3c0   :  { %v5305_v23 = vpop.eup %5304 }
 0x3c1   :  { %v5307_v34 = vpop.eup %5306  ;;  %v2470_v16 = vmul.f32 %v5305_v23, %v5303_v22 }
 0x3c2   :  { %v2469_v33 = vmul.f32 %v5307_v34, %v5997_v38  ;;  %v5309_v40 = vpop.eup %5308 }
 0x3c4   :  { %v6039_v39 = vadd.f32 %v2470_v16, %v2469_v33 }
 0x3c6   :  { %5310 = vtanh.f32 %v6039_v39 }
 0x3d0   :  { %v5311_v44 = vpop.eup %5310 }
 0x3d1   :  { %v2473_v46 = vmul.f32 %v5311_v44, %v5309_v40 }
 0x3d3   :  { %2546 = vmatmul.mubr.f32.vlgmr.msra.gmra.mrb[4].mxu0 %v2473_v46  ;;  %2617 = vmatmul.mubr.f32.vlgmr.msra.gmra.mrb[4].mxu1 %v2473_v46 }
 0x3d4   :  { %4749 = vmatpush1.bf16.msra.mxu0 %v5848_v55  ;;  %4781 = vmatpush1.bf16.msra.mxu1 %v5851_v56 }
 0x3d5   :  { %4751 = vmatprep.subr.bf16.mxu0 %v5853_v57  ;;  %4783 = vmatprep.subr.bf16.mxu1 %v5856_v61 }
 0x3d6   :  { %2722 = vmatprep.mubr.f32.mxu0 %v5532_v15  ;;  %2793 = vmatprep.mubr.f32.mxu1 %v5532_v15 }
 0x3d8   :  { %4753 = vmatpush1.bf16.msra.mxu0 %v5862_v4  ;;  %4785 = vmatpush1.bf16.msra.mxu1 %v5866_v5 }
 0x3d9   :  { %4755 = vmatprep.subr.bf16.mxu0 %v5868_v6  ;;  %4787 = vmatprep.subr.bf16.mxu1 %v5871_v11 }
 0x3dc   :  { %4757 = vmatpush1.bf16.msra.mxu0 %v5876_v18  ;;  %4789 = vmatpush1.bf16.msra.mxu1 %v5880_v19 }
 0x3dd   :  { %4759 = vmatprep.subr.bf16.mxu0 %v5882_v20  ;;  %4791 = vmatprep.subr.bf16.mxu1 %v5885_v24 }
 0x3e0   :  { %4761 = vmatpush1.bf16.msra.mxu0 %v5888_v30  ;;  %4793 = vmatpush1.bf16.msra.mxu1 %v5892_v31 }
 0x3e1   :  { %4763 = vmatprep.subr.bf16.mxu0 %v5894_v32  ;;  %4795 = vmatprep.subr.bf16.mxu1 %v5897_v36 }
 0x3e4   :  { %4765 = vmatpush1.bf16.msra.mxu0 %v5900_v41  ;;  %4797 = vmatpush1.bf16.msra.mxu1 %v5904_v42 }
 0x3e5   :  { %4767 = vmatprep.subr.bf16.mxu0 %v5906_v43  ;;  %4799 = vmatprep.subr.bf16.mxu1 %v5909_v48 }
 0x3e8   :  { %4769 = vmatpush1.bf16.msra.mxu0 %v5912_v58  ;;  %4801 = vmatpush1.bf16.msra.mxu1 %v5916_v59 }
 0x3e9   :  { %4771 = vmatprep.subr.bf16.mxu0 %v5918_v60  ;;  %4803 = vmatprep.subr.bf16.mxu1 %v5921_v1 }
 0x3ec   :  { %4773 = vmatpush1.bf16.msra.mxu0 %v5924_v12  ;;  %4805 = vmatpush1.bf16.msra.mxu1 %v5928_v13 }
 0x3ed   :  { %4775 = vmatprep.subr.bf16.mxu0 %v5930_v14  ;;  %4807 = vmatprep.subr.bf16.mxu1 %v5933_v21 }
 0x3f0   :  { %4777 = vmatpush1.bf16.msra.mxu0 %v5936_v25  ;;  %4809 = vmatpush1.bf16.msra.mxu1 %v5940_v26 }
 0x3f1   :  { %4811 = vmatprep.subr.bf16.mxu0 %v5844_v45  ;;  %4843 = vmatprep.subr.bf16.mxu1 %v5846_v49 }
 0x4a6   :  { %v2547_v38 = vpop.f32.mrb[4].mxu0  ;;  %v2618_v47 = vpop.f32.mrb[4].mxu1 }
 0x4a7   :  { %v5118_v50 = vadd.f32 %v2547_v38, %v5983_v27  ;;  %v2549_v51 = vpop.f32.mrb[5].mxu0  ;;  %v2620_v52 = vpop.f32.mrb[5].mxu1  ;;  %v5134_v2 = vadd.f32 %v2618_v47, %v5992_v54 }
 0x4a8   :  { %v5119_v29 = vadd.f32 %v2549_v51, %v5985_v37  ;;  %v5135_v63 = vadd.f32 %v2620_v52, %v5989_v53 }
 0x4a9   :  { %v3759_v35 = vmul.f32 -1.442695, %v5118_v50 }
 0x4aa   :  { %v3760_v62 = vmul.f32 -1.442695, %v5119_v29  ;;  %v3761_v0 = vmul.f32 -1.442695, %v5135_v63 }
 0x4ab   :  { %5312 = vpow2.f32 %v3759_v35 }
 0x4ac   :  { %5314 = vpow2.f32 %v3760_v62 }
 0x4ad   :  { %5316 = vpow2.f32 %v3761_v0 }
 0x4ae   :  { %5318 = vtanh.f32 %v5134_v2 }
 0x4b5   :  { %v5313_v7 = vpop.eup %5312 }
 0x4b6   :  { %v5315_v8 = vpop.eup %5314  ;;  %v2630_v10 = vadd.f32 1.0, %v5313_v7 }
 0x4b7   :  { %v2636_v9 = vadd.f32 1.0, %v5315_v8  ;;  %v5317_v17 = vpop.eup %5316 }
 0x4b8   :  { %5320 = vrcp.f32 %v2630_v10  ;;  %v5319_v22 = vpop.eup %5318  ;;  %v2643_v28 = vadd.f32 1.0, %v5317_v17 }
 0x4b9   :  { %5322 = vrcp.f32 %v2636_v9 }
 0x4ba   :  { %5324 = vrcp.f32 %v2643_v28 }
 0x4c2   :  { %v5321_v23 = vpop.eup %5320 }
 0x4c3   :  { %v5323_v34 = vpop.eup %5322  ;;  %v2647_v16 = vmul.f32 %v5321_v23, %v5319_v22 }
 0x4c4   :  { %v2646_v33 = vmul.f32 %v5323_v34, %v6039_v39  ;;  %v5325_v44 = vpop.eup %5324 }
 0x4c6   :  { %v6081_v40 = vadd.f32 %v2647_v16, %v2646_v33 }
 0x4c8   :  { %5326 = vtanh.f32 %v6081_v40 }
 0x4d2   :  { %v5327_v46 = vpop.eup %5326 }
 0x4d3   :  { %v2650_v38 = vmul.f32 %v5327_v46, %v5325_v44 }
 0x4d5   :  { %2723 = vmatmul.mubr.f32.vlgmr.msra.gmra.mrb[6].mxu0 %v2650_v38  ;;  %2794 = vmatmul.mubr.f32.vlgmr.msra.gmra.mrb[6].mxu1 %v2650_v38 }
 0x4d6   :  { %4813 = vmatpush1.bf16.msra.mxu0 %v5848_v55  ;;  %4845 = vmatpush1.bf16.msra.mxu1 %v5851_v56 }
 0x4d7   :  { %4815 = vmatprep.subr.bf16.mxu0 %v5853_v57  ;;  %4847 = vmatprep.subr.bf16.mxu1 %v5856_v61 }
 0x4d8   :  { %2899 = vmatprep.mubr.f32.mxu0 %v5532_v15  ;;  %2970 = vmatprep.mubr.f32.mxu1 %v5532_v15 }
 0x4da   :  { %4817 = vmatpush1.bf16.msra.mxu0 %v5862_v4  ;;  %4849 = vmatpush1.bf16.msra.mxu1 %v5866_v5 }
 0x4db   :  { %4819 = vmatprep.subr.bf16.mxu0 %v5868_v6  ;;  %4851 = vmatprep.subr.bf16.mxu1 %v5871_v11 }
 0x4de   :  { %4821 = vmatpush1.bf16.msra.mxu0 %v5876_v18  ;;  %4853 = vmatpush1.bf16.msra.mxu1 %v5880_v19 }
 0x4df   :  { %4823 = vmatprep.subr.bf16.mxu0 %v5882_v20  ;;  %4855 = vmatprep.subr.bf16.mxu1 %v5885_v24 }
 0x4e2   :  { %4825 = vmatpush1.bf16.msra.mxu0 %v5888_v30  ;;  %4857 = vmatpush1.bf16.msra.mxu1 %v5892_v31 }
 0x4e3   :  { %4827 = vmatprep.subr.bf16.mxu0 %v5894_v32  ;;  %4859 = vmatprep.subr.bf16.mxu1 %v5897_v36 }
 0x4e6   :  { %4829 = vmatpush1.bf16.msra.mxu0 %v5900_v41  ;;  %4861 = vmatpush1.bf16.msra.mxu1 %v5904_v42 }
 0x4e7   :  { %4831 = vmatprep.subr.bf16.mxu0 %v5906_v43  ;;  %4863 = vmatprep.subr.bf16.mxu1 %v5909_v48 }
 0x4ea   :  { %4833 = vmatpush1.bf16.msra.mxu0 %v5912_v58  ;;  %4865 = vmatpush1.bf16.msra.mxu1 %v5916_v59 }
 0x4eb   :  { %4835 = vmatprep.subr.bf16.mxu0 %v5918_v60  ;;  %4867 = vmatprep.subr.bf16.mxu1 %v5921_v1 }
 0x4ee   :  { %4837 = vmatpush1.bf16.msra.mxu0 %v5924_v12  ;;  %4869 = vmatpush1.bf16.msra.mxu1 %v5928_v13 }
 0x4ef   :  { %4839 = vmatprep.subr.bf16.mxu0 %v5930_v14  ;;  %4871 = vmatprep.subr.bf16.mxu1 %v5933_v21 }
 0x4f2   :  { %4841 = vmatpush1.bf16.msra.mxu0 %v5936_v25  ;;  %4873 = vmatpush1.bf16.msra.mxu1 %v5940_v26 }
 0x4f3   :  { %4875 = vmatprep.subr.bf16.mxu0 %v5844_v45  ;;  %4907 = vmatprep.subr.bf16.mxu1 %v5846_v49 }
 0x5a8   :  { %v2724_v39 = vpop.f32.mrb[6].mxu0  ;;  %v2795_v47 = vpop.f32.mrb[6].mxu1 }
 0x5a9   :  { %v5120_v50 = vadd.f32 %v2724_v39, %v5983_v27  ;;  %v2726_v51 = vpop.f32.mrb[7].mxu0  ;;  %v2797_v52 = vpop.f32.mrb[7].mxu1  ;;  %v5136_v2 = vadd.f32 %v2795_v47, %v5992_v54 }
 0x5aa   :  { %v5121_v29 = vadd.f32 %v2726_v51, %v5985_v37  ;;  %v5137_v63 = vadd.f32 %v2797_v52, %v5989_v53 }
 0x5ab   :  { %v3762_v35 = vmul.f32 -1.442695, %v5120_v50 }
 0x5ac   :  { %v3763_v62 = vmul.f32 -1.442695, %v5121_v29  ;;  %v3764_v0 = vmul.f32 -1.442695, %v5137_v63 }
 0x5ad   :  { %5328 = vpow2.f32 %v3762_v35 }
 0x5ae   :  { %5330 = vpow2.f32 %v3763_v62 }
 0x5af   :  { %5332 = vpow2.f32 %v3764_v0 }
 0x5b0   :  { %5334 = vtanh.f32 %v5136_v2 }
 0x5b7   :  { %v5329_v7 = vpop.eup %5328 }
 0x5b8   :  { %v5331_v8 = vpop.eup %5330  ;;  %v2807_v10 = vadd.f32 1.0, %v5329_v7 }
 0x5b9   :  { %v2813_v9 = vadd.f32 1.0, %v5331_v8  ;;  %v5333_v17 = vpop.eup %5332 }
 0x5ba   :  { %5336 = vrcp.f32 %v2807_v10  ;;  %v5335_v22 = vpop.eup %5334  ;;  %v2820_v28 = vadd.f32 1.0, %v5333_v17 }
 0x5bb   :  { %5338 = vrcp.f32 %v2813_v9 }
 0x5bc   :  { %5340 = vrcp.f32 %v2820_v28 }
 0x5c4   :  { %v5337_v23 = vpop.eup %5336 }
 0x5c5   :  { %v5339_v34 = vpop.eup %5338  ;;  %v2824_v16 = vmul.f32 %v5337_v23, %v5335_v22 }
 0x5c6   :  { %v2823_v33 = vmul.f32 %v5339_v34, %v6081_v40  ;;  %v5341_v46 = vpop.eup %5340 }
 0x5c8   :  { %v6123_v44 = vadd.f32 %v2824_v16, %v2823_v33 }
 0x5ca   :  { %5342 = vtanh.f32 %v6123_v44 }
 0x5d4   :  { %v5343_v38 = vpop.eup %5342 }
 0x5d5   :  { %v2827_v39 = vmul.f32 %v5343_v38, %v5341_v46 }
 0x5d7   :  { %2900 = vmatmul.mubr.f32.vlgmr.msra.gmra.mrb[8].mxu0 %v2827_v39  ;;  %2971 = vmatmul.mubr.f32.vlgmr.msra.gmra.mrb[8].mxu1 %v2827_v39 }
 0x5d8   :  { %4877 = vmatpush1.bf16.msra.mxu0 %v5848_v55  ;;  %4909 = vmatpush1.bf16.msra.mxu1 %v5851_v56 }
 0x5d9   :  { %4879 = vmatprep.subr.bf16.mxu0 %v5853_v57  ;;  %4911 = vmatprep.subr.bf16.mxu1 %v5856_v61 }
 0x5da   :  { %3076 = vmatprep.mubr.f32.mxu0 %v5532_v15  ;;  %3147 = vmatprep.mubr.f32.mxu1 %v5532_v15 }
 0x5dc   :  { %4881 = vmatpush1.bf16.msra.mxu0 %v5862_v4  ;;  %4913 = vmatpush1.bf16.msra.mxu1 %v5866_v5 }
 0x5dd   :  { %4883 = vmatprep.subr.bf16.mxu0 %v5868_v6  ;;  %4915 = vmatprep.subr.bf16.mxu1 %v5871_v11 }
 0x5e0   :  { %4885 = vmatpush1.bf16.msra.mxu0 %v5876_v18  ;;  %4917 = vmatpush1.bf16.msra.mxu1 %v5880_v19 }
 0x5e1   :  { %4887 = vmatprep.subr.bf16.mxu0 %v5882_v20  ;;  %4919 = vmatprep.subr.bf16.mxu1 %v5885_v24 }
 0x5e4   :  { %4889 = vmatpush1.bf16.msra.mxu0 %v5888_v30  ;;  %4921 = vmatpush1.bf16.msra.mxu1 %v5892_v31 }
 0x5e5   :  { %4891 = vmatprep.subr.bf16.mxu0 %v5894_v32  ;;  %4923 = vmatprep.subr.bf16.mxu1 %v5897_v36 }
 0x5e8   :  { %4893 = vmatpush1.bf16.msra.mxu0 %v5900_v41  ;;  %4925 = vmatpush1.bf16.msra.mxu1 %v5904_v42 }
 0x5e9   :  { %4895 = vmatprep.subr.bf16.mxu0 %v5906_v43  ;;  %4927 = vmatprep.subr.bf16.mxu1 %v5909_v48 }
 0x5ec   :  { %4897 = vmatpush1.bf16.msra.mxu0 %v5912_v58  ;;  %4929 = vmatpush1.bf16.msra.mxu1 %v5916_v59 }
 0x5ed   :  { %4899 = vmatprep.subr.bf16.mxu0 %v5918_v60  ;;  %4931 = vmatprep.subr.bf16.mxu1 %v5921_v1 }
 0x5f0   :  { %4901 = vmatpush1.bf16.msra.mxu0 %v5924_v12  ;;  %4933 = vmatpush1.bf16.msra.mxu1 %v5928_v13 }
 0x5f1   :  { %4903 = vmatprep.subr.bf16.mxu0 %v5930_v14  ;;  %4935 = vmatprep.subr.bf16.mxu1 %v5933_v21 }
 0x5f4   :  { %4905 = vmatpush1.bf16.msra.mxu0 %v5936_v25  ;;  %4937 = vmatpush1.bf16.msra.mxu1 %v5940_v26 }
 0x5f5   :  { %4939 = vmatprep.subr.bf16.mxu0 %v5844_v45  ;;  %4971 = vmatprep.subr.bf16.mxu1 %v5846_v49 }
 0x6aa   :  { %v2901_v40 = vpop.f32.mrb[8].mxu0  ;;  %v2972_v47 = vpop.f32.mrb[8].mxu1 }
 0x6ab   :  { %v5122_v50 = vadd.f32 %v2901_v40, %v5983_v27  ;;  %v2903_v51 = vpop.f32.mrb[9].mxu0  ;;  %v2974_v52 = vpop.f32.mrb[9].mxu1  ;;  %v5138_v2 = vadd.f32 %v2972_v47, %v5992_v54 }
 0x6ac   :  { %v5123_v29 = vadd.f32 %v2903_v51, %v5985_v37  ;;  %v5139_v63 = vadd.f32 %v2974_v52, %v5989_v53 }
 0x6ad   :  { %v3765_v35 = vmul.f32 -1.442695, %v5122_v50 }
 0x6ae   :  { %v3766_v62 = vmul.f32 -1.442695, %v5123_v29  ;;  %v3767_v0 = vmul.f32 -1.442695, %v5139_v63 }
 0x6af   :  { %5344 = vpow2.f32 %v3765_v35 }
 0x6b0   :  { %5346 = vpow2.f32 %v3766_v62 }
 0x6b1   :  { %5348 = vpow2.f32 %v3767_v0 }
 0x6b2   :  { %5350 = vtanh.f32 %v5138_v2 }
 0x6b9   :  { %v5345_v7 = vpop.eup %5344 }
 0x6ba   :  { %v5347_v8 = vpop.eup %5346  ;;  %v2984_v10 = vadd.f32 1.0, %v5345_v7 }
 0x6bb   :  { %v2990_v9 = vadd.f32 1.0, %v5347_v8  ;;  %v5349_v17 = vpop.eup %5348 }
 0x6bc   :  { %5352 = vrcp.f32 %v2984_v10  ;;  %v5351_v22 = vpop.eup %5350  ;;  %v2997_v28 = vadd.f32 1.0, %v5349_v17 }
 0x6bd   :  { %5354 = vrcp.f32 %v2990_v9 }
 0x6be   :  { %5356 = vrcp.f32 %v2997_v28 }
 0x6c6   :  { %v5353_v23 = vpop.eup %5352 }
 0x6c7   :  { %v5355_v34 = vpop.eup %5354  ;;  %v3001_v16 = vmul.f32 %v5353_v23, %v5351_v22 }
 0x6c8   :  { %v3000_v33 = vmul.f32 %v5355_v34, %v6123_v44  ;;  %v5357_v38 = vpop.eup %5356 }
 0x6ca   :  { %v6165_v46 = vadd.f32 %v3001_v16, %v3000_v33 }
 0x6cc   :  { %5358 = vtanh.f32 %v6165_v46 }
 0x6d6   :  { %v5359_v39 = vpop.eup %5358 }
 0x6d7   :  { %v3004_v40 = vmul.f32 %v5359_v39, %v5357_v38 }
 0x6d9   :  { %3077 = vmatmul.mubr.f32.vlgmr.msra.gmra.mrb[10].mxu0 %v3004_v40  ;;  %3148 = vmatmul.mubr.f32.vlgmr.msra.gmra.mrb[10].mxu1 %v3004_v40  ;;  %v3555_v40 = vld [vmem:[%s6380_s7 + $0x18] sm:$0xff] }
 0x6da   :  { %4941 = vmatpush1.bf16.msra.mxu0 %v5848_v55  ;;  %4973 = vmatpush1.bf16.msra.mxu1 %v5851_v56 }
 0x6db   :  { %4943 = vmatprep.subr.bf16.mxu0 %v5853_v57  ;;  %4975 = vmatprep.subr.bf16.mxu1 %v5856_v61 }
 0x6dc   :  { %3253 = vmatprep.mubr.f32.mxu0 %v5532_v15  ;;  %3324 = vmatprep.mubr.f32.mxu1 %v5532_v15 }
 0x6de   :  { %4945 = vmatpush1.bf16.msra.mxu0 %v5862_v4  ;;  %4977 = vmatpush1.bf16.msra.mxu1 %v5866_v5 }
 0x6df   :  { %4947 = vmatprep.subr.bf16.mxu0 %v5868_v6  ;;  %4979 = vmatprep.subr.bf16.mxu1 %v5871_v11 }
 0x6e2   :  { %4949 = vmatpush1.bf16.msra.mxu0 %v5876_v18  ;;  %4981 = vmatpush1.bf16.msra.mxu1 %v5880_v19 }
 0x6e3   :  { %4951 = vmatprep.subr.bf16.mxu0 %v5882_v20  ;;  %4983 = vmatprep.subr.bf16.mxu1 %v5885_v24 }
 0x6e6   :  { %4953 = vmatpush1.bf16.msra.mxu0 %v5888_v30  ;;  %4985 = vmatpush1.bf16.msra.mxu1 %v5892_v31 }
 0x6e7   :  { %4955 = vmatprep.subr.bf16.mxu0 %v5894_v32  ;;  %4987 = vmatprep.subr.bf16.mxu1 %v5897_v36 }
 0x6ea   :  { %4957 = vmatpush1.bf16.msra.mxu0 %v5900_v41  ;;  %4989 = vmatpush1.bf16.msra.mxu1 %v5904_v42 }
 0x6eb   :  { %4959 = vmatprep.subr.bf16.mxu0 %v5906_v43  ;;  %4991 = vmatprep.subr.bf16.mxu1 %v5909_v48 }
 0x6ee   :  { %4961 = vmatpush1.bf16.msra.mxu0 %v5912_v58  ;;  %4993 = vmatpush1.bf16.msra.mxu1 %v5916_v59 }
 0x6ef   :  { %4963 = vmatprep.subr.bf16.mxu0 %v5918_v60  ;;  %4995 = vmatprep.subr.bf16.mxu1 %v5921_v1 }
 0x6f2   :  { %4965 = vmatpush1.bf16.msra.mxu0 %v5924_v12  ;;  %4997 = vmatpush1.bf16.msra.mxu1 %v5928_v13 }
 0x6f3   :  { %4967 = vmatprep.subr.bf16.mxu0 %v5930_v14  ;;  %4999 = vmatprep.subr.bf16.mxu1 %v5933_v21 }
 0x6f6   :  { %4969 = vmatpush1.bf16.msra.mxu0 %v5936_v25  ;;  %5001 = vmatpush1.bf16.msra.mxu1 %v5940_v26 }
 0x6f7   :  { %5003 = vmatprep.subr.bf16.mxu0 %v5844_v45  ;;  %5035 = vmatprep.subr.bf16.mxu1 %v5846_v49 }
 0x7ac   :  { %v3078_v44 = vpop.f32.mrb[10].mxu0  ;;  %v3149_v47 = vpop.f32.mrb[10].mxu1 }
 0x7ad   :  { %v5124_v50 = vadd.f32 %v3078_v44, %v5983_v27  ;;  %v3080_v51 = vpop.f32.mrb[11].mxu0  ;;  %v3151_v52 = vpop.f32.mrb[11].mxu1  ;;  %v5140_v2 = vadd.f32 %v3149_v47, %v5992_v54  ;;  %v3556_v47 = vld [vmem:[%s6380_s7 + $0x20] sm:$0xff] }
 0x7ae   :  { %v5125_v29 = vadd.f32 %v3080_v51, %v5985_v37  ;;  %v5141_v63 = vadd.f32 %v3151_v52, %v5989_v53  ;;  %v3558_v52 = vld [vmem:[%s6380_s7 + $0x30] sm:$0xff] }
 0x7af   :  { %v3768_v35 = vmul.f32 -1.442695, %v5124_v50  ;;  %v3557_v50 = vld [vmem:[%s6380_s7 + $0x28] sm:$0xff] }
 0x7b0   :  { %v3769_v62 = vmul.f32 -1.442695, %v5125_v29  ;;  %v3770_v0 = vmul.f32 -1.442695, %v5141_v63  ;;  %v5073_v51 = vpack.c.bf16 %v3557_v50, %v3556_v47  ;;  %v3559_v29 = vld [vmem:[%s6380_s7 + $0x38] sm:$0xff] }
 0x7b1   :  { %5360 = vpow2.f32 %v3768_v35  ;;  %v5076_v35 = vpack.c.bf16 %v3559_v29, %v3558_v52 }
 0x7b2   :  { %5362 = vpow2.f32 %v3769_v62  ;;  %v3561_v62 = vld [vmem:[%s6380_s7 + $0x48] sm:$0xff] }
 0x7b3   :  { %5364 = vpow2.f32 %v3770_v0  ;;  %v3562_v0 = vld [vmem:[%s6380_s7 + $0x50] sm:$0xff] }
 0x7b4   :  { %5366 = vtanh.f32 %v5140_v2  ;;  %v3563_v2 = vld [vmem:[%s6380_s7 + $0x58] sm:$0xff] }
 0x7bb   :  { %v5361_v45 = vpop.eup %5360 }
 0x7bc   :  { %v5363_v7 = vpop.eup %5362  ;;  %v3161_v49 = vadd.f32 1.0, %v5361_v45  ;;  %v5082_v45 = vpack.c.bf16 %v3563_v2, %v3562_v0 }
 0x7bd   :  { %v3167_v8 = vadd.f32 1.0, %v5363_v7  ;;  %v5365_v10 = vpop.eup %5364  ;;  %v3564_v7 = vld [vmem:[%s6380_s7 + $0x60] sm:$0xff] }
 0x7be   :  { %5368 = vrcp.f32 %v3161_v49  ;;  %v5367_v9 = vpop.eup %5366  ;;  %v3174_v34 = vadd.f32 1.0, %v5365_v10  ;;  %v3565_v49 = vld [vmem:[%s6380_s7 + $0x68] sm:$0xff]  ;;  %v3566_v10 = vld [vmem:[%s6380_s7 + $0x70] sm:$0xff] }
 0x7bf   :  { %5370 = vrcp.f32 %v3167_v8  ;;  %v5085_v8 = vpack.c.bf16 %v3565_v49, %v3564_v7 }
 0x7c0   :  { %5372 = vrcp.f32 %v3174_v34 }
 0x7c8   :  { %v5369_v17 = vpop.eup %5368 }
 0x7c9   :  { %v5371_v22 = vpop.eup %5370  ;;  %v3178_v23 = vmul.f32 %v5369_v17, %v5367_v9  ;;  %v3567_v9 = vld [vmem:[%s6380_s7 + $0x78] sm:$0xff] }
 0x7ca   :  { %v3177_v16 = vmul.f32 %v5371_v22, %v6165_v46  ;;  %v5373_v33 = vpop.eup %5372  ;;  %v3554_v46 = vld [vmem:[%s6380_s7 + $0x10] sm:$0xff]  ;;  %v5088_v17 = vpack.c.bf16 %v3567_v9, %v3566_v10  ;;  %v3536_v22 = vld [vmem:[%s6379_s6] sm:$0xff] }
 0x7cb   :  { %v5070_v44 = vpack.c.bf16 %v3555_v40, %v3554_v46 }
 0x7cc   :  { %v6207_v28 = vadd.f32 %v3178_v23, %v3177_v16  ;;  %v3537_v23 = vld [vmem:[%s6379_s6 + $0x8] sm:$0xff]  ;;  %v3538_v16 = vld [vmem:[%s6379_s6 + $0x10] sm:$0xff] }
 0x7cd   :  { %v5091_v34 = vpack.c.bf16 %v3537_v23, %v3536_v22 }
 0x7ce   :  { %5374 = vtanh.f32 %v6207_v28 }
 0x7d8   :  { %v5375_v38 = vpop.eup %5374 }
 0x7d9   :  { %v3181_v39 = vmul.f32 %v5375_v38, %v5373_v33  ;;  %v3540_v33 = vld [vmem:[%s6379_s6 + $0x20] sm:$0xff]  ;;  %v3541_v38 = vld [vmem:[%s6379_s6 + $0x28] sm:$0xff] }
 0x7db   :  { %3254 = vmatmul.mubr.f32.vlgmr.msra.gmra.mrb[12].mxu0 %v3181_v39  ;;  %3325 = vmatmul.mubr.f32.vlgmr.msra.gmra.mrb[12].mxu1 %v3181_v39  ;;  %v5097_v39 = vpack.c.bf16 %v3541_v38, %v3540_v33 }
 0x7dc   :  { %5005 = vmatpush1.bf16.msra.mxu0 %v5848_v55  ;;  %5037 = vmatpush1.bf16.msra.mxu1 %v5851_v56  ;;  %v5533_v55 = vmov 0.0|0.0  }
 0x7dd   :  { %5007 = vmatprep.subr.bf16.mxu0 %v5853_v57  ;;  %5039 = vmatprep.subr.bf16.mxu1 %v5856_v61 }
 0x7de   :  { %3430 = vmatprep.mubr.f32.mxu0 %v5532_v15  ;;  %3501 = vmatprep.mubr.f32.mxu1 %v5532_v15 }
 0x7e0   :  { %5009 = vmatpush1.bf16.msra.mxu0 %v5862_v4  ;;  %5041 = vmatpush1.bf16.msra.mxu1 %v5866_v5 }
 0x7e1   :  { %5011 = vmatprep.subr.bf16.mxu0 %v5868_v6  ;;  %5043 = vmatprep.subr.bf16.mxu1 %v5871_v11 }
 0x7e4   :  { %5013 = vmatpush1.bf16.msra.mxu0 %v5876_v18  ;;  %5045 = vmatpush1.bf16.msra.mxu1 %v5880_v19 }
 0x7e5   :  { %5015 = vmatprep.subr.bf16.mxu0 %v5882_v20  ;;  %5047 = vmatprep.subr.bf16.mxu1 %v5885_v24 }
 0x7e8   :  { %5017 = vmatpush1.bf16.msra.mxu0 %v5888_v30  ;;  %5049 = vmatpush1.bf16.msra.mxu1 %v5892_v31 }
 0x7e9   :  { %5019 = vmatprep.subr.bf16.mxu0 %v5894_v32  ;;  %5051 = vmatprep.subr.bf16.mxu1 %v5897_v36 }
 0x7ec   :  { %5021 = vmatpush1.bf16.msra.mxu0 %v5900_v41  ;;  %5053 = vmatpush1.bf16.msra.mxu1 %v5904_v42 }
 0x7ed   :  { %5023 = vmatprep.subr.bf16.mxu0 %v5906_v43  ;;  %5055 = vmatprep.subr.bf16.mxu1 %v5909_v48 }
 0x7f0   :  { %5025 = vmatpush1.bf16.msra.mxu0 %v5912_v58  ;;  %5057 = vmatpush1.bf16.msra.mxu1 %v5916_v59 }
 0x7f1   :  { %5027 = vmatprep.subr.bf16.mxu0 %v5918_v60  ;;  %5059 = vmatprep.subr.bf16.mxu1 %v5921_v1 }
 0x7f4   :  { %5029 = vmatpush1.bf16.msra.mxu0 %v5924_v12  ;;  %5061 = vmatpush1.bf16.msra.mxu1 %v5928_v13  ;;  %v3552_v12 = vld [vmem:[%s6380_s7] sm:$0xff]  ;;  %v3553_v13 = vld [vmem:[%s6380_s7 + $0x8] sm:$0xff] }
 0x7f5   :  { %5031 = vmatprep.subr.bf16.mxu0 %v5930_v14  ;;  %5063 = vmatprep.subr.bf16.mxu1 %v5933_v21 }
 0x7f8   :  { %5033 = vmatpush1.bf16.msra.mxu0 %v5936_v25  ;;  %5065 = vmatpush1.bf16.msra.mxu1 %v5940_v26  ;;  %v5067_v25 = vpack.c.bf16 %v3553_v13, %v3552_v12 }
 0x7f9   :  { %5066 = vmatprep.subr.bf16.mxu0 %v5533_v55  ;;  %5090 = vmatprep.subr.bf16.mxu1 %v5533_v55 }
 0x8ae   :  { %v3255_v56 = vpop.f32.mrb[12].mxu0  ;;  %v3326_v57 = vpop.f32.mrb[12].mxu1 }
 0x8af   :  { %v5126_v61 = vadd.f32 %v3255_v56, %v5983_v27  ;;  %v3257_v4 = vpop.f32.mrb[13].mxu0  ;;  %v3328_v5 = vpop.f32.mrb[13].mxu1  ;;  %v5142_v24 = vadd.f32 %v3326_v57, %v5992_v54  ;;  %v3542_v56 = vld [vmem:[%s6379_s6 + $0x30] sm:$0xff]  ;;  %v3543_v57 = vld [vmem:[%s6379_s6 + $0x38] sm:$0xff] }
 0x8b0   :  { %v5127_v6 = vadd.f32 %v3257_v4, %v5985_v37  ;;  %v5143_v19 = vadd.f32 %v3328_v5, %v5989_v53  ;;  %v3544_v4 = vld [vmem:[%s6379_s6 + $0x40] sm:$0xff]  ;;  %v3545_v5 = vld [vmem:[%s6379_s6 + $0x48] sm:$0xff] }
 0x8b1   :  { %v3771_v11 = vmul.f32 -1.442695, %v5126_v61  ;;  %v5100_v61 = vpack.c.bf16 %v3543_v57, %v3542_v56 }
 0x8b2   :  { %v3772_v18 = vmul.f32 -1.442695, %v5127_v6  ;;  %v3773_v20 = vmul.f32 -1.442695, %v5143_v19  ;;  %v5103_v6 = vpack.c.bf16 %v3545_v5, %v3544_v4  ;;  %v3548_v19 = vld [vmem:[%s6379_s6 + $0x60] sm:$0xff] }
 0x8b3   :  { %5376 = vpow2.f32 %v3771_v11  ;;  %v3546_v11 = vld [vmem:[%s6379_s6 + $0x50] sm:$0xff] }
 0x8b4   :  { %5378 = vpow2.f32 %v3772_v18  ;;  %v3547_v18 = vld [vmem:[%s6379_s6 + $0x58] sm:$0xff] }
 0x8b5   :  { %5380 = vpow2.f32 %v3773_v20  ;;  %v5106_v20 = vpack.c.bf16 %v3547_v18, %v3546_v11 }
 0x8b6   :  { %5382 = vtanh.f32 %v5142_v24  ;;  %v3549_v24 = vld [vmem:[%s6379_s6 + $0x68] sm:$0xff] }
 0x8bd   :  { %v5377_v30 = vpop.eup %5376 }
 0x8be   :  { %v5379_v31 = vpop.eup %5378  ;;  %v3338_v32 = vadd.f32 1.0, %v5377_v30  ;;  %v5109_v30 = vpack.c.bf16 %v3549_v24, %v3548_v19 }
 0x8bf   :  { %v3344_v36 = vadd.f32 1.0, %v5379_v31  ;;  %v5381_v41 = vpop.eup %5380  ;;  %v3550_v31 = vld [vmem:[%s6379_s6 + $0x70] sm:$0xff] }
 0x8c0   :  { %5384 = vrcp.f32 %v3338_v32  ;;  %v5383_v42 = vpop.eup %5382  ;;  %v3351_v59 = vadd.f32 1.0, %v5381_v41  ;;  %v3551_v32 = vld [vmem:[%s6379_s6 + $0x78] sm:$0xff] }
 0x8c1   :  { %5386 = vrcp.f32 %v3344_v36  ;;  %v5112_v36 = vpack.c.bf16 %v3551_v32, %v3550_v31 }
 0x8c2   :  { %5388 = vrcp.f32 %v3351_v59 }
 0x8ca   :  { %v5385_v43 = vpop.eup %5384 }
 0x8cb   :  { %v5387_v48 = vpop.eup %5386  ;;  %v3355_v58 = vmul.f32 %v5385_v43, %v5383_v42 }
 0x8cc   :  { %v3354_v60 = vmul.f32 %v5387_v48, %v6207_v28  ;;  %v5389_v14 = vpop.eup %5388 }
 0x8ce   :  { %v6249_v1 = vadd.f32 %v3355_v58, %v3354_v60 }
 0x8d0   :  { %5390 = vtanh.f32 %v6249_v1 }
 0x8da   :  { %v5391_v21 = vpop.eup %5390 }
 0x8db   :  { %v3358_v26 = vmul.f32 %v5391_v21, %v5389_v14 }
 0x8dd   :  { %3431 = vmatmul.mubr.f32.vlgmr.msra.gmra.mrb[14].mxu0 %v3358_v26  ;;  %3502 = vmatmul.mubr.f32.vlgmr.msra.gmra.mrb[14].mxu1 %v3358_v26 }
 0x8de   :  { %5068 = vmatpush3.bf16.msra.mxu0 %v5067_v25  ;;  %3844 = vmatprep.mubr.msk.f32.mxu0 %vm5534_vm1, %v5532_v15 }
 0x8df   :  { %5069 = vmatprep.subr.bf16.mxu0 %v5533_v55  ;;  %3879 = vmatprep.mubr.msk.f32.mxu1 %vm5534_vm1, %v5532_v15  ;;  %v3560_v15 = vld [vmem:[%s6380_s7 + $0x40] sm:$0xff] }
 0x8e0   :  { %v5079_v63 = vpack.c.bf16 %v3561_v62, %v3560_v15  ;;  %5092 = vmatpush3.bf16.msra.mxu1 %v5091_v34 }
 0x8e1   :  { %5093 = vmatprep.subr.bf16.mxu1 %v5533_v55 }
 0x8e2   :  { %5071 = vmatpush3.bf16.msra.mxu0 %v5070_v44 }
 0x8e3   :  { %5072 = vmatprep.subr.bf16.mxu0 %v5533_v55 }
 0x8e6   :  { %5074 = vmatpush3.bf16.msra.mxu0 %v5073_v51 }
 0x8e7   :  { %5075 = vmatprep.subr.bf16.mxu0 %v5533_v55 }
 0x8ea   :  { %5077 = vmatpush3.bf16.msra.mxu0 %v5076_v35 }
 0x8eb   :  { %5078 = vmatprep.subr.bf16.mxu0 %v5533_v55 }
 0x8ee   :  { %5080 = vmatpush3.bf16.msra.mxu0 %v5079_v63  ;;  %v3777_v63 = vld [vmem:[#allocation3] ss:$0 sm:$0xff] }
 0x8ef   :  { %5081 = vmatprep.subr.bf16.mxu0 %v5533_v55 }
 0x8f2   :  { %5083 = vmatpush3.bf16.msra.mxu0 %v5082_v45 }
 0x8f3   :  { %5084 = vmatprep.subr.bf16.mxu0 %v5533_v55 }
 0x8f6   :  { %5086 = vmatpush3.bf16.msra.mxu0 %v5085_v8 }
 0x8f7   :  { %5087 = vmatprep.subr.bf16.mxu0 %v5533_v55 }
 0x8fa   :  { %5089 = vmatpush3.bf16.msra.mxu0 %v5088_v17 }
 0x8fd   :  { %3845 = vmatmul.mubr.f32.vlgmr.msra.gmra.mrb[18].mxu0 %v5995_v3  ;;  %v3539_v3 = vld [vmem:[%s6379_s6 + $0x18] sm:$0xff] }
 0x8fe   :  { %v5094_v28 = vpack.c.bf16 %v3539_v3, %v3538_v16 }
 0x900   :  { %5095 = vmatpush3.bf16.msra.mxu1 %v5094_v28 }
 0x901   :  { %5096 = vmatprep.subr.bf16.mxu1 %v5533_v55 }
 0x904   :  { %5098 = vmatpush3.bf16.msra.mxu1 %v5097_v39 }
 0x905   :  { %5099 = vmatprep.subr.bf16.mxu1 %v5533_v55 }
 0x908   :  { %5101 = vmatpush3.bf16.msra.mxu1 %v5100_v61 }
 0x909   :  { %5102 = vmatprep.subr.bf16.mxu1 %v5533_v55 }
 0x90c   :  { %5104 = vmatpush3.bf16.msra.mxu1 %v5103_v6 }
 0x90d   :  { %5105 = vmatprep.subr.bf16.mxu1 %v5533_v55 }
 0x910   :  { %5107 = vmatpush3.bf16.msra.mxu1 %v5106_v20 }
 0x911   :  { %5108 = vmatprep.subr.bf16.mxu1 %v5533_v55 }
 0x914   :  { %5110 = vmatpush3.bf16.msra.mxu1 %v5109_v30 }
 0x915   :  { %5111 = vmatprep.subr.bf16.mxu1 %v5533_v55 }
 0x918   :  { %5113 = vmatpush3.bf16.msra.mxu1 %v5112_v36 }
 0x9b0   :  { %v3432_v41 = vpop.f32.mrb[14].mxu0  ;;  %v3503_v42 = vpop.f32.mrb[14].mxu1 }
 0x9b1   :  { %v5128_v43 = vadd.f32 %v3432_v41, %v5983_v27  ;;  %v3434_v48 = vpop.f32.mrb[15].mxu0  ;;  %v3505_v58 = vpop.f32.mrb[15].mxu1  ;;  %v5144_v21 = vadd.f32 %v3503_v42, %v5992_v54 }
 0x9b2   :  { %v5129_v59 = vadd.f32 %v3434_v48, %v5985_v37  ;;  %v5145_v13 = vadd.f32 %v3505_v58, %v5989_v53 }
 0x9b3   :  { %v3774_v60 = vmul.f32 -1.442695, %v5128_v43 }
 0x9b4   :  { %v3775_v12 = vmul.f32 -1.442695, %v5129_v59  ;;  %v3776_v14 = vmul.f32 -1.442695, %v5145_v13 }
 0x9b5   :  { %5392 = vpow2.f32 %v3774_v60 }
 0x9b6   :  { %5394 = vpow2.f32 %v3775_v12 }
 0x9b7   :  { %5396 = vpow2.f32 %v3776_v14 }
 0x9b8   :  { %5398 = vtanh.f32 %v5144_v21 }
 0x9bf   :  { %v5393_v25 = vpop.eup %5392 }
 0x9c0   :  { %v5395_v55 = vpop.eup %5394  ;;  %v3515_v26 = vadd.f32 1.0, %v5393_v25 }
 0x9c1   :  { %v3521_v46 = vadd.f32 1.0, %v5395_v55  ;;  %v5397_v27 = vpop.eup %5396 }
 0x9c2   :  { %5400 = vrcp.f32 %v3515_v26  ;;  %v5399_v40 = vpop.eup %5398  ;;  %v3528_v50 = vadd.f32 1.0, %v5397_v27 }
 0x9c3   :  { %5402 = vrcp.f32 %v3521_v46 }
 0x9c4   :  { %5404 = vrcp.f32 %v3528_v50 }
 0x9cc   :  { %v5401_v37 = vpop.eup %5400 }
 0x9cd   :  { %v5403_v44 = vpop.eup %5402  ;;  %v3532_v47 = vmul.f32 %v5401_v37, %v5399_v40 }
 0x9ce   :  { %v3531_v51 = vmul.f32 %v5403_v44, %v6249_v1  ;;  %v5405_v29 = vpop.eup %5404 }
 0x9d0   :  { %v3533_v53 = vadd.f32 %v3532_v47, %v3531_v51  ;;  %v3634_v52 = vpop.f32.mrb[18].mxu0 }
 0x9d1   :  { %v3846_v54 = vpop.f32.mrb[19].mxu0 }
 0x9d2   :  { %5406 = vtanh.f32 %v3533_v53 }
 0x9dc   :  { %v5407_v35 = vpop.eup %5406 }
 0x9dd   :  { %v3535_v15 = vmul.f32 %v5407_v35, %v5405_v29 }
 0x9df   :  { %3880 = vmatmul.mubr.f32.vlgmr.msra.gmra.mrb[18].mxu1 %v3535_v15 }
 0xab2   :  { %v3704_v62 = vpop.f32.mrb[18].mxu1 }
 0xab3   :  { %v3705_v0 = vadd.f32 %v3704_v62, %v3634_v52  ;;  %v3881_v2 = vpop.f32.mrb[19].mxu1 }
 0xab5   :  { %v3715_v45 = vadd.f32 %v3777_v63, %v3705_v0 }
 0xab7   :  { %3717 = vst.msk [vmem:[%s6382_s9] sm:$0xff] %vm3716_vm2, %v3715_v45 }
 0xab8   :  { %3722 = vsyncpa [#allocation5], 1 }
 0xab9   :  { %3723 = vsyncpa [#allocation7], 1 }
 0xaba   :  { %3724 = vsyncpa [#allocation10], 1 }

</bundles_post_ra>
